<compile_context>
chip_gen: v7x
topology: tpu7x:2x2x1
jax: 0.10.0
libtpu: 0.0.40
codegen_flags: <defaults>
</compile_context>

<pallas_src>
import numpy as np

import jax
import jax.numpy as jnp
from jax.experimental import pallas as pl
from jax.experimental.pallas import tpu as pltpu

LATENT_DIM = 16
BN_EPS = 1e-5

# Canonical operand ordering for the fused kernel (after x and eps).
_OP_KEYS = (
    "c1_M", "c1_b", "c1_P", "c1_g", "c1_beta",
    "c2_M", "c2_b", "c2_P", "c2_g", "c2_beta",
    "c3_M", "c3_b", "c3_P", "c3_g", "c3_beta",
    "hd_Wm", "hd_Wlv", "hd_bm", "hd_blv",
    "ln_W0", "ln_b0", "ln_W1", "ln_b1",
    "d1_M", "d1_b", "d1_P", "d1_g", "d1_beta",
    "d2_M", "d2_b", "d2_P", "d2_g", "d2_beta",
    "d3_M", "d3_b",
)

_BF16_KEYS = frozenset(
    {"c1_M", "c2_M", "c3_M", "d1_M", "d2_M", "d3_M",
     "hd_Wm", "hd_Wlv", "ln_W0", "ln_W1"})


# --------------------------------------------------------------------------
# The single fused Pallas kernel.
# Activation layout: (H, B, 128) -> rows h-major, batch on sublanes,
# lanes = (w, c) w-major, zero-padded to 128.
# --------------------------------------------------------------------------
def _vae_kernel(x_ref, eps_ref, *refs):
    n_ops = len(_OP_KEYS)
    assert len(refs) == n_ops + 3
    p = dict(zip(_OP_KEYS, refs[:n_ops]))
    out_recon, out_mean, out_logvar = refs[n_ops:n_ops + 3]

    B = x_ref.shape[1]
    f32 = jnp.float32
    bf16 = jnp.bfloat16

    def conv_layer(a, Ho, M_ref, b_ref):
        # a: (Hin >= 2 + 2*Ho, B, 128).  Stride-2 row gather of the 3 kh taps
        # via contiguous slices + free major-dim reshapes; taps folded into
        # the K axis of a single GEMM.
        taps = []
        for kh in range(3):
            t = a[kh:kh + 2 * Ho]                       # (2*Ho, B, 128)
            t = t.reshape(Ho, 2, B, 128)[:, 0]          # rows kh, kh+2, ...
            taps.append(t.reshape(Ho * B, 128).astype(bf16))
        g = jnp.concatenate(taps, axis=-1)              # (Ho*B, 384)
        y = jnp.dot(g, M_ref[...], preferred_element_type=f32)
        return y + b_ref[...]                           # (Ho*B, 128) f32

    def bn_relu(y, P_ref, g_ref, beta_ref, n, reps):
        # y: (R, 128) f32.  Train-mode BatchNorm (centered two-pass variance,
        # f32 stats) + ReLU.  P maps lanes -> channels (zero rows for pad
        # lanes), the per-channel -> per-lane broadcast is a jnp.tile.
        P = P_ref[...]                                  # (128, C)
        inv_n = 1.0 / float(n)
        mean_c = jnp.dot(jnp.sum(y, axis=0, keepdims=True), P,
                         preferred_element_type=f32) * inv_n      # (1, C)
        mean_l = jnp.tile(mean_c, (1, reps))                       # (1, 128)
        d = y - mean_l
        var_c = jnp.dot(jnp.sum(d * d, axis=0, keepdims=True), P,
                        preferred_element_type=f32) * inv_n        # (1, C)
        scale_c = g_ref[...] * jax.lax.rsqrt(var_c + BN_EPS)
        scale_l = jnp.tile(scale_c, (1, reps))
        shift_l = jnp.tile(beta_ref[...], (1, reps))
        return jnp.maximum(d * scale_l + shift_l, 0.0)

    def deconv_taps(a2d, M_ref):
        # One wide GEMM (N = 3*128); split per-tap on 128-aligned lane groups.
        y = jnp.dot(a2d.astype(bf16), M_ref[...], preferred_element_type=f32)
        return [y[:, 128 * kh:128 * (kh + 1)] for kh in range(3)]

    def pad_rows(a3d, n_extra):
        z = jnp.zeros((n_extra,) + a3d.shape[1:], f32)
        return jnp.concatenate([a3d, z], axis=0)

    # ------------------------------ Encoder ------------------------------
    x = x_ref[...]                                                   # (28, B, 128)
    y = conv_layer(x, 13, p["c1_M"], p["c1_b"])                      # (13B, 128)
    a = bn_relu(y, p["c1_P"], p["c1_g"], p["c1_beta"], B * 13 * 13, 16)
    a = pad_rows(a.reshape(13, B, 128), 1)                           # (14, B, 128)

    y = conv_layer(a, 6, p["c2_M"], p["c2_b"])                       # (6B, 128)
    a = bn_relu(y, p["c2_P"], p["c2_g"], p["c2_beta"], B * 6 * 6, 8)
    a = a.reshape(6, B, 128)

    y = conv_layer(a, 2, p["c3_M"], p["c3_b"])                       # (2B, 128)
    a = bn_relu(y, p["c3_P"], p["c3_g"], p["c3_beta"], B * 2 * 2, 4)
    a = a.reshape(2, B, 128)

    # ---------------- Latent heads + reparameterization ------------------
    gfeat = jnp.concatenate([a[0], a[1]], axis=-1).astype(bf16)      # (B, 256)
    mean_p = jnp.dot(gfeat, p["hd_Wm"][...],
                     preferred_element_type=f32) + p["hd_bm"][...]   # (B, 128)
    logv_p = jnp.dot(gfeat, p["hd_Wlv"][...],
                     preferred_element_type=f32) + p["hd_blv"][...]  # (B, 128)
    out_mean[...] = mean_p
    out_logvar[...] = logv_p
    # eps is a single latent-dim vector broadcast over the batch
    # (matches torch.randn(latent_dim)); pad lanes of mean/logvar are 0.
    z = (mean_p + eps_ref[...] * jnp.exp(0.5 * logv_p)).astype(bf16)

    # ------------------------------ Decoder ------------------------------
    rows = []
    for h in range(2):
        r = jnp.dot(z, p["ln_W%d" % h][...],
                    preferred_element_type=f32) + p["ln_b%d" % h][...]
        rows.append(jnp.maximum(r, 0.0))
    d = jnp.concatenate(rows, axis=0)                                # (2B, 128) h-major

    # deconv1 (stride 3): output row 3*ih + kh -> pure row interleave.
    c0, c1, c2 = deconv_taps(d, p["d1_M"])
    y = jnp.stack([c0.reshape(2, B, 128), c1.reshape(2, B, 128),
                   c2.reshape(2, B, 128)], axis=1)                   # (2, 3, B, 128)
    y = y.reshape(6 * B, 128) + p["d1_b"][...]
    a = bn_relu(y, p["d1_P"], p["d1_g"], p["d1_beta"], B * 6 * 6, 8)

    # deconv2 (stride 2): even rows = tap0 + shifted tap2, odd rows = tap1.
    c0, c1, c2 = deconv_taps(a, p["d2_M"])
    z1 = jnp.zeros((1, B, 128), f32)
    even = (jnp.concatenate([c0.reshape(6, B, 128), z1], axis=0)
            + jnp.concatenate([z1, c2.reshape(6, B, 128)], axis=0))  # (7, B, 128)
    odd = jnp.concatenate([c1.reshape(6, B, 128), z1], axis=0)       # (7, B, 128)
    y = jnp.stack([even, odd], axis=1).reshape(14, B, 128)[0:13]     # (13, B, 128)
    y = y.reshape(13 * B, 128) + p["d2_b"][...]
    a = bn_relu(y, p["d2_P"], p["d2_g"], p["d2_beta"], B * 13 * 13, 16)

    # deconv3 (stride 2, output_padding 1): 28 rows, last row is bias-only.
    c0, c1, c2 = deconv_taps(a, p["d3_M"])
    even = (jnp.concatenate([c0.reshape(13, B, 128), z1], axis=0)
            + jnp.concatenate([z1, c2.reshape(13, B, 128)], axis=0))  # (14, B, 128)
    odd = jnp.concatenate([c1.reshape(13, B, 128), z1], axis=0)       # (14, B, 128)
    y = jnp.stack([even, odd], axis=1).reshape(28, B, 128)
    y = y.reshape(28 * B, 128) + p["d3_b"][...]
    out_recon[...] = jax.nn.sigmoid(y).reshape(28, B, 128)


# --------------------------------------------------------------------------
# Forward wrapper: one pallas_call, whole-array VMEM blocks.
# --------------------------------------------------------------------------
def vae_forward(ops, x_nchw, eps):
    B = x_nchw.shape[0]
    L = eps.shape[0]
    # Layout plumbing (outside the kernel): (B,1,28,28) -> (28, B, 128) slab.
    x3d = jnp.pad(jnp.transpose(x_nchw.reshape(B, 28, 28), (1, 0, 2)),
                  ((0, 0), (0, 0), (0, 128 - 28)))
    eps_row = jnp.pad(eps, (0, 128 - L)).reshape(1, 128)

    operands = [x3d, eps_row] + [ops[k] for k in _OP_KEYS]
    out_shape = (
        jax.ShapeDtypeStruct((28, B, 128), jnp.float32),   # recon slab (lane-dense)
        jax.ShapeDtypeStruct((B, 128), jnp.float32),       # mean (padded lanes)
        jax.ShapeDtypeStruct((B, 128), jnp.float32),       # logvar (padded lanes)
    )

    def full_spec(shape):
        nd = len(shape)
        return pl.BlockSpec(shape, lambda i, _nd=nd: (0,) * _nd)

    recon3d, mean_p, logv_p = pl.pallas_call(
        _vae_kernel,
        out_shape=out_shape,
        grid=(1,),
        in_specs=[full_spec(a.shape) for a in operands],
        out_specs=tuple(full_spec(s.shape) for s in out_shape),
        compiler_params=pltpu.CompilerParams(
            dimension_semantics=("arbitrary",),
            vmem_limit_bytes=48 * 1024 * 1024),
    )(*operands)

    recon = jnp.transpose(recon3d, (1, 0, 2))[:, :, :28]   # (B, 28, 28)
    return recon, mean_p[:, :L], logv_p[:, :L]


# --------------------------------------------------------------------------
# One-time host-side prep: fold conv/deconv weights and the NCHW flatten
# permutations into small batch-independent (O(1)) matrices, lanes padded
# to 128, matmul weights cast to bf16.
# --------------------------------------------------------------------------
def build_operands(params):
    p = {k: np.asarray(v, dtype=np.float32) for k, v in params.items()}
    ops = {}

    def conv_fold(W, b, Wo, s):
        Cout, Cin, k, _ = W.shape
        M = np.zeros((k * 128, 128), np.float32)
        bias = np.zeros((1, 128), np.float32)
        for kh in range(k):
            for ow in range(Wo):
                for kw in range(k):
                    wi = s * ow + kw
                    M[kh * 128 + wi * Cin: kh * 128 + (wi + 1) * Cin,
                      ow * Cout:(ow + 1) * Cout] = W[:, :, kh, kw].T
        for ow in range(Wo):
            bias[0, ow * Cout:(ow + 1) * Cout] = b
        return M, bias

    def deconv_fold(W, b, Win, Wo_full, s):
        Cin, Cout, k, _ = W.shape
        M = np.zeros((128, k * 128), np.float32)
        bias = np.zeros((1, 128), np.float32)
        for kh in range(k):
            for iw in range(Win):
                for kw in range(k):
                    ow = s * iw + kw
                    M[iw * Cin:(iw + 1) * Cin,
                      kh * 128 + ow * Cout: kh * 128 + (ow + 1) * Cout] = W[:, :, kh, kw]
        for ow in range(Wo_full):
            bias[0, ow * Cout:(ow + 1) * Cout] = b
        return M, bias

    def bn_ops(prefix, gamma, beta, Wsp, C):
        P = np.zeros((128, C), np.float32)
        for w in range(Wsp):
            P[w * C:(w + 1) * C, :] = np.eye(C, dtype=np.float32)
        ops[prefix + "_P"] = P
        ops[prefix + "_g"] = gamma[None, :]
        ops[prefix + "_beta"] = beta[None, :]

    # encoder
    ops["c1_M"], ops["c1_b"] = conv_fold(p["conv1_w"], p["conv1_b"], 13, 2)
    bn_ops("c1", p["bn1_g"], p["bn1_b"], 13, 8)
    ops["c2_M"], ops["c2_b"] = conv_fold(p["conv2_w"], p["conv2_b"], 6, 2)
    bn_ops("c2", p["bn2_g"], p["bn2_b"], 6, 16)
    ops["c3_M"], ops["c3_b"] = conv_fold(p["conv3_w"], p["conv3_b"], 2, 2)
    bn_ops("c3", p["bn3_g"], p["bn3_b"], 2, 32)

    # latent heads: fold the NCHW flatten (idx = c*4 + 2h + w) into the weights
    L = p["mean_w"].shape[0]
    Wm = np.zeros((256, 128), np.float32)
    Wlv = np.zeros((256, 128), np.float32)
    for h in range(2):
        for w in range(2):
            for c in range(32):
                row = h * 128 + w * 32 + c
                src = c * 4 + 2 * h + w
                Wm[row, :L] = p["mean_w"][:, src]
                Wlv[row, :L] = p["logvar_w"][:, src]
    bm = np.zeros((1, 128), np.float32)
    blv = np.zeros((1, 128), np.float32)
    bm[0, :L] = p["mean_b"]
    blv[0, :L] = p["logvar_b"]
    ops["hd_Wm"], ops["hd_Wlv"], ops["hd_bm"], ops["hd_blv"] = Wm, Wlv, bm, blv

    # decoder linear1 + view(-1,32,2,2): one weight matrix per output row h
    for h in range(2):
        Wl = np.zeros((128, 128), np.float32)
        bl = np.zeros((1, 128), np.float32)
        for w in range(2):
            for c in range(32):
                col = w * 32 + c
                src = c * 4 + 2 * h + w
                Wl[:L, col] = p["lin1_w"][src, :]
                bl[0, col] = p["lin1_b"][src]
        ops["ln_W%d" % h] = Wl
        ops["ln_b%d" % h] = bl

    # decoder deconvs
    ops["d1_M"], ops["d1_b"] = deconv_fold(p["deconv1_w"], p["deconv1_b"], 2, 6, 3)
    bn_ops("d1", p["dbn1_g"], p["dbn1_b"], 6, 16)
    ops["d2_M"], ops["d2_b"] = deconv_fold(p["deconv2_w"], p["deconv2_b"], 6, 13, 2)
    bn_ops("d2", p["dbn2_g"], p["dbn2_b"], 13, 8)
    ops["d3_M"], ops["d3_b"] = deconv_fold(p["deconv3_w"], p["deconv3_b"], 13, 28, 2)

    return {k: jnp.asarray(v, dtype=jnp.bfloat16 if k in _BF16_KEYS else jnp.float32)
            for k, v in ops.items()}


# --------------------------------------------------------------------------
# Pure-JAX reference (for numerical validation of the fused kernel).
# --------------------------------------------------------------------------
def vae_reference(params, x_nchw, eps):
    P = jax.lax.Precision.HIGHEST
    p = params
    B = x_nchw.shape[0]

    def conv(x, w, b, s):
        y = jax.lax.conv_general_dilated(
            x, w, (s, s), "VALID",
            dimension_numbers=("NCHW", "OIHW", "NCHW"), precision=P)
        return y + b[None, :, None, None]

    def deconv(x, w, b, s, op=0):
        k = w.shape[2]
        wf = jnp.transpose(w[:, :, ::-1, ::-1], (1, 0, 2, 3))
        y = jax.lax.conv_general_dilated(
            x, wf, (1, 1),
            padding=((k - 1, k - 1 + op), (k - 1, k - 1 + op)),
            lhs_dilation=(s, s),
            dimension_numbers=("NCHW", "OIHW", "NCHW"), precision=P)
        return y + b[None, :, None, None]

    def bn_relu(x, g, b):
        mu = jnp.mean(x, axis=(0, 2, 3), keepdims=True)
        var = jnp.mean((x - mu) ** 2, axis=(0, 2, 3), keepdims=True)
        y = (x - mu) * jax.lax.rsqrt(var + BN_EPS) * g[None, :, None, None] + b[None, :, None, None]
        return jnp.maximum(y, 0.0)

    h = bn_relu(conv(x_nchw, p["conv1_w"], p["conv1_b"], 2), p["bn1_g"], p["bn1_b"])
    h = bn_relu(conv(h, p["conv2_w"], p["conv2_b"], 2), p["bn2_g"], p["bn2_b"])
    h = bn_relu(conv(h, p["conv3_w"], p["conv3_b"], 2), p["bn3_g"], p["bn3_b"])
    flat = h.reshape(B, -1)
    mean = jnp.dot(flat, p["mean_w"].T, precision=P) + p["mean_b"]
    logvar = jnp.dot(flat, p["logvar_w"].T, precision=P) + p["logvar_b"]
    z = mean + eps[None, :] * jnp.exp(0.5 * logvar)
    d = jnp.maximum(jnp.dot(z, p["lin1_w"].T, precision=P) + p["lin1_b"], 0.0)
    d = d.reshape(B, 32, 2, 2)
    d = bn_relu(deconv(d, p["deconv1_w"], p["deconv1_b"], 3), p["dbn1_g"], p["dbn1_b"])
    d = bn_relu(deconv(d, p["deconv2_w"], p["deconv2_b"], 2), p["dbn2_g"], p["dbn2_b"])
    d = jax.nn.sigmoid(deconv(d, p["deconv3_w"], p["deconv3_b"], 2, op=1))
    return d.reshape(B, 28, 28), mean, logvar


# --------------------------------------------------------------------------
# Deterministic parameter initialization (shapes from the torch __init__).
# --------------------------------------------------------------------------
def init_params(key, latent_dim):
    keys = iter(jax.random.split(key, 32))

    def nrm(shape, scale=0.05):
        return scale * jax.random.normal(next(keys), shape, dtype=jnp.float32)

    def zeros(shape):
        return jnp.zeros(shape, dtype=jnp.float32)

    def ones(shape):
        return jnp.ones(shape, dtype=jnp.float32)

    return {
        # encoder
        "conv1_w": nrm((8, 1, 3, 3)),   "conv1_b": nrm((8,)),
        "bn1_g": ones((8,)),            "bn1_b": zeros((8,)),
        "conv2_w": nrm((16, 8, 3, 3)),  "conv2_b": nrm((16,)),
        "bn2_g": ones((16,)),           "bn2_b": zeros((16,)),
        "conv3_w": nrm((32, 16, 3, 3)), "conv3_b": nrm((32,)),
        "bn3_g": ones((32,)),           "bn3_b": zeros((32,)),
        "mean_w": nrm((latent_dim, 128)),   "mean_b": nrm((latent_dim,)),
        "logvar_w": nrm((latent_dim, 128)), "logvar_b": nrm((latent_dim,)),
        # decoder
        "lin1_w": nrm((128, latent_dim)),   "lin1_b": nrm((128,)),
        "deconv1_w": nrm((32, 16, 3, 3)),   "deconv1_b": nrm((16,)),
        "dbn1_g": ones((16,)),              "dbn1_b": zeros((16,)),
        "deconv2_w": nrm((16, 8, 3, 3)),    "deconv2_b": nrm((8,)),
        "dbn2_g": ones((8,)),               "dbn2_b": zeros((8,)),
        "deconv3_w": nrm((8, 1, 3, 3)),     "deconv3_b": nrm((1,)),
    }


if __name__ == "__main__":
    key = jax.random.PRNGKey(0)
    kx, keps, kp = jax.random.split(key, 3)
    B = 8   # multiple of 8 keeps all sublane merges layout-free

    x = jax.random.normal(kx, (B, 1, 28, 28), dtype=jnp.float32)     # NCHW input
    eps = jax.random.normal(keps, (LATENT_DIM,), dtype=jnp.float32)  # torch.randn(latent_dim)
    params = init_params(kp, LATENT_DIM)

    ops = build_operands(params)   # one-time host-side prep (batch-independent)

    recon, mean, logvar = jax.jit(vae_forward)(ops, x, eps)
    jax.block_until_ready((recon, mean, logvar))

    assert recon.shape == (B, 28, 28)
    assert mean.shape == (B, LATENT_DIM)
    assert logvar.shape == (B, LATENT_DIM)
    assert bool(jnp.all(jnp.isfinite(recon)))
    assert bool(jnp.all(jnp.isfinite(mean)))
    assert bool(jnp.all(jnp.isfinite(logvar)))

    # numerical check against a pure-JAX f32 reference of the torch module
    # (kernel GEMMs run in bf16 with f32 accumulation -> 5e-2 abs tolerance)
    r_ref, m_ref, lv_ref = jax.jit(vae_reference)(params, x, eps)
    jax.block_until_ready((r_ref, m_ref, lv_ref))
    assert bool(jnp.allclose(recon, r_ref, rtol=0.0, atol=5e-2)), \
        float(jnp.max(jnp.abs(recon - r_ref)))
    assert bool(jnp.allclose(mean, m_ref, rtol=0.0, atol=5e-2)), \
        float(jnp.max(jnp.abs(mean - m_ref)))
    assert bool(jnp.allclose(logvar, lv_ref, rtol=0.0, atol=5e-2)), \
        float(jnp.max(jnp.abs(logvar - lv_ref)))

    print("KERNEL_OK")
</pallas_src>

<mosaic_0001>
module attributes {stable_mosaic.version = 11 : i64} {
  func.func @_vae_kernel(%arg0: i32, %arg1: memref<28x8x128xf32, #tpu.memory_space<vmem>>, %arg2: memref<1x128xf32, #tpu.memory_space<vmem>>, %arg3: memref<384x128xbf16, #tpu.memory_space<vmem>>, %arg4: memref<1x128xf32, #tpu.memory_space<vmem>>, %arg5: memref<128x8xf32, #tpu.memory_space<vmem>>, %arg6: memref<1x8xf32, #tpu.memory_space<vmem>>, %arg7: memref<1x8xf32, #tpu.memory_space<vmem>>, %arg8: memref<384x128xbf16, #tpu.memory_space<vmem>>, %arg9: memref<1x128xf32, #tpu.memory_space<vmem>>, %arg10: memref<128x16xf32, #tpu.memory_space<vmem>>, %arg11: memref<1x16xf32, #tpu.memory_space<vmem>>, %arg12: memref<1x16xf32, #tpu.memory_space<vmem>>, %arg13: memref<384x128xbf16, #tpu.memory_space<vmem>>, %arg14: memref<1x128xf32, #tpu.memory_space<vmem>>, %arg15: memref<128x32xf32, #tpu.memory_space<vmem>>, %arg16: memref<1x32xf32, #tpu.memory_space<vmem>>, %arg17: memref<1x32xf32, #tpu.memory_space<vmem>>, %arg18: memref<256x128xbf16, #tpu.memory_space<vmem>>, %arg19: memref<256x128xbf16, #tpu.memory_space<vmem>>, %arg20: memref<1x128xf32, #tpu.memory_space<vmem>>, %arg21: memref<1x128xf32, #tpu.memory_space<vmem>>, %arg22: memref<128x128xbf16, #tpu.memory_space<vmem>>, %arg23: memref<1x128xf32, #tpu.memory_space<vmem>>, %arg24: memref<128x128xbf16, #tpu.memory_space<vmem>>, %arg25: memref<1x128xf32, #tpu.memory_space<vmem>>, %arg26: memref<128x384xbf16, #tpu.memory_space<vmem>>, %arg27: memref<1x128xf32, #tpu.memory_space<vmem>>, %arg28: memref<128x16xf32, #tpu.memory_space<vmem>>, %arg29: memref<1x16xf32, #tpu.memory_space<vmem>>, %arg30: memref<1x16xf32, #tpu.memory_space<vmem>>, %arg31: memref<128x384xbf16, #tpu.memory_space<vmem>>, %arg32: memref<1x128xf32, #tpu.memory_space<vmem>>, %arg33: memref<128x8xf32, #tpu.memory_space<vmem>>, %arg34: memref<1x8xf32, #tpu.memory_space<vmem>>, %arg35: memref<1x8xf32, #tpu.memory_space<vmem>>, %arg36: memref<128x384xbf16, #tpu.memory_space<vmem>>, %arg37: memref<1x128xf32, #tpu.memory_space<vmem>>, %arg38: memref<28x8x128xf32, #tpu.memory_space<vmem>>, %arg39: memref<8x128xf32, #tpu.memory_space<vmem>>, %arg40: memref<8x128xf32, #tpu.memory_space<vmem>>) attributes {dimension_semantics = [#tpu.dimension_semantics<arbitrary>], iteration_bounds = array<i64: 1>, scalar_prefetch = 0 : i64, scratch_operands = 0 : i64, tpu.core_type = #tpu.core_type<tc>, window_params = [{pipeline_mode = #tpu.pipeline_mode<synchronous>, transform_indices = @transform_0, window_bounds = array<i64: 28, 8, 128>}, {pipeline_mode = #tpu.pipeline_mode<synchronous>, transform_indices = @transform_1, window_bounds = array<i64: 1, 128>}, {pipeline_mode = #tpu.pipeline_mode<synchronous>, transform_indices = @transform_2, window_bounds = array<i64: 384, 128>}, {pipeline_mode = #tpu.pipeline_mode<synchronous>, transform_indices = @transform_3, window_bounds = array<i64: 1, 128>}, {pipeline_mode = #tpu.pipeline_mode<synchronous>, transform_indices = @transform_4, window_bounds = array<i64: 128, 8>}, {pipeline_mode = #tpu.pipeline_mode<synchronous>, transform_indices = @transform_5, window_bounds = array<i64: 1, 8>}, {pipeline_mode = #tpu.pipeline_mode<synchronous>, transform_indices = @transform_6, window_bounds = array<i64: 1, 8>}, {pipeline_mode = #tpu.pipeline_mode<synchronous>, transform_indices = @transform_7, window_bounds = array<i64: 384, 128>}, {pipeline_mode = #tpu.pipeline_mode<synchronous>, transform_indices = @transform_8, window_bounds = array<i64: 1, 128>}, {pipeline_mode = #tpu.pipeline_mode<synchronous>, transform_indices = @transform_9, window_bounds = array<i64: 128, 16>}, {pipeline_mode = #tpu.pipeline_mode<synchronous>, transform_indices = @transform_10, window_bounds = array<i64: 1, 16>}, {pipeline_mode = #tpu.pipeline_mode<synchronous>, transform_indices = @transform_11, window_bounds = array<i64: 1, 16>}, {pipeline_mode = #tpu.pipeline_mode<synchronous>, transform_indices = @transform_12, window_bounds = array<i64: 384, 128>}, {pipeline_mode = #tpu.pipeline_mode<synchronous>, transform_indices = @transform_13, window_bounds = array<i64: 1, 128>}, {pipeline_mode = #tpu.pipeline_mode<synchronous>, transform_indices = @transform_14, window_bounds = array<i64: 128, 32>}, {pipeline_mode = #tpu.pipeline_mode<synchronous>, transform_indices = @transform_15, window_bounds = array<i64: 1, 32>}, {pipeline_mode = #tpu.pipeline_mode<synchronous>, transform_indices = @transform_16, window_bounds = array<i64: 1, 32>}, {pipeline_mode = #tpu.pipeline_mode<synchronous>, transform_indices = @transform_17, window_bounds = array<i64: 256, 128>}, {pipeline_mode = #tpu.pipeline_mode<synchronous>, transform_indices = @transform_18, window_bounds = array<i64: 256, 128>}, {pipeline_mode = #tpu.pipeline_mode<synchronous>, transform_indices = @transform_19, window_bounds = array<i64: 1, 128>}, {pipeline_mode = #tpu.pipeline_mode<synchronous>, transform_indices = @transform_20, window_bounds = array<i64: 1, 128>}, {pipeline_mode = #tpu.pipeline_mode<synchronous>, transform_indices = @transform_21, window_bounds = array<i64: 128, 128>}, {pipeline_mode = #tpu.pipeline_mode<synchronous>, transform_indices = @transform_22, window_bounds = array<i64: 1, 128>}, {pipeline_mode = #tpu.pipeline_mode<synchronous>, transform_indices = @transform_23, window_bounds = array<i64: 128, 128>}, {pipeline_mode = #tpu.pipeline_mode<synchronous>, transform_indices = @transform_24, window_bounds = array<i64: 1, 128>}, {pipeline_mode = #tpu.pipeline_mode<synchronous>, transform_indices = @transform_25, window_bounds = array<i64: 128, 384>}, {pipeline_mode = #tpu.pipeline_mode<synchronous>, transform_indices = @transform_26, window_bounds = array<i64: 1, 128>}, {pipeline_mode = #tpu.pipeline_mode<synchronous>, transform_indices = @transform_27, window_bounds = array<i64: 128, 16>}, {pipeline_mode = #tpu.pipeline_mode<synchronous>, transform_indices = @transform_28, window_bounds = array<i64: 1, 16>}, {pipeline_mode = #tpu.pipeline_mode<synchronous>, transform_indices = @transform_29, window_bounds = array<i64: 1, 16>}, {pipeline_mode = #tpu.pipeline_mode<synchronous>, transform_indices = @transform_30, window_bounds = array<i64: 128, 384>}, {pipeline_mode = #tpu.pipeline_mode<synchronous>, transform_indices = @transform_31, window_bounds = array<i64: 1, 128>}, {pipeline_mode = #tpu.pipeline_mode<synchronous>, transform_indices = @transform_32, window_bounds = array<i64: 128, 8>}, {pipeline_mode = #tpu.pipeline_mode<synchronous>, transform_indices = @transform_33, window_bounds = array<i64: 1, 8>}, {pipeline_mode = #tpu.pipeline_mode<synchronous>, transform_indices = @transform_34, window_bounds = array<i64: 1, 8>}, {pipeline_mode = #tpu.pipeline_mode<synchronous>, transform_indices = @transform_35, window_bounds = array<i64: 128, 384>}, {pipeline_mode = #tpu.pipeline_mode<synchronous>, transform_indices = @transform_36, window_bounds = array<i64: 1, 128>}, {pipeline_mode = #tpu.pipeline_mode<synchronous>, transform_indices = @transform_37, window_bounds = array<i64: 28, 8, 128>}, {pipeline_mode = #tpu.pipeline_mode<synchronous>, transform_indices = @transform_38, window_bounds = array<i64: 8, 128>}, {pipeline_mode = #tpu.pipeline_mode<synchronous>, transform_indices = @transform_39, window_bounds = array<i64: 8, 128>}]} {
    %c0 = arith.constant 0 : index
    %c0_0 = arith.constant 0 : index
    %c0_1 = arith.constant 0 : index
    %0 = vector.load %arg1[%c0, %c0_0, %c0_1] : memref<28x8x128xf32, #tpu.memory_space<vmem>>, vector<28x8x128xf32>
    %1 = vector.extract_strided_slice %0 {offsets = [0, 0, 0], sizes = [26, 8, 128], strides = [1, 1, 1]} : vector<28x8x128xf32> to vector<26x8x128xf32>
    %2 = vector.shape_cast %1 : vector<26x8x128xf32> to vector<13x2x8x128xf32>
    %3 = vector.extract_strided_slice %2 {offsets = [0, 0, 0, 0], sizes = [13, 1, 8, 128], strides = [1, 1, 1, 1]} : vector<13x2x8x128xf32> to vector<13x1x8x128xf32>
    %4 = vector.shape_cast %3 : vector<13x1x8x128xf32> to vector<13x8x128xf32>
    %5 = vector.shape_cast %4 : vector<13x8x128xf32> to vector<104x128xf32>
    %6 = arith.truncf %5 : vector<104x128xf32> to vector<104x128xbf16>
    %7 = vector.extract_strided_slice %0 {offsets = [1, 0, 0], sizes = [26, 8, 128], strides = [1, 1, 1]} : vector<28x8x128xf32> to vector<26x8x128xf32>
    %8 = vector.shape_cast %7 : vector<26x8x128xf32> to vector<13x2x8x128xf32>
    %9 = vector.extract_strided_slice %8 {offsets = [0, 0, 0, 0], sizes = [13, 1, 8, 128], strides = [1, 1, 1, 1]} : vector<13x2x8x128xf32> to vector<13x1x8x128xf32>
    %10 = vector.shape_cast %9 : vector<13x1x8x128xf32> to vector<13x8x128xf32>
    %11 = vector.shape_cast %10 : vector<13x8x128xf32> to vector<104x128xf32>
    %12 = arith.truncf %11 : vector<104x128xf32> to vector<104x128xbf16>
    %13 = vector.extract_strided_slice %0 {offsets = [2, 0, 0], sizes = [26, 8, 128], strides = [1, 1, 1]} : vector<28x8x128xf32> to vector<26x8x128xf32>
    %14 = vector.shape_cast %13 : vector<26x8x128xf32> to vector<13x2x8x128xf32>
    %15 = vector.extract_strided_slice %14 {offsets = [0, 0, 0, 0], sizes = [13, 1, 8, 128], strides = [1, 1, 1, 1]} : vector<13x2x8x128xf32> to vector<13x1x8x128xf32>
    %16 = vector.shape_cast %15 : vector<13x1x8x128xf32> to vector<13x8x128xf32>
    %17 = vector.shape_cast %16 : vector<13x8x128xf32> to vector<104x128xf32>
    %18 = arith.truncf %17 : vector<104x128xf32> to vector<104x128xbf16>
    %19 = tpu.concatenate %6, %12, %18 in 1 : vector<104x128xbf16>, vector<104x128xbf16>, vector<104x128xbf16> -> vector<104x384xbf16>
    %c0_2 = arith.constant 0 : index
    %c0_3 = arith.constant 0 : index
    %20 = vector.load %arg3[%c0_2, %c0_3] : memref<384x128xbf16, #tpu.memory_space<vmem>>, vector<384x128xbf16>
    %cst = arith.constant dense<0.000000e+00> : vector<104x128xf32>
    %21 = tpu.matmul %19, %20, %cst {dimension_numbers = #tpu.dot_dimension_numbers<[1], [0], [0], [1], [0, 0, 1, 1], [], []>} : vector<104x384xbf16>, vector<384x128xbf16>, vector<104x128xf32> -> vector<104x128xf32>
    %c0_4 = arith.constant 0 : index
    %c0_5 = arith.constant 0 : index
    %22 = vector.load %arg4[%c0_4, %c0_5] : memref<1x128xf32, #tpu.memory_space<vmem>>, vector<1x128xf32>
    %23 = vector.broadcast %22 : vector<1x128xf32> to vector<104x128xf32>
    %24 = arith.addf %21, %23 : vector<104x128xf32>
    %c0_6 = arith.constant 0 : index
    %c0_7 = arith.constant 0 : index
    %25 = vector.load %arg5[%c0_6, %c0_7] : memref<128x8xf32, #tpu.memory_space<vmem>>, vector<128x8xf32>
    %cst_8 = arith.constant dense<0.000000e+00> : vector<128xf32>
    %26 = vector.multi_reduction <add>, %24, %cst_8 [0] : vector<104x128xf32> to vector<128xf32>
    %27 = vector.shape_cast %26 : vector<128xf32> to vector<1x128xf32>
    %cst_9 = arith.constant dense<0.000000e+00> : vector<1x8xf32>
    %28 = tpu.matmul %27, %25, %cst_9 {dimension_numbers = #tpu.dot_dimension_numbers<[1], [0], [0], [1], [0, 0, 1, 1], [], []>} : vector<1x128xf32>, vector<128x8xf32>, vector<1x8xf32> -> vector<1x8xf32>
    %cst_10 = arith.constant 7.396450e-04 : f32
    %29 = vector.broadcast %cst_10 : f32 to vector<1x8xf32>
    %30 = arith.mulf %28, %29 : vector<1x8xf32>
    %31 = tpu.concatenate %30, %30, %30, %30, %30, %30, %30, %30, %30, %30, %30, %30, %30, %30, %30, %30 in 1 : vector<1x8xf32>, vector<1x8xf32>, vector<1x8xf32>, vector<1x8xf32>, vector<1x8xf32>, vector<1x8xf32>, vector<1x8xf32>, vector<1x8xf32>, vector<1x8xf32>, vector<1x8xf32>, vector<1x8xf32>, vector<1x8xf32>, vector<1x8xf32>, vector<1x8xf32>, vector<1x8xf32>, vector<1x8xf32> -> vector<1x128xf32>
    %32 = vector.broadcast %31 : vector<1x128xf32> to vector<104x128xf32>
    %33 = arith.subf %24, %32 : vector<104x128xf32>
    %34 = arith.mulf %33, %33 : vector<104x128xf32>
    %cst_11 = arith.constant dense<0.000000e+00> : vector<128xf32>
    %35 = vector.multi_reduction <add>, %34, %cst_11 [0] : vector<104x128xf32> to vector<128xf32>
    %36 = vector.shape_cast %35 : vector<128xf32> to vector<1x128xf32>
    %cst_12 = arith.constant dense<0.000000e+00> : vector<1x8xf32>
    %37 = tpu.matmul %36, %25, %cst_12 {dimension_numbers = #tpu.dot_dimension_numbers<[1], [0], [0], [1], [0, 0, 1, 1], [], []>} : vector<1x128xf32>, vector<128x8xf32>, vector<1x8xf32> -> vector<1x8xf32>
    %cst_13 = arith.constant 7.396450e-04 : f32
    %38 = vector.broadcast %cst_13 : f32 to vector<1x8xf32>
    %39 = arith.mulf %37, %38 : vector<1x8xf32>
    %c0_14 = arith.constant 0 : index
    %c0_15 = arith.constant 0 : index
    %40 = vector.load %arg6[%c0_14, %c0_15] : memref<1x8xf32, #tpu.memory_space<vmem>>, vector<1x8xf32>
    %cst_16 = arith.constant 9.99999974E-6 : f32
    %41 = vector.broadcast %cst_16 : f32 to vector<1x8xf32>
    %42 = arith.addf %39, %41 : vector<1x8xf32>
    %43 = math.rsqrt %42 : vector<1x8xf32>
    %44 = arith.mulf %40, %43 : vector<1x8xf32>
    %45 = tpu.concatenate %44, %44, %44, %44, %44, %44, %44, %44, %44, %44, %44, %44, %44, %44, %44, %44 in 1 : vector<1x8xf32>, vector<1x8xf32>, vector<1x8xf32>, vector<1x8xf32>, vector<1x8xf32>, vector<1x8xf32>, vector<1x8xf32>, vector<1x8xf32>, vector<1x8xf32>, vector<1x8xf32>, vector<1x8xf32>, vector<1x8xf32>, vector<1x8xf32>, vector<1x8xf32>, vector<1x8xf32>, vector<1x8xf32> -> vector<1x128xf32>
    %c0_17 = arith.constant 0 : index
    %c0_18 = arith.constant 0 : index
    %46 = vector.load %arg7[%c0_17, %c0_18] : memref<1x8xf32, #tpu.memory_space<vmem>>, vector<1x8xf32>
    %47 = tpu.concatenate %46, %46, %46, %46, %46, %46, %46, %46, %46, %46, %46, %46, %46, %46, %46, %46 in 1 : vector<1x8xf32>, vector<1x8xf32>, vector<1x8xf32>, vector<1x8xf32>, vector<1x8xf32>, vector<1x8xf32>, vector<1x8xf32>, vector<1x8xf32>, vector<1x8xf32>, vector<1x8xf32>, vector<1x8xf32>, vector<1x8xf32>, vector<1x8xf32>, vector<1x8xf32>, vector<1x8xf32>, vector<1x8xf32> -> vector<1x128xf32>
    %48 = vector.broadcast %45 : vector<1x128xf32> to vector<104x128xf32>
    %49 = arith.mulf %33, %48 : vector<104x128xf32>
    %50 = vector.broadcast %47 : vector<1x128xf32> to vector<104x128xf32>
    %51 = arith.addf %49, %50 : vector<104x128xf32>
    %cst_19 = arith.constant 0.000000e+00 : f32
    %52 = vector.broadcast %cst_19 : f32 to vector<104x128xf32>
    %53 = arith.maximumf %51, %52 : vector<104x128xf32>
    %54 = vector.shape_cast %53 : vector<104x128xf32> to vector<13x8x128xf32>
    %cst_20 = arith.constant 0.000000e+00 : f32
    %55 = vector.broadcast %cst_20 : f32 to vector<1x8x128xf32>
    %56 = tpu.concatenate %54, %55 in 0 : vector<13x8x128xf32>, vector<1x8x128xf32> -> vector<14x8x128xf32>
    %57 = vector.extract_strided_slice %56 {offsets = [0, 0, 0], sizes = [12, 8, 128], strides = [1, 1, 1]} : vector<14x8x128xf32> to vector<12x8x128xf32>
    %58 = vector.shape_cast %57 : vector<12x8x128xf32> to vector<6x2x8x128xf32>
    %59 = vector.extract_strided_slice %58 {offsets = [0, 0, 0, 0], sizes = [6, 1, 8, 128], strides = [1, 1, 1, 1]} : vector<6x2x8x128xf32> to vector<6x1x8x128xf32>
    %60 = vector.shape_cast %59 : vector<6x1x8x128xf32> to vector<6x8x128xf32>
    %61 = vector.shape_cast %60 : vector<6x8x128xf32> to vector<48x128xf32>
    %62 = arith.truncf %61 : vector<48x128xf32> to vector<48x128xbf16>
    %63 = vector.extract_strided_slice %56 {offsets = [1, 0, 0], sizes = [12, 8, 128], strides = [1, 1, 1]} : vector<14x8x128xf32> to vector<12x8x128xf32>
    %64 = vector.shape_cast %63 : vector<12x8x128xf32> to vector<6x2x8x128xf32>
    %65 = vector.extract_strided_slice %64 {offsets = [0, 0, 0, 0], sizes = [6, 1, 8, 128], strides = [1, 1, 1, 1]} : vector<6x2x8x128xf32> to vector<6x1x8x128xf32>
    %66 = vector.shape_cast %65 : vector<6x1x8x128xf32> to vector<6x8x128xf32>
    %67 = vector.shape_cast %66 : vector<6x8x128xf32> to vector<48x128xf32>
    %68 = arith.truncf %67 : vector<48x128xf32> to vector<48x128xbf16>
    %69 = vector.extract_strided_slice %56 {offsets = [2, 0, 0], sizes = [12, 8, 128], strides = [1, 1, 1]} : vector<14x8x128xf32> to vector<12x8x128xf32>
    %70 = vector.shape_cast %69 : vector<12x8x128xf32> to vector<6x2x8x128xf32>
    %71 = vector.extract_strided_slice %70 {offsets = [0, 0, 0, 0], sizes = [6, 1, 8, 128], strides = [1, 1, 1, 1]} : vector<6x2x8x128xf32> to vector<6x1x8x128xf32>
    %72 = vector.shape_cast %71 : vector<6x1x8x128xf32> to vector<6x8x128xf32>
    %73 = vector.shape_cast %72 : vector<6x8x128xf32> to vector<48x128xf32>
    %74 = arith.truncf %73 : vector<48x128xf32> to vector<48x128xbf16>
    %75 = tpu.concatenate %62, %68, %74 in 1 : vector<48x128xbf16>, vector<48x128xbf16>, vector<48x128xbf16> -> vector<48x384xbf16>
    %c0_21 = arith.constant 0 : index
    %c0_22 = arith.constant 0 : index
    %76 = vector.load %arg8[%c0_21, %c0_22] : memref<384x128xbf16, #tpu.memory_space<vmem>>, vector<384x128xbf16>
    %cst_23 = arith.constant dense<0.000000e+00> : vector<48x128xf32>
    %77 = tpu.matmul %75, %76, %cst_23 {dimension_numbers = #tpu.dot_dimension_numbers<[1], [0], [0], [1], [0, 0, 1, 1], [], []>} : vector<48x384xbf16>, vector<384x128xbf16>, vector<48x128xf32> -> vector<48x128xf32>
    %c0_24 = arith.constant 0 : index
    %c0_25 = arith.constant 0 : index
    %78 = vector.load %arg9[%c0_24, %c0_25] : memref<1x128xf32, #tpu.memory_space<vmem>>, vector<1x128xf32>
    %79 = vector.broadcast %78 : vector<1x128xf32> to vector<48x128xf32>
    %80 = arith.addf %77, %79 : vector<48x128xf32>
    %c0_26 = arith.constant 0 : index
    %c0_27 = arith.constant 0 : index
    %81 = vector.load %arg10[%c0_26, %c0_27] : memref<128x16xf32, #tpu.memory_space<vmem>>, vector<128x16xf32>
    %cst_28 = arith.constant dense<0.000000e+00> : vector<128xf32>
    %82 = vector.multi_reduction <add>, %80, %cst_28 [0] : vector<48x128xf32> to vector<128xf32>
    %83 = vector.shape_cast %82 : vector<128xf32> to vector<1x128xf32>
    %cst_29 = arith.constant dense<0.000000e+00> : vector<1x16xf32>
    %84 = tpu.matmul %83, %81, %cst_29 {dimension_numbers = #tpu.dot_dimension_numbers<[1], [0], [0], [1], [0, 0, 1, 1], [], []>} : vector<1x128xf32>, vector<128x16xf32>, vector<1x16xf32> -> vector<1x16xf32>
    %cst_30 = arith.constant 0.00347222225 : f32
    %85 = vector.broadcast %cst_30 : f32 to vector<1x16xf32>
    %86 = arith.mulf %84, %85 : vector<1x16xf32>
    %87 = tpu.concatenate %86, %86, %86, %86, %86, %86, %86, %86 in 1 : vector<1x16xf32>, vector<1x16xf32>, vector<1x16xf32>, vector<1x16xf32>, vector<1x16xf32>, vector<1x16xf32>, vector<1x16xf32>, vector<1x16xf32> -> vector<1x128xf32>
    %88 = vector.broadcast %87 : vector<1x128xf32> to vector<48x128xf32>
    %89 = arith.subf %80, %88 : vector<48x128xf32>
    %90 = arith.mulf %89, %89 : vector<48x128xf32>
    %cst_31 = arith.constant dense<0.000000e+00> : vector<128xf32>
    %91 = vector.multi_reduction <add>, %90, %cst_31 [0] : vector<48x128xf32> to vector<128xf32>
    %92 = vector.shape_cast %91 : vector<128xf32> to vector<1x128xf32>
    %cst_32 = arith.constant dense<0.000000e+00> : vector<1x16xf32>
    %93 = tpu.matmul %92, %81, %cst_32 {dimension_numbers = #tpu.dot_dimension_numbers<[1], [0], [0], [1], [0, 0, 1, 1], [], []>} : vector<1x128xf32>, vector<128x16xf32>, vector<1x16xf32> -> vector<1x16xf32>
    %cst_33 = arith.constant 0.00347222225 : f32
    %94 = vector.broadcast %cst_33 : f32 to vector<1x16xf32>
    %95 = arith.mulf %93, %94 : vector<1x16xf32>
    %c0_34 = arith.constant 0 : index
    %c0_35 = arith.constant 0 : index
    %96 = vector.load %arg11[%c0_34, %c0_35] : memref<1x16xf32, #tpu.memory_space<vmem>>, vector<1x16xf32>
    %cst_36 = arith.constant 9.99999974E-6 : f32
    %97 = vector.broadcast %cst_36 : f32 to vector<1x16xf32>
    %98 = arith.addf %95, %97 : vector<1x16xf32>
    %99 = math.rsqrt %98 : vector<1x16xf32>
    %100 = arith.mulf %96, %99 : vector<1x16xf32>
    %101 = tpu.concatenate %100, %100, %100, %100, %100, %100, %100, %100 in 1 : vector<1x16xf32>, vector<1x16xf32>, vector<1x16xf32>, vector<1x16xf32>, vector<1x16xf32>, vector<1x16xf32>, vector<1x16xf32>, vector<1x16xf32> -> vector<1x128xf32>
    %c0_37 = arith.constant 0 : index
    %c0_38 = arith.constant 0 : index
    %102 = vector.load %arg12[%c0_37, %c0_38] : memref<1x16xf32, #tpu.memory_space<vmem>>, vector<1x16xf32>
    %103 = tpu.concatenate %102, %102, %102, %102, %102, %102, %102, %102 in 1 : vector<1x16xf32>, vector<1x16xf32>, vector<1x16xf32>, vector<1x16xf32>, vector<1x16xf32>, vector<1x16xf32>, vector<1x16xf32>, vector<1x16xf32> -> vector<1x128xf32>
    %104 = vector.broadcast %101 : vector<1x128xf32> to vector<48x128xf32>
    %105 = arith.mulf %89, %104 : vector<48x128xf32>
    %106 = vector.broadcast %103 : vector<1x128xf32> to vector<48x128xf32>
    %107 = arith.addf %105, %106 : vector<48x128xf32>
    %cst_39 = arith.constant 0.000000e+00 : f32
    %108 = vector.broadcast %cst_39 : f32 to vector<48x128xf32>
    %109 = arith.maximumf %107, %108 : vector<48x128xf32>
    %110 = vector.shape_cast %109 : vector<48x128xf32> to vector<6x8x128xf32>
    %111 = vector.extract_strided_slice %110 {offsets = [0, 0, 0], sizes = [4, 8, 128], strides = [1, 1, 1]} : vector<6x8x128xf32> to vector<4x8x128xf32>
    %112 = vector.shape_cast %111 : vector<4x8x128xf32> to vector<2x2x8x128xf32>
    %113 = vector.extract_strided_slice %112 {offsets = [0, 0, 0, 0], sizes = [2, 1, 8, 128], strides = [1, 1, 1, 1]} : vector<2x2x8x128xf32> to vector<2x1x8x128xf32>
    %114 = vector.shape_cast %113 : vector<2x1x8x128xf32> to vector<2x8x128xf32>
    %115 = vector.shape_cast %114 : vector<2x8x128xf32> to vector<16x128xf32>
    %116 = arith.truncf %115 : vector<16x128xf32> to vector<16x128xbf16>
    %117 = vector.extract_strided_slice %110 {offsets = [1, 0, 0], sizes = [4, 8, 128], strides = [1, 1, 1]} : vector<6x8x128xf32> to vector<4x8x128xf32>
    %118 = vector.shape_cast %117 : vector<4x8x128xf32> to vector<2x2x8x128xf32>
    %119 = vector.extract_strided_slice %118 {offsets = [0, 0, 0, 0], sizes = [2, 1, 8, 128], strides = [1, 1, 1, 1]} : vector<2x2x8x128xf32> to vector<2x1x8x128xf32>
    %120 = vector.shape_cast %119 : vector<2x1x8x128xf32> to vector<2x8x128xf32>
    %121 = vector.shape_cast %120 : vector<2x8x128xf32> to vector<16x128xf32>
    %122 = arith.truncf %121 : vector<16x128xf32> to vector<16x128xbf16>
    %123 = vector.extract_strided_slice %110 {offsets = [2, 0, 0], sizes = [4, 8, 128], strides = [1, 1, 1]} : vector<6x8x128xf32> to vector<4x8x128xf32>
    %124 = vector.shape_cast %123 : vector<4x8x128xf32> to vector<2x2x8x128xf32>
    %125 = vector.extract_strided_slice %124 {offsets = [0, 0, 0, 0], sizes = [2, 1, 8, 128], strides = [1, 1, 1, 1]} : vector<2x2x8x128xf32> to vector<2x1x8x128xf32>
    %126 = vector.shape_cast %125 : vector<2x1x8x128xf32> to vector<2x8x128xf32>
    %127 = vector.shape_cast %126 : vector<2x8x128xf32> to vector<16x128xf32>
    %128 = arith.truncf %127 : vector<16x128xf32> to vector<16x128xbf16>
    %129 = tpu.concatenate %116, %122, %128 in 1 : vector<16x128xbf16>, vector<16x128xbf16>, vector<16x128xbf16> -> vector<16x384xbf16>
    %c0_40 = arith.constant 0 : index
    %c0_41 = arith.constant 0 : index
    %130 = vector.load %arg13[%c0_40, %c0_41] : memref<384x128xbf16, #tpu.memory_space<vmem>>, vector<384x128xbf16>
    %cst_42 = arith.constant dense<0.000000e+00> : vector<16x128xf32>
    %131 = tpu.matmul %129, %130, %cst_42 {dimension_numbers = #tpu.dot_dimension_numbers<[1], [0], [0], [1], [0, 0, 1, 1], [], []>} : vector<16x384xbf16>, vector<384x128xbf16>, vector<16x128xf32> -> vector<16x128xf32>
    %c0_43 = arith.constant 0 : index
    %c0_44 = arith.constant 0 : index
    %132 = vector.load %arg14[%c0_43, %c0_44] : memref<1x128xf32, #tpu.memory_space<vmem>>, vector<1x128xf32>
    %133 = vector.broadcast %132 : vector<1x128xf32> to vector<16x128xf32>
    %134 = arith.addf %131, %133 : vector<16x128xf32>
    %c0_45 = arith.constant 0 : index
    %c0_46 = arith.constant 0 : index
    %135 = vector.load %arg15[%c0_45, %c0_46] : memref<128x32xf32, #tpu.memory_space<vmem>>, vector<128x32xf32>
    %cst_47 = arith.constant dense<0.000000e+00> : vector<128xf32>
    %136 = vector.multi_reduction <add>, %134, %cst_47 [0] : vector<16x128xf32> to vector<128xf32>
    %137 = vector.shape_cast %136 : vector<128xf32> to vector<1x128xf32>
    %cst_48 = arith.constant dense<0.000000e+00> : vector<1x32xf32>
    %138 = tpu.matmul %137, %135, %cst_48 {dimension_numbers = #tpu.dot_dimension_numbers<[1], [0], [0], [1], [0, 0, 1, 1], [], []>} : vector<1x128xf32>, vector<128x32xf32>, vector<1x32xf32> -> vector<1x32xf32>
    %cst_49 = arith.constant 3.125000e-02 : f32
    %139 = vector.broadcast %cst_49 : f32 to vector<1x32xf32>
    %140 = arith.mulf %138, %139 : vector<1x32xf32>
    %141 = tpu.concatenate %140, %140, %140, %140 in 1 : vector<1x32xf32>, vector<1x32xf32>, vector<1x32xf32>, vector<1x32xf32> -> vector<1x128xf32>
    %142 = vector.broadcast %141 : vector<1x128xf32> to vector<16x128xf32>
    %143 = arith.subf %134, %142 : vector<16x128xf32>
    %144 = arith.mulf %143, %143 : vector<16x128xf32>
    %cst_50 = arith.constant dense<0.000000e+00> : vector<128xf32>
    %145 = vector.multi_reduction <add>, %144, %cst_50 [0] : vector<16x128xf32> to vector<128xf32>
    %146 = vector.shape_cast %145 : vector<128xf32> to vector<1x128xf32>
    %cst_51 = arith.constant dense<0.000000e+00> : vector<1x32xf32>
    %147 = tpu.matmul %146, %135, %cst_51 {dimension_numbers = #tpu.dot_dimension_numbers<[1], [0], [0], [1], [0, 0, 1, 1], [], []>} : vector<1x128xf32>, vector<128x32xf32>, vector<1x32xf32> -> vector<1x32xf32>
    %cst_52 = arith.constant 3.125000e-02 : f32
    %148 = vector.broadcast %cst_52 : f32 to vector<1x32xf32>
    %149 = arith.mulf %147, %148 : vector<1x32xf32>
    %c0_53 = arith.constant 0 : index
    %c0_54 = arith.constant 0 : index
    %150 = vector.load %arg16[%c0_53, %c0_54] : memref<1x32xf32, #tpu.memory_space<vmem>>, vector<1x32xf32>
    %cst_55 = arith.constant 9.99999974E-6 : f32
    %151 = vector.broadcast %cst_55 : f32 to vector<1x32xf32>
    %152 = arith.addf %149, %151 : vector<1x32xf32>
    %153 = math.rsqrt %152 : vector<1x32xf32>
    %154 = arith.mulf %150, %153 : vector<1x32xf32>
    %155 = tpu.concatenate %154, %154, %154, %154 in 1 : vector<1x32xf32>, vector<1x32xf32>, vector<1x32xf32>, vector<1x32xf32> -> vector<1x128xf32>
    %c0_56 = arith.constant 0 : index
    %c0_57 = arith.constant 0 : index
    %156 = vector.load %arg17[%c0_56, %c0_57] : memref<1x32xf32, #tpu.memory_space<vmem>>, vector<1x32xf32>
    %157 = tpu.concatenate %156, %156, %156, %156 in 1 : vector<1x32xf32>, vector<1x32xf32>, vector<1x32xf32>, vector<1x32xf32> -> vector<1x128xf32>
    %158 = vector.broadcast %155 : vector<1x128xf32> to vector<16x128xf32>
    %159 = arith.mulf %143, %158 : vector<16x128xf32>
    %160 = vector.broadcast %157 : vector<1x128xf32> to vector<16x128xf32>
    %161 = arith.addf %159, %160 : vector<16x128xf32>
    %cst_58 = arith.constant 0.000000e+00 : f32
    %162 = vector.broadcast %cst_58 : f32 to vector<16x128xf32>
    %163 = arith.maximumf %161, %162 : vector<16x128xf32>
    %164 = vector.shape_cast %163 : vector<16x128xf32> to vector<2x8x128xf32>
    %165 = vector.extract_strided_slice %164 {offsets = [0, 0, 0], sizes = [1, 8, 128], strides = [1, 1, 1]} : vector<2x8x128xf32> to vector<1x8x128xf32>
    %166 = vector.shape_cast %165 : vector<1x8x128xf32> to vector<8x128xf32>
    %167 = vector.extract_strided_slice %164 {offsets = [1, 0, 0], sizes = [1, 8, 128], strides = [1, 1, 1]} : vector<2x8x128xf32> to vector<1x8x128xf32>
    %168 = vector.shape_cast %167 : vector<1x8x128xf32> to vector<8x128xf32>
    %169 = tpu.concatenate %166, %168 in 1 : vector<8x128xf32>, vector<8x128xf32> -> vector<8x256xf32>
    %170 = arith.truncf %169 : vector<8x256xf32> to vector<8x256xbf16>
    %c0_59 = arith.constant 0 : index
    %c0_60 = arith.constant 0 : index
    %171 = vector.load %arg18[%c0_59, %c0_60] : memref<256x128xbf16, #tpu.memory_space<vmem>>, vector<256x128xbf16>
    %cst_61 = arith.constant dense<0.000000e+00> : vector<8x128xf32>
    %172 = tpu.matmul %170, %171, %cst_61 {dimension_numbers = #tpu.dot_dimension_numbers<[1], [0], [0], [1], [0, 0, 1, 1], [], []>} : vector<8x256xbf16>, vector<256x128xbf16>, vector<8x128xf32> -> vector<8x128xf32>
    %c0_62 = arith.constant 0 : index
    %c0_63 = arith.constant 0 : index
    %173 = vector.load %arg20[%c0_62, %c0_63] : memref<1x128xf32, #tpu.memory_space<vmem>>, vector<1x128xf32>
    %174 = vector.broadcast %173 : vector<1x128xf32> to vector<8x128xf32>
    %175 = arith.addf %172, %174 : vector<8x128xf32>
    %c0_64 = arith.constant 0 : index
    %c0_65 = arith.constant 0 : index
    %176 = vector.load %arg19[%c0_64, %c0_65] : memref<256x128xbf16, #tpu.memory_space<vmem>>, vector<256x128xbf16>
    %cst_66 = arith.constant dense<0.000000e+00> : vector<8x128xf32>
    %177 = tpu.matmul %170, %176, %cst_66 {dimension_numbers = #tpu.dot_dimension_numbers<[1], [0], [0], [1], [0, 0, 1, 1], [], []>} : vector<8x256xbf16>, vector<256x128xbf16>, vector<8x128xf32> -> vector<8x128xf32>
    %c0_67 = arith.constant 0 : index
    %c0_68 = arith.constant 0 : index
    %178 = vector.load %arg21[%c0_67, %c0_68] : memref<1x128xf32, #tpu.memory_space<vmem>>, vector<1x128xf32>
    %179 = vector.broadcast %178 : vector<1x128xf32> to vector<8x128xf32>
    %180 = arith.addf %177, %179 : vector<8x128xf32>
    %c0_69 = arith.constant 0 : index
    %c0_70 = arith.constant 0 : index
    %181 = vector.load %arg39[%c0_69, %c0_70] : memref<8x128xf32, #tpu.memory_space<vmem>>, vector<8x128xf32>
    tpu.vector_store %arg39[%c0_69, %c0_70], %175 {strides = array<i32>} : memref<8x128xf32, #tpu.memory_space<vmem>>, vector<8x128xf32>,
    %c0_71 = arith.constant 0 : index
    %c0_72 = arith.constant 0 : index
    %182 = vector.load %arg40[%c0_71, %c0_72] : memref<8x128xf32, #tpu.memory_space<vmem>>, vector<8x128xf32>
    tpu.vector_store %arg40[%c0_71, %c0_72], %180 {strides = array<i32>} : memref<8x128xf32, #tpu.memory_space<vmem>>, vector<8x128xf32>,
    %c0_73 = arith.constant 0 : index
    %c0_74 = arith.constant 0 : index
    %183 = vector.load %arg2[%c0_73, %c0_74] : memref<1x128xf32, #tpu.memory_space<vmem>>, vector<1x128xf32>
    %cst_75 = arith.constant 5.000000e-01 : f32
    %184 = vector.broadcast %cst_75 : f32 to vector<8x128xf32>
    %185 = arith.mulf %184, %180 : vector<8x128xf32>
    %186 = math.exp %185 : vector<8x128xf32>
    %187 = vector.broadcast %183 : vector<1x128xf32> to vector<8x128xf32>
    %188 = arith.mulf %187, %186 : vector<8x128xf32>
    %189 = arith.addf %175, %188 : vector<8x128xf32>
    %190 = arith.truncf %189 : vector<8x128xf32> to vector<8x128xbf16>
    %c0_76 = arith.constant 0 : index
    %c0_77 = arith.constant 0 : index
    %191 = vector.load %arg22[%c0_76, %c0_77] : memref<128x128xbf16, #tpu.memory_space<vmem>>, vector<128x128xbf16>
    %cst_78 = arith.constant dense<0.000000e+00> : vector<8x128xf32>
    %192 = tpu.matmul %190, %191, %cst_78 {dimension_numbers = #tpu.dot_dimension_numbers<[1], [0], [0], [1], [0, 0, 1, 1], [], []>} : vector<8x128xbf16>, vector<128x128xbf16>, vector<8x128xf32> -> vector<8x128xf32>
    %c0_79 = arith.constant 0 : index
    %c0_80 = arith.constant 0 : index
    %193 = vector.load %arg23[%c0_79, %c0_80] : memref<1x128xf32, #tpu.memory_space<vmem>>, vector<1x128xf32>
    %194 = vector.broadcast %193 : vector<1x128xf32> to vector<8x128xf32>
    %195 = arith.addf %192, %194 : vector<8x128xf32>
    %cst_81 = arith.constant 0.000000e+00 : f32
    %196 = vector.broadcast %cst_81 : f32 to vector<8x128xf32>
    %197 = arith.maximumf %195, %196 : vector<8x128xf32>
    %c0_82 = arith.constant 0 : index
    %c0_83 = arith.constant 0 : index
    %198 = vector.load %arg24[%c0_82, %c0_83] : memref<128x128xbf16, #tpu.memory_space<vmem>>, vector<128x128xbf16>
    %cst_84 = arith.constant dense<0.000000e+00> : vector<8x128xf32>
    %199 = tpu.matmul %190, %198, %cst_84 {dimension_numbers = #tpu.dot_dimension_numbers<[1], [0], [0], [1], [0, 0, 1, 1], [], []>} : vector<8x128xbf16>, vector<128x128xbf16>, vector<8x128xf32> -> vector<8x128xf32>
    %c0_85 = arith.constant 0 : index
    %c0_86 = arith.constant 0 : index
    %200 = vector.load %arg25[%c0_85, %c0_86] : memref<1x128xf32, #tpu.memory_space<vmem>>, vector<1x128xf32>
    %201 = vector.broadcast %200 : vector<1x128xf32> to vector<8x128xf32>
    %202 = arith.addf %199, %201 : vector<8x128xf32>
    %cst_87 = arith.constant 0.000000e+00 : f32
    %203 = vector.broadcast %cst_87 : f32 to vector<8x128xf32>
    %204 = arith.maximumf %202, %203 : vector<8x128xf32>
    %205 = tpu.concatenate %197, %204 in 0 : vector<8x128xf32>, vector<8x128xf32> -> vector<16x128xf32>
    %206 = arith.truncf %205 : vector<16x128xf32> to vector<16x128xbf16>
    %c0_88 = arith.constant 0 : index
    %c0_89 = arith.constant 0 : index
    %207 = vector.load %arg26[%c0_88, %c0_89] : memref<128x384xbf16, #tpu.memory_space<vmem>>, vector<128x384xbf16>
    %cst_90 = arith.constant dense<0.000000e+00> : vector<16x384xf32>
    %208 = tpu.matmul %206, %207, %cst_90 {dimension_numbers = #tpu.dot_dimension_numbers<[1], [0], [0], [1], [0, 0, 1, 1], [], []>} : vector<16x128xbf16>, vector<128x384xbf16>, vector<16x384xf32> -> vector<16x384xf32>
    %209 = vector.extract_strided_slice %208 {offsets = [0, 0], sizes = [16, 128], strides = [1, 1]} : vector<16x384xf32> to vector<16x128xf32>
    %210 = vector.extract_strided_slice %208 {offsets = [0, 128], sizes = [16, 128], strides = [1, 1]} : vector<16x384xf32> to vector<16x128xf32>
    %211 = vector.extract_strided_slice %208 {offsets = [0, 256], sizes = [16, 128], strides = [1, 1]} : vector<16x384xf32> to vector<16x128xf32>
    %212 = vector.shape_cast %209 : vector<16x128xf32> to vector<2x8x128xf32>
    %213 = vector.shape_cast %210 : vector<16x128xf32> to vector<2x8x128xf32>
    %214 = vector.shape_cast %211 : vector<16x128xf32> to vector<2x8x128xf32>
    %215 = vector.shape_cast %212 : vector<2x8x128xf32> to vector<2x1x8x128xf32>
    %216 = vector.shape_cast %213 : vector<2x8x128xf32> to vector<2x1x8x128xf32>
    %217 = vector.shape_cast %214 : vector<2x8x128xf32> to vector<2x1x8x128xf32>
    %218 = tpu.concatenate %215, %216, %217 in 1 : vector<2x1x8x128xf32>, vector<2x1x8x128xf32>, vector<2x1x8x128xf32> -> vector<2x3x8x128xf32>
    %219 = vector.shape_cast %218 : vector<2x3x8x128xf32> to vector<48x128xf32>
    %c0_91 = arith.constant 0 : index
    %c0_92 = arith.constant 0 : index
    %220 = vector.load %arg27[%c0_91, %c0_92] : memref<1x128xf32, #tpu.memory_space<vmem>>, vector<1x128xf32>
    %221 = vector.broadcast %220 : vector<1x128xf32> to vector<48x128xf32>
    %222 = arith.addf %219, %221 : vector<48x128xf32>
    %c0_93 = arith.constant 0 : index
    %c0_94 = arith.constant 0 : index
    %223 = vector.load %arg28[%c0_93, %c0_94] : memref<128x16xf32, #tpu.memory_space<vmem>>, vector<128x16xf32>
    %cst_95 = arith.constant dense<0.000000e+00> : vector<128xf32>
    %224 = vector.multi_reduction <add>, %222, %cst_95 [0] : vector<48x128xf32> to vector<128xf32>
    %225 = vector.shape_cast %224 : vector<128xf32> to vector<1x128xf32>
    %cst_96 = arith.constant dense<0.000000e+00> : vector<1x16xf32>
    %226 = tpu.matmul %225, %223, %cst_96 {dimension_numbers = #tpu.dot_dimension_numbers<[1], [0], [0], [1], [0, 0, 1, 1], [], []>} : vector<1x128xf32>, vector<128x16xf32>, vector<1x16xf32> -> vector<1x16xf32>
    %cst_97 = arith.constant 0.00347222225 : f32
    %227 = vector.broadcast %cst_97 : f32 to vector<1x16xf32>
    %228 = arith.mulf %226, %227 : vector<1x16xf32>
    %229 = tpu.concatenate %228, %228, %228, %228, %228, %228, %228, %228 in 1 : vector<1x16xf32>, vector<1x16xf32>, vector<1x16xf32>, vector<1x16xf32>, vector<1x16xf32>, vector<1x16xf32>, vector<1x16xf32>, vector<1x16xf32> -> vector<1x128xf32>
    %230 = vector.broadcast %229 : vector<1x128xf32> to vector<48x128xf32>
    %231 = arith.subf %222, %230 : vector<48x128xf32>
    %232 = arith.mulf %231, %231 : vector<48x128xf32>
    %cst_98 = arith.constant dense<0.000000e+00> : vector<128xf32>
    %233 = vector.multi_reduction <add>, %232, %cst_98 [0] : vector<48x128xf32> to vector<128xf32>
    %234 = vector.shape_cast %233 : vector<128xf32> to vector<1x128xf32>
    %cst_99 = arith.constant dense<0.000000e+00> : vector<1x16xf32>
    %235 = tpu.matmul %234, %223, %cst_99 {dimension_numbers = #tpu.dot_dimension_numbers<[1], [0], [0], [1], [0, 0, 1, 1], [], []>} : vector<1x128xf32>, vector<128x16xf32>, vector<1x16xf32> -> vector<1x16xf32>
    %cst_100 = arith.constant 0.00347222225 : f32
    %236 = vector.broadcast %cst_100 : f32 to vector<1x16xf32>
    %237 = arith.mulf %235, %236 : vector<1x16xf32>
    %c0_101 = arith.constant 0 : index
    %c0_102 = arith.constant 0 : index
    %238 = vector.load %arg29[%c0_101, %c0_102] : memref<1x16xf32, #tpu.memory_space<vmem>>, vector<1x16xf32>
    %cst_103 = arith.constant 9.99999974E-6 : f32
    %239 = vector.broadcast %cst_103 : f32 to vector<1x16xf32>
    %240 = arith.addf %237, %239 : vector<1x16xf32>
    %241 = math.rsqrt %240 : vector<1x16xf32>
    %242 = arith.mulf %238, %241 : vector<1x16xf32>
    %243 = tpu.concatenate %242, %242, %242, %242, %242, %242, %242, %242 in 1 : vector<1x16xf32>, vector<1x16xf32>, vector<1x16xf32>, vector<1x16xf32>, vector<1x16xf32>, vector<1x16xf32>, vector<1x16xf32>, vector<1x16xf32> -> vector<1x128xf32>
    %c0_104 = arith.constant 0 : index
    %c0_105 = arith.constant 0 : index
    %244 = vector.load %arg30[%c0_104, %c0_105] : memref<1x16xf32, #tpu.memory_space<vmem>>, vector<1x16xf32>
    %245 = tpu.concatenate %244, %244, %244, %244, %244, %244, %244, %244 in 1 : vector<1x16xf32>, vector<1x16xf32>, vector<1x16xf32>, vector<1x16xf32>, vector<1x16xf32>, vector<1x16xf32>, vector<1x16xf32>, vector<1x16xf32> -> vector<1x128xf32>
    %246 = vector.broadcast %243 : vector<1x128xf32> to vector<48x128xf32>
    %247 = arith.mulf %231, %246 : vector<48x128xf32>
    %248 = vector.broadcast %245 : vector<1x128xf32> to vector<48x128xf32>
    %249 = arith.addf %247, %248 : vector<48x128xf32>
    %cst_106 = arith.constant 0.000000e+00 : f32
    %250 = vector.broadcast %cst_106 : f32 to vector<48x128xf32>
    %251 = arith.maximumf %249, %250 : vector<48x128xf32>
    %252 = arith.truncf %251 : vector<48x128xf32> to vector<48x128xbf16>
    %c0_107 = arith.constant 0 : index
    %c0_108 = arith.constant 0 : index
    %253 = vector.load %arg31[%c0_107, %c0_108] : memref<128x384xbf16, #tpu.memory_space<vmem>>, vector<128x384xbf16>
    %cst_109 = arith.constant dense<0.000000e+00> : vector<48x384xf32>
    %254 = tpu.matmul %252, %253, %cst_109 {dimension_numbers = #tpu.dot_dimension_numbers<[1], [0], [0], [1], [0, 0, 1, 1], [], []>} : vector<48x128xbf16>, vector<128x384xbf16>, vector<48x384xf32> -> vector<48x384xf32>
    %255 = vector.extract_strided_slice %254 {offsets = [0, 0], sizes = [48, 128], strides = [1, 1]} : vector<48x384xf32> to vector<48x128xf32>
    %256 = vector.extract_strided_slice %254 {offsets = [0, 128], sizes = [48, 128], strides = [1, 1]} : vector<48x384xf32> to vector<48x128xf32>
    %257 = vector.extract_strided_slice %254 {offsets = [0, 256], sizes = [48, 128], strides = [1, 1]} : vector<48x384xf32> to vector<48x128xf32>
    %cst_110 = arith.constant 0.000000e+00 : f32
    %258 = vector.broadcast %cst_110 : f32 to vector<1x8x128xf32>
    %259 = vector.shape_cast %255 : vector<48x128xf32> to vector<6x8x128xf32>
    %260 = tpu.concatenate %259, %258 in 0 : vector<6x8x128xf32>, vector<1x8x128xf32> -> vector<7x8x128xf32>
    %261 = vector.shape_cast %257 : vector<48x128xf32> to vector<6x8x128xf32>
    %262 = tpu.concatenate %258, %261 in 0 : vector<1x8x128xf32>, vector<6x8x128xf32> -> vector<7x8x128xf32>
    %263 = arith.addf %260, %262 : vector<7x8x128xf32>
    %264 = vector.shape_cast %256 : vector<48x128xf32> to vector<6x8x128xf32>
    %265 = tpu.concatenate %264, %258 in 0 : vector<6x8x128xf32>, vector<1x8x128xf32> -> vector<7x8x128xf32>
    %266 = vector.shape_cast %263 : vector<7x8x128xf32> to vector<7x1x8x128xf32>
    %267 = vector.shape_cast %265 : vector<7x8x128xf32> to vector<7x1x8x128xf32>
    %268 = tpu.concatenate %266, %267 in 1 : vector<7x1x8x128xf32>, vector<7x1x8x128xf32> -> vector<7x2x8x128xf32>
    %269 = vector.shape_cast %268 : vector<7x2x8x128xf32> to vector<14x8x128xf32>
    %270 = vector.extract_strided_slice %269 {offsets = [0, 0, 0], sizes = [13, 8, 128], strides = [1, 1, 1]} : vector<14x8x128xf32> to vector<13x8x128xf32>
    %271 = vector.shape_cast %270 : vector<13x8x128xf32> to vector<104x128xf32>
    %c0_111 = arith.constant 0 : index
    %c0_112 = arith.constant 0 : index
    %272 = vector.load %arg32[%c0_111, %c0_112] : memref<1x128xf32, #tpu.memory_space<vmem>>, vector<1x128xf32>
    %273 = vector.broadcast %272 : vector<1x128xf32> to vector<104x128xf32>
    %274 = arith.addf %271, %273 : vector<104x128xf32>
    %c0_113 = arith.constant 0 : index
    %c0_114 = arith.constant 0 : index
    %275 = vector.load %arg33[%c0_113, %c0_114] : memref<128x8xf32, #tpu.memory_space<vmem>>, vector<128x8xf32>
    %cst_115 = arith.constant dense<0.000000e+00> : vector<128xf32>
    %276 = vector.multi_reduction <add>, %274, %cst_115 [0] : vector<104x128xf32> to vector<128xf32>
    %277 = vector.shape_cast %276 : vector<128xf32> to vector<1x128xf32>
    %cst_116 = arith.constant dense<0.000000e+00> : vector<1x8xf32>
    %278 = tpu.matmul %277, %275, %cst_116 {dimension_numbers = #tpu.dot_dimension_numbers<[1], [0], [0], [1], [0, 0, 1, 1], [], []>} : vector<1x128xf32>, vector<128x8xf32>, vector<1x8xf32> -> vector<1x8xf32>
    %cst_117 = arith.constant 7.396450e-04 : f32
    %279 = vector.broadcast %cst_117 : f32 to vector<1x8xf32>
    %280 = arith.mulf %278, %279 : vector<1x8xf32>
    %281 = tpu.concatenate %280, %280, %280, %280, %280, %280, %280, %280, %280, %280, %280, %280, %280, %280, %280, %280 in 1 : vector<1x8xf32>, vector<1x8xf32>, vector<1x8xf32>, vector<1x8xf32>, vector<1x8xf32>, vector<1x8xf32>, vector<1x8xf32>, vector<1x8xf32>, vector<1x8xf32>, vector<1x8xf32>, vector<1x8xf32>, vector<1x8xf32>, vector<1x8xf32>, vector<1x8xf32>, vector<1x8xf32>, vector<1x8xf32> -> vector<1x128xf32>
    %282 = vector.broadcast %281 : vector<1x128xf32> to vector<104x128xf32>
    %283 = arith.subf %274, %282 : vector<104x128xf32>
    %284 = arith.mulf %283, %283 : vector<104x128xf32>
    %cst_118 = arith.constant dense<0.000000e+00> : vector<128xf32>
    %285 = vector.multi_reduction <add>, %284, %cst_118 [0] : vector<104x128xf32> to vector<128xf32>
    %286 = vector.shape_cast %285 : vector<128xf32> to vector<1x128xf32>
    %cst_119 = arith.constant dense<0.000000e+00> : vector<1x8xf32>
    %287 = tpu.matmul %286, %275, %cst_119 {dimension_numbers = #tpu.dot_dimension_numbers<[1], [0], [0], [1], [0, 0, 1, 1], [], []>} : vector<1x128xf32>, vector<128x8xf32>, vector<1x8xf32> -> vector<1x8xf32>
    %cst_120 = arith.constant 7.396450e-04 : f32
    %288 = vector.broadcast %cst_120 : f32 to vector<1x8xf32>
    %289 = arith.mulf %287, %288 : vector<1x8xf32>
    %c0_121 = arith.constant 0 : index
    %c0_122 = arith.constant 0 : index
    %290 = vector.load %arg34[%c0_121, %c0_122] : memref<1x8xf32, #tpu.memory_space<vmem>>, vector<1x8xf32>
    %cst_123 = arith.constant 9.99999974E-6 : f32
    %291 = vector.broadcast %cst_123 : f32 to vector<1x8xf32>
    %292 = arith.addf %289, %291 : vector<1x8xf32>
    %293 = math.rsqrt %292 : vector<1x8xf32>
    %294 = arith.mulf %290, %293 : vector<1x8xf32>
    %295 = tpu.concatenate %294, %294, %294, %294, %294, %294, %294, %294, %294, %294, %294, %294, %294, %294, %294, %294 in 1 : vector<1x8xf32>, vector<1x8xf32>, vector<1x8xf32>, vector<1x8xf32>, vector<1x8xf32>, vector<1x8xf32>, vector<1x8xf32>, vector<1x8xf32>, vector<1x8xf32>, vector<1x8xf32>, vector<1x8xf32>, vector<1x8xf32>, vector<1x8xf32>, vector<1x8xf32>, vector<1x8xf32>, vector<1x8xf32> -> vector<1x128xf32>
    %c0_124 = arith.constant 0 : index
    %c0_125 = arith.constant 0 : index
    %296 = vector.load %arg35[%c0_124, %c0_125] : memref<1x8xf32, #tpu.memory_space<vmem>>, vector<1x8xf32>
    %297 = tpu.concatenate %296, %296, %296, %296, %296, %296, %296, %296, %296, %296, %296, %296, %296, %296, %296, %296 in 1 : vector<1x8xf32>, vector<1x8xf32>, vector<1x8xf32>, vector<1x8xf32>, vector<1x8xf32>, vector<1x8xf32>, vector<1x8xf32>, vector<1x8xf32>, vector<1x8xf32>, vector<1x8xf32>, vector<1x8xf32>, vector<1x8xf32>, vector<1x8xf32>, vector<1x8xf32>, vector<1x8xf32>, vector<1x8xf32> -> vector<1x128xf32>
    %298 = vector.broadcast %295 : vector<1x128xf32> to vector<104x128xf32>
    %299 = arith.mulf %283, %298 : vector<104x128xf32>
    %300 = vector.broadcast %297 : vector<1x128xf32> to vector<104x128xf32>
    %301 = arith.addf %299, %300 : vector<104x128xf32>
    %cst_126 = arith.constant 0.000000e+00 : f32
    %302 = vector.broadcast %cst_126 : f32 to vector<104x128xf32>
    %303 = arith.maximumf %301, %302 : vector<104x128xf32>
    %304 = arith.truncf %303 : vector<104x128xf32> to vector<104x128xbf16>
    %c0_127 = arith.constant 0 : index
    %c0_128 = arith.constant 0 : index
    %305 = vector.load %arg36[%c0_127, %c0_128] : memref<128x384xbf16, #tpu.memory_space<vmem>>, vector<128x384xbf16>
    %cst_129 = arith.constant dense<0.000000e+00> : vector<104x384xf32>
    %306 = tpu.matmul %304, %305, %cst_129 {dimension_numbers = #tpu.dot_dimension_numbers<[1], [0], [0], [1], [0, 0, 1, 1], [], []>} : vector<104x128xbf16>, vector<128x384xbf16>, vector<104x384xf32> -> vector<104x384xf32>
    %307 = vector.extract_strided_slice %306 {offsets = [0, 0], sizes = [104, 128], strides = [1, 1]} : vector<104x384xf32> to vector<104x128xf32>
    %308 = vector.extract_strided_slice %306 {offsets = [0, 128], sizes = [104, 128], strides = [1, 1]} : vector<104x384xf32> to vector<104x128xf32>
    %309 = vector.extract_strided_slice %306 {offsets = [0, 256], sizes = [104, 128], strides = [1, 1]} : vector<104x384xf32> to vector<104x128xf32>
    %310 = vector.shape_cast %307 : vector<104x128xf32> to vector<13x8x128xf32>
    %311 = tpu.concatenate %310, %258 in 0 : vector<13x8x128xf32>, vector<1x8x128xf32> -> vector<14x8x128xf32>
    %312 = vector.shape_cast %309 : vector<104x128xf32> to vector<13x8x128xf32>
    %313 = tpu.concatenate %258, %312 in 0 : vector<1x8x128xf32>, vector<13x8x128xf32> -> vector<14x8x128xf32>
    %314 = arith.addf %311, %313 : vector<14x8x128xf32>
    %315 = vector.shape_cast %308 : vector<104x128xf32> to vector<13x8x128xf32>
    %316 = tpu.concatenate %315, %258 in 0 : vector<13x8x128xf32>, vector<1x8x128xf32> -> vector<14x8x128xf32>
    %317 = vector.shape_cast %314 : vector<14x8x128xf32> to vector<14x1x8x128xf32>
    %318 = vector.shape_cast %316 : vector<14x8x128xf32> to vector<14x1x8x128xf32>
    %319 = tpu.concatenate %317, %318 in 1 : vector<14x1x8x128xf32>, vector<14x1x8x128xf32> -> vector<14x2x8x128xf32>
    %320 = vector.shape_cast %319 : vector<14x2x8x128xf32> to vector<28x8x128xf32>
    %321 = vector.shape_cast %320 : vector<28x8x128xf32> to vector<224x128xf32>
    %c0_130 = arith.constant 0 : index
    %c0_131 = arith.constant 0 : index
    %322 = vector.load %arg37[%c0_130, %c0_131] : memref<1x128xf32, #tpu.memory_space<vmem>>, vector<1x128xf32>
    %323 = vector.broadcast %322 : vector<1x128xf32> to vector<224x128xf32>
    %324 = arith.addf %321, %323 : vector<224x128xf32>
    %325 = arith.negf %324 : vector<224x128xf32>
    %326 = math.exp %325 : vector<224x128xf32>
    %cst_132 = arith.constant 1.000000e+00 : f32
    %327 = vector.broadcast %cst_132 : f32 to vector<224x128xf32>
    %328 = arith.addf %327, %326 : vector<224x128xf32>
    %329 = arith.divf %327, %328 : vector<224x128xf32>
    %330 = vector.shape_cast %329 : vector<224x128xf32> to vector<28x8x128xf32>
    %c0_133 = arith.constant 0 : index
    %c0_134 = arith.constant 0 : index
    %c0_135 = arith.constant 0 : index
    %331 = vector.load %arg38[%c0_133, %c0_134, %c0_135] : memref<28x8x128xf32, #tpu.memory_space<vmem>>, vector<28x8x128xf32>
    tpu.vector_store %arg38[%c0_133, %c0_134, %c0_135], %330 {strides = array<i32>} : memref<28x8x128xf32, #tpu.memory_space<vmem>>, vector<28x8x128xf32>,
    return
  }
  func.func @transform_0(%arg0: i32) -> (i32, i32, i32) {
    %c0_i32 = arith.constant 0 : i32
    %c0_i32_0 = arith.constant 0 : i32
    %c0_i32_1 = arith.constant 0 : i32
    %c0_i32_2 = arith.constant 0 : i32
    return %c0_i32, %c0_i32_0, %c0_i32_1 : i32, i32, i32
  }
  func.func @transform_1(%arg0: i32) -> (i32, i32) {
    %c0_i32 = arith.constant 0 : i32
    %c0_i32_0 = arith.constant 0 : i32
    %c0_i32_1 = arith.constant 0 : i32
    return %c0_i32, %c0_i32_0 : i32, i32
  }
  func.func @transform_2(%arg0: i32) -> (i32, i32) {
    %c0_i32 = arith.constant 0 : i32
    %c0_i32_0 = arith.constant 0 : i32
    %c0_i32_1 = arith.constant 0 : i32
    return %c0_i32, %c0_i32_0 : i32, i32
  }
  func.func @transform_3(%arg0: i32) -> (i32, i32) {
    %c0_i32 = arith.constant 0 : i32
    %c0_i32_0 = arith.constant 0 : i32
    %c0_i32_1 = arith.constant 0 : i32
    return %c0_i32, %c0_i32_0 : i32, i32
  }
  func.func @transform_4(%arg0: i32) -> (i32, i32) {
    %c0_i32 = arith.constant 0 : i32
    %c0_i32_0 = arith.constant 0 : i32
    %c0_i32_1 = arith.constant 0 : i32
    return %c0_i32, %c0_i32_0 : i32, i32
  }
  func.func @transform_5(%arg0: i32) -> (i32, i32) {
    %c0_i32 = arith.constant 0 : i32
    %c0_i32_0 = arith.constant 0 : i32
    %c0_i32_1 = arith.constant 0 : i32
    return %c0_i32, %c0_i32_0 : i32, i32
  }
  func.func @transform_6(%arg0: i32) -> (i32, i32) {
    %c0_i32 = arith.constant 0 : i32
    %c0_i32_0 = arith.constant 0 : i32
    %c0_i32_1 = arith.constant 0 : i32
    return %c0_i32, %c0_i32_0 : i32, i32
  }
  func.func @transform_7(%arg0: i32) -> (i32, i32) {
    %c0_i32 = arith.constant 0 : i32
    %c0_i32_0 = arith.constant 0 : i32
    %c0_i32_1 = arith.constant 0 : i32
    return %c0_i32, %c0_i32_0 : i32, i32
  }
  func.func @transform_8(%arg0: i32) -> (i32, i32) {
    %c0_i32 = arith.constant 0 : i32
    %c0_i32_0 = arith.constant 0 : i32
    %c0_i32_1 = arith.constant 0 : i32
    return %c0_i32, %c0_i32_0 : i32, i32
  }
  func.func @transform_9(%arg0: i32) -> (i32, i32) {
    %c0_i32 = arith.constant 0 : i32
    %c0_i32_0 = arith.constant 0 : i32
    %c0_i32_1 = arith.constant 0 : i32
    return %c0_i32, %c0_i32_0 : i32, i32
  }
  func.func @transform_10(%arg0: i32) -> (i32, i32) {
    %c0_i32 = arith.constant 0 : i32
    %c0_i32_0 = arith.constant 0 : i32
    %c0_i32_1 = arith.constant 0 : i32
    return %c0_i32, %c0_i32_0 : i32, i32
  }
  func.func @transform_11(%arg0: i32) -> (i32, i32) {
    %c0_i32 = arith.constant 0 : i32
    %c0_i32_0 = arith.constant 0 : i32
    %c0_i32_1 = arith.constant 0 : i32
    return %c0_i32, %c0_i32_0 : i32, i32
  }
  func.func @transform_12(%arg0: i32) -> (i32, i32) {
    %c0_i32 = arith.constant 0 : i32
    %c0_i32_0 = arith.constant 0 : i32
    %c0_i32_1 = arith.constant 0 : i32
    return %c0_i32, %c0_i32_0 : i32, i32
  }
  func.func @transform_13(%arg0: i32) -> (i32, i32) {
    %c0_i32 = arith.constant 0 : i32
    %c0_i32_0 = arith.constant 0 : i32
    %c0_i32_1 = arith.constant 0 : i32
    return %c0_i32, %c0_i32_0 : i32, i32
  }
  func.func @transform_14(%arg0: i32) -> (i32, i32) {
    %c0_i32 = arith.constant 0 : i32
    %c0_i32_0 = arith.constant 0 : i32
    %c0_i32_1 = arith.constant 0 : i32
    return %c0_i32, %c0_i32_0 : i32, i32
  }
  func.func @transform_15(%arg0: i32) -> (i32, i32) {
    %c0_i32 = arith.constant 0 : i32
    %c0_i32_0 = arith.constant 0 : i32
    %c0_i32_1 = arith.constant 0 : i32
    return %c0_i32, %c0_i32_0 : i32, i32
  }
  func.func @transform_16(%arg0: i32) -> (i32, i32) {
    %c0_i32 = arith.constant 0 : i32
    %c0_i32_0 = arith.constant 0 : i32
    %c0_i32_1 = arith.constant 0 : i32
    return %c0_i32, %c0_i32_0 : i32, i32
  }
  func.func @transform_17(%arg0: i32) -> (i32, i32) {
    %c0_i32 = arith.constant 0 : i32
    %c0_i32_0 = arith.constant 0 : i32
    %c0_i32_1 = arith.constant 0 : i32
    return %c0_i32, %c0_i32_0 : i32, i32
  }
  func.func @transform_18(%arg0: i32) -> (i32, i32) {
    %c0_i32 = arith.constant 0 : i32
    %c0_i32_0 = arith.constant 0 : i32
    %c0_i32_1 = arith.constant 0 : i32
    return %c0_i32, %c0_i32_0 : i32, i32
  }
  func.func @transform_19(%arg0: i32) -> (i32, i32) {
    %c0_i32 = arith.constant 0 : i32
    %c0_i32_0 = arith.constant 0 : i32
    %c0_i32_1 = arith.constant 0 : i32
    return %c0_i32, %c0_i32_0 : i32, i32
  }
  func.func @transform_20(%arg0: i32) -> (i32, i32) {
    %c0_i32 = arith.constant 0 : i32
    %c0_i32_0 = arith.constant 0 : i32
    %c0_i32_1 = arith.constant 0 : i32
    return %c0_i32, %c0_i32_0 : i32, i32
  }
  func.func @transform_21(%arg0: i32) -> (i32, i32) {
    %c0_i32 = arith.constant 0 : i32
    %c0_i32_0 = arith.constant 0 : i32
    %c0_i32_1 = arith.constant 0 : i32
    return %c0_i32, %c0_i32_0 : i32, i32
  }
  func.func @transform_22(%arg0: i32) -> (i32, i32) {
    %c0_i32 = arith.constant 0 : i32
    %c0_i32_0 = arith.constant 0 : i32
    %c0_i32_1 = arith.constant 0 : i32
    return %c0_i32, %c0_i32_0 : i32, i32
  }
  func.func @transform_23(%arg0: i32) -> (i32, i32) {
    %c0_i32 = arith.constant 0 : i32
    %c0_i32_0 = arith.constant 0 : i32
    %c0_i32_1 = arith.constant 0 : i32
    return %c0_i32, %c0_i32_0 : i32, i32
  }
  func.func @transform_24(%arg0: i32) -> (i32, i32) {
    %c0_i32 = arith.constant 0 : i32
    %c0_i32_0 = arith.constant 0 : i32
    %c0_i32_1 = arith.constant 0 : i32
    return %c0_i32, %c0_i32_0 : i32, i32
  }
  func.func @transform_25(%arg0: i32) -> (i32, i32) {
    %c0_i32 = arith.constant 0 : i32
    %c0_i32_0 = arith.constant 0 : i32
    %c0_i32_1 = arith.constant 0 : i32
    return %c0_i32, %c0_i32_0 : i32, i32
  }
  func.func @transform_26(%arg0: i32) -> (i32, i32) {
    %c0_i32 = arith.constant 0 : i32
    %c0_i32_0 = arith.constant 0 : i32
    %c0_i32_1 = arith.constant 0 : i32
    return %c0_i32, %c0_i32_0 : i32, i32
  }
  func.func @transform_27(%arg0: i32) -> (i32, i32) {
    %c0_i32 = arith.constant 0 : i32
    %c0_i32_0 = arith.constant 0 : i32
    %c0_i32_1 = arith.constant 0 : i32
    return %c0_i32, %c0_i32_0 : i32, i32
  }
  func.func @transform_28(%arg0: i32) -> (i32, i32) {
    %c0_i32 = arith.constant 0 : i32
    %c0_i32_0 = arith.constant 0 : i32
    %c0_i32_1 = arith.constant 0 : i32
    return %c0_i32, %c0_i32_0 : i32, i32
  }
  func.func @transform_29(%arg0: i32) -> (i32, i32) {
    %c0_i32 = arith.constant 0 : i32
    %c0_i32_0 = arith.constant 0 : i32
    %c0_i32_1 = arith.constant 0 : i32
    return %c0_i32, %c0_i32_0 : i32, i32
  }
  func.func @transform_30(%arg0: i32) -> (i32, i32) {
    %c0_i32 = arith.constant 0 : i32
    %c0_i32_0 = arith.constant 0 : i32
    %c0_i32_1 = arith.constant 0 : i32
    return %c0_i32, %c0_i32_0 : i32, i32
  }
  func.func @transform_31(%arg0: i32) -> (i32, i32) {
    %c0_i32 = arith.constant 0 : i32
    %c0_i32_0 = arith.constant 0 : i32
    %c0_i32_1 = arith.constant 0 : i32
    return %c0_i32, %c0_i32_0 : i32, i32
  }
  func.func @transform_32(%arg0: i32) -> (i32, i32) {
    %c0_i32 = arith.constant 0 : i32
    %c0_i32_0 = arith.constant 0 : i32
    %c0_i32_1 = arith.constant 0 : i32
    return %c0_i32, %c0_i32_0 : i32, i32
  }
  func.func @transform_33(%arg0: i32) -> (i32, i32) {
    %c0_i32 = arith.constant 0 : i32
    %c0_i32_0 = arith.constant 0 : i32
    %c0_i32_1 = arith.constant 0 : i32
    return %c0_i32, %c0_i32_0 : i32, i32
  }
  func.func @transform_34(%arg0: i32) -> (i32, i32) {
    %c0_i32 = arith.constant 0 : i32
    %c0_i32_0 = arith.constant 0 : i32
    %c0_i32_1 = arith.constant 0 : i32
    return %c0_i32, %c0_i32_0 : i32, i32
  }
  func.func @transform_35(%arg0: i32) -> (i32, i32) {
    %c0_i32 = arith.constant 0 : i32
    %c0_i32_0 = arith.constant 0 : i32
    %c0_i32_1 = arith.constant 0 : i32
    return %c0_i32, %c0_i32_0 : i32, i32
  }
  func.func @transform_36(%arg0: i32) -> (i32, i32) {
    %c0_i32 = arith.constant 0 : i32
    %c0_i32_0 = arith.constant 0 : i32
    %c0_i32_1 = arith.constant 0 : i32
    return %c0_i32, %c0_i32_0 : i32, i32
  }
  func.func @transform_37(%arg0: i32) -> (i32, i32, i32) {
    %c0_i32 = arith.constant 0 : i32
    %c0_i32_0 = arith.constant 0 : i32
    %c0_i32_1 = arith.constant 0 : i32
    %c0_i32_2 = arith.constant 0 : i32
    return %c0_i32, %c0_i32_0, %c0_i32_1 : i32, i32, i32
  }
  func.func @transform_38(%arg0: i32) -> (i32, i32) {
    %c0_i32 = arith.constant 0 : i32
    %c0_i32_0 = arith.constant 0 : i32
    %c0_i32_1 = arith.constant 0 : i32
    return %c0_i32, %c0_i32_0 : i32, i32
  }
  func.func @transform_39(%arg0: i32) -> (i32, i32) {
    %c0_i32 = arith.constant 0 : i32
    %c0_i32_0 = arith.constant 0 : i32
    %c0_i32_1 = arith.constant 0 : i32
    return %c0_i32, %c0_i32_0 : i32, i32
  }
}

</mosaic_0001>

<bundles_post_ra>
// kernel: vae_forward.1
= control target key start
LH: loop header
LB: loop body
LE: loop exit
PB: predicated region body
PF: predicated region fallthrough
CT: control target
= control target key end

     0   :  { %s7169_s6 = smov 1   ;;  %s7170_s10 = smov 2   ;;  %s8849_s0 = inlined_call_operand.smem [shape: u32[40], index: -1, kind: input, shape index: {}] }
   0x1   :  { %s7250_s5 = sld [smem:[%s8849_s0]]   ;;  %s7171_s14 = smov 3  }
   0x2   :  { %s7255_s9 = sld [smem:[%s8849_s0 + %s7169_s6]]   ;;  %s7172_s18 = smov 4  }
   0x3   :  { %s7260_s13 = sld [smem:[%s8849_s0 + %s7170_s10]]   ;;  %s7173_s22 = smov 5  }
   0x4   :  { %s7265_s17 = sld [smem:[%s8849_s0 + %s7171_s14]]   ;;  %s7174_s26 = smov 6  }
   0x5   :  { %s7270_s21 = sld [smem:[%s8849_s0 + %s7172_s18]]   ;;  %s7175_s30 = smov 7  }
   0x6   :  { %s7275_s25 = sld [smem:[%s8849_s0 + %s7173_s22]]   ;;  %s7176_s4 = smov 8  }
   0x7   :  { %s7280_s29 = sld [smem:[%s8849_s0 + %s7174_s26]]   ;;  %s7177_s10 = smov 9  }
   0x8   :  { %8862 = sst [smem:[#allocation31_spill]] %s7255_s9  ;;  %s7178_s15 = smov 10  }
   0x9   :  { %s7285_s3 = sld [smem:[%s8849_s0 + %s7175_s30]]   ;;  %s7179_s20 = smov 11  }
   0xa   :  { %s7290_s8 = sld [smem:[%s8849_s0 + %s7176_s4]]   ;;  %s7180_s26 = smov 12  }
   0xb   :  { %s7295_s14 = sld [smem:[%s8849_s0 + %s7177_s10]]   ;;  %s7181_s1 = smov 13  }
   0xc   :  { %8863 = sst [smem:[#allocation32_spill]] %s7275_s25  ;;  %s7182_s7 = smov 14  }
   0xd   :  { %s7300_s19 = sld [smem:[%s8849_s0 + %s7178_s15]]   ;;  %s7183_s15 = smov 15  }
   0xe   :  { %s7305_s24 = sld [smem:[%s8849_s0 + %s7179_s20]]   ;;  %s7184_s22 = smov 16  }
   0xf   :  { %8864 = sst [smem:[#allocation33_spill]] %s7285_s3  ;;  %s7185_s28 = smov 17  }
  0x10   :  { %s7310_s30 = sld [smem:[%s8849_s0 + %s7180_s26]]  }
  0x11   :  { %8865 = sst [smem:[#allocation34_spill]] %s7295_s14 }
  0x12   :  { %s7315_s6 = sld [smem:[%s8849_s0 + %s7181_s1]]  }
  0x13   :  { %8866 = sst [smem:[#allocation35_spill]] %s7300_s19 }
  0x14   :  { %s7320_s12 = sld [smem:[%s8849_s0 + %s7182_s7]]   ;;  %s7186_s7 = smov 18  }
  0x15   :  { %s7325_s20 = sld [smem:[%s8849_s0 + %s7183_s15]]   ;;  %s7187_s15 = smov 19  }
  0x16   :  { %8867 = sst [smem:[#allocation36_spill]] %s7310_s30 }
  0x17   :  { %s7330_s27 = sld [smem:[%s8849_s0 + %s7184_s22]]   ;;  %s7188_s22 = smov 20  }
  0x18   :  { %8868 = sst [smem:[#allocation37_spill]] %s7315_s6 }
  0x19   :  { %s7335_s4 = sld [smem:[%s8849_s0 + %s7185_s28]]   ;;  %s7189_s28 = smov 21  }
  0x1a   :  { %8869 = sst [smem:[#allocation38_spill]] %s7320_s12 }
  0x1b   :  { %8870 = sst [smem:[#allocation39_spill]] %s7325_s20 }
  0x1c   :  { %s7340_s9 = sld [smem:[%s8849_s0 + %s7186_s7]]   ;;  %s7190_s7 = smov 22  }
  0x1d   :  { %8871 = sst [smem:[#allocation40_spill]] %s7330_s27 }
  0x1e   :  { %s7345_s20 = sld [smem:[%s8849_s0 + %s7187_s15]]   ;;  %s7191_s15 = smov 23  }
  0x1f   :  { %8872 = sst [smem:[#allocation41_spill]] %s7335_s4 }
  0x20   :  { %s7350_s27 = sld [smem:[%s8849_s0 + %s7188_s22]]   ;;  %s7192_s22 = smov 24  }
  0x21   :  { %s7355_s4 = sld [smem:[%s8849_s0 + %s7189_s28]]   ;;  %s7193_s28 = smov 25  }
  0x22   :  { %8873 = sst [smem:[#allocation42_spill]] %s7340_s9 }
  0x23   :  { %s7360_s9 = sld [smem:[%s8849_s0 + %s7190_s7]]   ;;  %s7194_s7 = smov 26  }
  0x24   :  { %8874 = sst [smem:[#allocation43_spill]] %s7345_s20 }
  0x25   :  { %s7365_s20 = sld [smem:[%s8849_s0 + %s7191_s15]]   ;;  %s7195_s15 = smov 27  }
  0x26   :  { %8875 = sst [smem:[#allocation44_spill]] %s7350_s27 }
  0x27   :  { %8876 = sst [smem:[#allocation45_spill]] %s7355_s4 }
  0x28   :  { %s7370_s27 = sld [smem:[%s8849_s0 + %s7192_s22]]   ;;  %s7196_s22 = smov 28  }
  0x29   :  { %8877 = sst [smem:[#allocation46_spill]] %s7360_s9 }
  0x2a   :  { %s7375_s4 = sld [smem:[%s8849_s0 + %s7193_s28]]   ;;  %s7197_s28 = smov 29  }
  0x2b   :  { %s7380_s9 = sld [smem:[%s8849_s0 + %s7194_s7]]   ;;  %s7198_s7 = smov 30  }
  0x2c   :  { %s7385_s6 = sld [smem:[%s8849_s0 + %s7195_s15]]   ;;  %s7199_s15 = smov 31  }
  0x2d   :  { %s7400_s12 = sld [smem:[%s8849_s0 + %s7198_s7]]   ;;  %s7202_s7 = smov 34  }
  0x2e   :  { %8878 = sst [smem:[#allocation47_spill]] %s7370_s27 }
  0x2f   :  { %s7390_s27 = sld [smem:[%s8849_s0 + %s7196_s22]]   ;;  %s7200_s22 = smov 32  }
  0x30   :  { %8879 = sst [smem:[#allocation48_spill]] %s7375_s4 }
  0x31   :  { %s7395_s4 = sld [smem:[%s8849_s0 + %s7197_s28]]   ;;  %s7201_s28 = smov 33  }
  0x32   :  { %8880 = sst [smem:[#allocation49_spill]] %s7385_s6 }
  0x33   :  { %8881 = sst [smem:[#allocation50_spill]] %s7400_s12 }
  0x34   :  { %s7405_s6 = sld [smem:[%s8849_s0 + %s7199_s15]]   ;;  %s7203_s15 = smov 35  }
  0x35   :  { %s7410_s19 = sld [smem:[%s8849_s0 + %s7200_s22]]   ;;  %s7204_s22 = smov 36  }
  0x36   :  { %s7415_s30 = sld [smem:[%s8849_s0 + %s7201_s28]]   ;;  %s7205_s28 = smov 37  }
  0x37   :  { %s7420_s12 = sld [smem:[%s8849_s0 + %s7202_s7]]   ;;  %s7206_s7 = smov 38  }
  0x38   :  { %s7425_s14 = sld [smem:[%s8849_s0 + %s7203_s15]]   ;;  %s7207_s15 = smov 39  }
  0x39   :  { %s7435_s3 = sld [smem:[%s8849_s0 + %s7205_s28]]  }
  0x3a   :  { %s7440_s25 = sld [smem:[%s8849_s0 + %s7206_s7]]  }
  0x3b   :  { %8882 = sst [smem:[#allocation51_spill]] %s7410_s19 }
  0x3c   :  { %s7430_s19 = sld [smem:[%s8849_s0 + %s7204_s22]]  }
  0x3e   :  { %8883 = sst [smem:[#allocation52_spill]] %s7425_s14 }
  0x3f   :  { %s7445_s14 = sld [smem:[%s8849_s0 + %s7207_s15]]  }
  0x40   :  { %85 = vsyncpa [#allocation3], 0 }
  0x41   :  { %86 = vsyncpa [#allocation6], 0 }
  0x42   :  { %87 = vsyncpa [#allocation9], 0 }
  0x43   :  { %88 = vsyncpa [#allocation12], 0 }
  0x44   :  { %89 = vsyncpa [#allocation15], 0 }
  0x45   :  { %90 = vsyncpa [#allocation18], 0 }
  0x46   :  { %91 = vsyncpa [#allocation4], 0 }
  0x47   :  { %92 = vsyncpa [#allocation21], 0  ;;  %s7208_s22 = smov [#allocation5]   ;;  %s7209_s26 = smov [#allocation8]  }
  0x48   :  { %s129_s23 = sshll.u32 %s7208_s22, 4  ;;  %s177_s28 = sshll.u32 %s7209_s26, 4  ;;  %s130_s23 = int_to_ptr.vmem [resolvable:$true] %s129_s23  ;;  %s178_s28 = int_to_ptr.vmem [resolvable:$true] %s177_s28 }
  0x49   :  { %s6867_s1 = scalar_lea.hbm %s7305_s24, 16 }
  0x4a   :  { %p6868_p0 = scmp.ne.s32.totalorder %s7305_s24, %s6867_s1  ;;  %p6871_p1 = scmp.lt.u32.totalorder %s6867_s1, %s7305_s24 }
  0x4c   :  { %p6873_p2 = pnand %p6871_p1, %p6868_p0 }
  0x4e   :  { %6876 = shalt.err (!%p6873_p2)
}
  0x4f   :  { %s6877_s0 = scalar_lea.vmem %s130_s23, 16  ;;  %s6881_s2 = scalar_lea.vmem %s130_s23, 32 }
  0x50   :  { %p6878_p3 = scmp.ne.s32.totalorder %s130_s23, %s6877_s0  ;;  %p6882_p4 = scmp.lt.s32.totalorder %s130_s23, %s130_s23 }
  0x51   :  { %p6883_p5 = scmp.lt.s32.totalorder %s6881_s2, %s6877_s0 }
  0x53   :  { %p6884_p6 = por %p6883_p5, %p6882_p4 }
  0x55   :  { %p6885_p7 = pnand %p6884_p6, %p6878_p3 }
  0x57   :  { %6888 = shalt.err (!%p6885_p7)
}
  0x58   :  { %132 = dma.hbm_to_vmem [thread:$0]  %s7305_s24, 16, %s130_s23, [#allocation6]  }
  0x59   :  { %s6889_s7 = scalar_lea.hbm %s7380_s9, 16 }
  0x5a   :  { %p6890_p8 = scmp.ne.s32.totalorder %s7380_s9, %s6889_s7  ;;  %p6893_p9 = scmp.lt.u32.totalorder %s6889_s7, %s7380_s9 }
  0x5c   :  { %p6895_p10 = pnand %p6893_p9, %p6890_p8 }
  0x5e   :  { %6898 = shalt.err (!%p6895_p10)
}
  0x5f   :  { %s6899_s10 = scalar_lea.vmem %s178_s28, 16  ;;  %s6903_s11 = scalar_lea.vmem %s178_s28, 32 }
  0x60   :  { %p6900_p11 = scmp.ne.s32.totalorder %s178_s28, %s6899_s10  ;;  %p6904_p12 = scmp.lt.s32.totalorder %s178_s28, %s178_s28 }
  0x61   :  { %p6905_p13 = scmp.lt.s32.totalorder %s6903_s11, %s6899_s10 }
  0x63   :  { %p6906_p0 = por %p6905_p13, %p6904_p12 }
  0x65   :  { %p6907_p1 = pnand %p6906_p0, %p6900_p11 }
  0x67   :  { %6910 = shalt.err (!%p6907_p1)
}
  0x68   :  { %180 = dma.hbm_to_vmem [thread:$0]  %s7380_s9, 16, %s178_s28, [#allocation9]  }
  0x69   :  { %s7210_s15 = smov [#allocation11]   ;;  %s7211_s16 = smov [#allocation14]  }
  0x6a   :  { %s199_s24 = sshll.u32 %s7210_s15, 4  ;;  %s223_s18 = sshll.u32 %s7211_s16, 4  ;;  %s200_s24 = int_to_ptr.vmem [resolvable:$true] %s199_s24  ;;  %s224_s18 = int_to_ptr.vmem [resolvable:$true] %s223_s18 }
  0x6b   :  { %s6911_s22 = scalar_lea.hbm %s7395_s4, 16 }
  0x6c   :  { %p6912_p2 = scmp.ne.s32.totalorder %s7395_s4, %s6911_s22  ;;  %p6915_p3 = scmp.lt.u32.totalorder %s6911_s22, %s7395_s4 }
  0x6e   :  { %p6917_p4 = pnand %p6915_p3, %p6912_p2 }
  0x70   :  { %6920 = shalt.err (!%p6917_p4)
}
  0x71   :  { %s6921_s23 = scalar_lea.vmem %s200_s24, 16  ;;  %s6925_s26 = scalar_lea.vmem %s200_s24, 32 }
  0x72   :  { %p6922_p5 = scmp.ne.s32.totalorder %s200_s24, %s6921_s23  ;;  %p6926_p6 = scmp.lt.s32.totalorder %s200_s24, %s200_s24 }
  0x73   :  { %p6927_p7 = scmp.lt.s32.totalorder %s6925_s26, %s6921_s23 }
  0x75   :  { %p6928_p8 = por %p6927_p7, %p6926_p6 }
  0x77   :  { %p6929_p9 = pnand %p6928_p8, %p6922_p5 }
  0x79   :  { %6932 = shalt.err (!%p6929_p9)
}
  0x7a   :  { %202 = dma.hbm_to_vmem [thread:$0]  %s7395_s4, 16, %s200_s24, [#allocation12]  }
  0x7b   :  { %s6933_s9 = scalar_lea.hbm %s7415_s30, 16 }
  0x7c   :  { %p6934_p10 = scmp.ne.s32.totalorder %s7415_s30, %s6933_s9  ;;  %p6937_p11 = scmp.lt.u32.totalorder %s6933_s9, %s7415_s30 }
  0x7e   :  { %p6939_p12 = pnand %p6937_p11, %p6934_p10 }
  0x80   :  { %6942 = shalt.err (!%p6939_p12)
}
  0x81   :  { %s6943_s28 = scalar_lea.vmem %s224_s18, 16  ;;  %s6947_s1 = scalar_lea.vmem %s224_s18, 32 }
  0x82   :  { %p6944_p13 = scmp.ne.s32.totalorder %s224_s18, %s6943_s28  ;;  %p6948_p0 = scmp.lt.s32.totalorder %s224_s18, %s224_s18 }
  0x83   :  { %p6949_p1 = scmp.lt.s32.totalorder %s6947_s1, %s6943_s28 }
  0x85   :  { %p6950_p2 = por %p6949_p1, %p6948_p0 }
  0x87   :  { %p6951_p3 = pnand %p6950_p2, %p6944_p13 }
  0x89   :  { %6954 = shalt.err (!%p6951_p3)
}
  0x8a   :  { %226 = dma.hbm_to_vmem [thread:$0]  %s7415_s30, 16, %s224_s18, [#allocation15]  }
  0x8b   :  { %s7212_s0 = smov [#allocation2]   ;;  %s7213_s2 = smov [#allocation7]  }
  0x8c   :  { %s115_s4 = sshll.u32 %s7212_s0, 4  ;;  %s160_s7 = sshll.u32 %s7213_s2, 4  ;;  %s116_s4 = int_to_ptr.vmem [resolvable:$true] %s115_s4  ;;  %s7463_s7 = int_to_ptr.vmem [resolvable:$true] %s160_s7 }
  0x8d   :  { %s6955_s10 = scalar_lea.hbm %s7290_s8, 16 }
  0x8e   :  { %p6956_p4 = scmp.ne.s32.totalorder %s7290_s8, %s6955_s10  ;;  %p6959_p5 = scmp.lt.u32.totalorder %s6955_s10, %s7290_s8 }
  0x90   :  { %p6961_p6 = pnand %p6959_p5, %p6956_p4 }
  0x92   :  { %6964 = shalt.err (!%p6961_p6)
}
  0x93   :  { %s6965_s11 = scalar_lea.vmem %s116_s4, 16  ;;  %s6969_s15 = scalar_lea.vmem %s116_s4, 32 }
  0x94   :  { %p6966_p7 = scmp.ne.s32.totalorder %s116_s4, %s6965_s11  ;;  %p6970_p8 = scmp.lt.s32.totalorder %s116_s4, %s116_s4 }
  0x95   :  { %p6971_p9 = scmp.lt.s32.totalorder %s6969_s15, %s6965_s11 }
  0x97   :  { %p6972_p10 = por %p6971_p9, %p6970_p8 }
  0x99   :  { %p6973_p11 = pnand %p6972_p10, %p6966_p7 }
  0x9b   :  { %6976 = shalt.err (!%p6973_p11)
}
  0x9c   :  { %118 = dma.hbm_to_vmem [thread:$0]  %s7290_s8, 16, %s116_s4, [#allocation3]  }
  0x9d   :  { %s6977_s30 = scalar_lea.hbm %s7365_s20, 1024 }
  0x9e   :  { %p6978_p12 = scmp.ne.s32.totalorder %s7365_s20, %s6977_s30  ;;  %p6981_p13 = scmp.lt.u32.totalorder %s6977_s30, %s7365_s20 }
  0xa0   :  { %p6983_p0 = pnand %p6981_p13, %p6978_p12 }
  0xa2   :  { %6986 = shalt.err (!%p6983_p0)
}
  0xa3   :  { %s6987_s24 = scalar_lea.vmem %s7463_s7, 1024  ;;  %p6992_p2 = scmp.lt.s32.totalorder %s7463_s7, %s7463_s7 }
  0xa4   :  { %p6988_p1 = scmp.ne.s32.totalorder %s7463_s7, %s6987_s24  ;;  %p6993_p3 = scmp.lt.s32.totalorder %s6987_s24, %s6987_s24 }
  0xa6   :  { %p6994_p4 = por %p6993_p3, %p6992_p2 }
  0xa8   :  { %p6995_p5 = pnand %p6994_p4, %p6988_p1 }
  0xaa   :  { %6998 = shalt.err (!%p6995_p5)
}
  0xab   :  { %s7214_s16 = smov 64   ;;  %s7215_s8 = smov 4  }
  0xac   :  { %166 = dma.hbm_to_vmem [thread:$0]  %s7365_s20, 1024, %s7463_s7, [#allocation6], %s7214_s16, %s7214_s16, %s7215_s8  }
  0xad   :  { %s7216_s18 = smov [#allocation10]   ;;  %s7217_s23 = smov [#allocation13]  }
  0xae   :  { %s189_s22 = sshll.u32 %s7216_s18, 4  ;;  %s211_s26 = sshll.u32 %s7217_s23, 4  ;;  %s190_s22 = int_to_ptr.vmem [resolvable:$true] %s189_s22  ;;  %s212_s26 = int_to_ptr.vmem [resolvable:$true] %s211_s26 }
  0xaf   :  { %s6999_s9 = scalar_lea.hbm %s7390_s27, 16 }
  0xb0   :  { %p7000_p6 = scmp.ne.s32.totalorder %s7390_s27, %s6999_s9  ;;  %p7003_p7 = scmp.lt.u32.totalorder %s6999_s9, %s7390_s27 }
  0xb2   :  { %p7005_p8 = pnand %p7003_p7, %p7000_p6 }
  0xb4   :  { %7008 = shalt.err (!%p7005_p8)
}
  0xb5   :  { %s7009_s28 = scalar_lea.vmem %s190_s22, 16  ;;  %s7013_s1 = scalar_lea.vmem %s190_s22, 32 }
  0xb6   :  { %p7010_p9 = scmp.ne.s32.totalorder %s190_s22, %s7009_s28  ;;  %p7014_p10 = scmp.lt.s32.totalorder %s190_s22, %s190_s22 }
  0xb7   :  { %p7015_p11 = scmp.lt.s32.totalorder %s7013_s1, %s7009_s28 }
  0xb9   :  { %p7016_p12 = por %p7015_p11, %p7014_p10 }
  0xbb   :  { %p7017_p13 = pnand %p7016_p12, %p7010_p9 }
  0xbd   :  { %7020 = shalt.err (!%p7017_p13)
}
  0xbe   :  { %192 = dma.hbm_to_vmem [thread:$0]  %s7390_s27, 16, %s190_s22, [#allocation9]  }
  0xbf   :  { %s7021_s20 = scalar_lea.hbm %s7405_s6, 16 }
  0xc0   :  { %p7022_p0 = scmp.ne.s32.totalorder %s7405_s6, %s7021_s20  ;;  %p7025_p1 = scmp.lt.u32.totalorder %s7021_s20, %s7405_s6 }
  0xc2   :  { %p7027_p2 = pnand %p7025_p1, %p7022_p0 }
  0xc4   :  { %7030 = shalt.err (!%p7027_p2)
}
  0xc5   :  { %s7031_s0 = scalar_lea.vmem %s212_s26, 16  ;;  %s7035_s4 = scalar_lea.vmem %s212_s26, 32 }
  0xc6   :  { %p7032_p3 = scmp.ne.s32.totalorder %s212_s26, %s7031_s0  ;;  %p7036_p4 = scmp.lt.s32.totalorder %s212_s26, %s212_s26 }
  0xc7   :  { %p7037_p5 = scmp.lt.s32.totalorder %s7035_s4, %s7031_s0 }
  0xc9   :  { %p7038_p6 = por %p7037_p5, %p7036_p4 }
  0xcb   :  { %p7039_p7 = pnand %p7038_p6, %p7032_p3 }
  0xcd   :  { %7042 = shalt.err (!%p7039_p7)
}
  0xce   :  { %214 = dma.hbm_to_vmem [thread:$0]  %s7405_s6, 16, %s212_s26, [#allocation12]  }
  0xcf   :  { %s7218_s2 = smov [#allocation16]   ;;  %s7219_s7 = smov [#allocation17]  }
  0xd0   :  { %s233_s27 = sshll.u32 %s7218_s2, 4  ;;  %s245_s10 = sshll.u32 %s7219_s7, 4  ;;  %s234_s27 = int_to_ptr.vmem [resolvable:$true] %s233_s27  ;;  %s246_s10 = int_to_ptr.vmem [resolvable:$true] %s245_s10 }
  0xd1   :  { %s7043_s11 = scalar_lea.hbm %s7420_s12, 16 }
  0xd2   :  { %p7044_p8 = scmp.ne.s32.totalorder %s7420_s12, %s7043_s11  ;;  %p7047_p9 = scmp.lt.u32.totalorder %s7043_s11, %s7420_s12 }
  0xd4   :  { %p7049_p10 = pnand %p7047_p9, %p7044_p8 }
  0xd6   :  { %7052 = shalt.err (!%p7049_p10)
}
  0xd7   :  { %s7053_s15 = scalar_lea.vmem %s234_s27, 16  ;;  %s7057_s30 = scalar_lea.vmem %s234_s27, 32 }
  0xd8   :  { %p7054_p11 = scmp.ne.s32.totalorder %s234_s27, %s7053_s15  ;;  %p7058_p12 = scmp.lt.s32.totalorder %s234_s27, %s234_s27 }
  0xd9   :  { %p7059_p13 = scmp.lt.s32.totalorder %s7057_s30, %s7053_s15 }
  0xdb   :  { %p7060_p0 = por %p7059_p13, %p7058_p12 }
  0xdd   :  { %p7061_p1 = pnand %p7060_p0, %p7054_p11 }
  0xdf   :  { %7064 = shalt.err (!%p7061_p1)
}
  0xe0   :  { %236 = dma.hbm_to_vmem [thread:$0]  %s7420_s12, 16, %s234_s27, [#allocation15]  }
  0xe1   :  { %s7065_s6 = scalar_lea.hbm %s7430_s19, 16 }
  0xe2   :  { %p7066_p2 = scmp.ne.s32.totalorder %s7430_s19, %s7065_s6  ;;  %p7069_p3 = scmp.lt.u32.totalorder %s7065_s6, %s7430_s19 }
  0xe4   :  { %p7071_p4 = pnand %p7069_p3, %p7066_p2 }
  0xe6   :  { %7074 = shalt.err (!%p7071_p4)
}
  0xe7   :  { %s7075_s24 = scalar_lea.vmem %s246_s10, 16  ;;  %s7079_s8 = scalar_lea.vmem %s246_s10, 32 }
  0xe8   :  { %p7076_p5 = scmp.ne.s32.totalorder %s246_s10, %s7075_s24  ;;  %p7080_p6 = scmp.lt.s32.totalorder %s246_s10, %s246_s10 }
  0xe9   :  { %p7081_p7 = scmp.lt.s32.totalorder %s7079_s8, %s7075_s24 }
  0xeb   :  { %p7082_p8 = por %p7081_p7, %p7080_p6 }
  0xed   :  { %p7083_p9 = pnand %p7082_p8, %p7076_p5 }
  0xef   :  { %7086 = shalt.err (!%p7083_p9)
}
  0xf0   :  { %248 = dma.hbm_to_vmem [thread:$0]  %s7430_s19, 16, %s246_s10, [#allocation18]  }
  0xf1   :  { %7153 = dma.done.wait [#allocation3], 16  }
  0xf2   :  { %7154 = vsyncadd [#allocation3], 4294967280 }
  0xf3   :  { %7155 = dma.done.wait [#allocation6], 1040  }
  0xf4   :  { %7156 = vsyncadd [#allocation6], 4294966256 }
  0xf5   :  { %7157 = dma.done.wait [#allocation9], 32  }
  0xf6   :  { %7158 = vsyncadd [#allocation9], 4294967264 }
  0xf7   :  { %7159 = dma.done.wait [#allocation12], 32  }
  0xf8   :  { %7160 = vsyncadd [#allocation12], 4294967264 }
  0xf9   :  { %7161 = dma.done.wait [#allocation15], 32  }
  0xfa   :  { %7162 = vsyncadd [#allocation15], 4294967264 }
  0xfb   :  { %7163 = dma.done.wait [#allocation18], 16  }
  0xfc   :  { %7164 = vsyncadd [#allocation18], 4294967280  ;;  %v7220_v0 = vmov 0.0   ;;  %vm7221_vm0 = vmmov 0   ;;  %v6527_v1 = vld [vmem:[%s7260_s13 + $0x40] sm:$0xff]   ;;  %v6530_v4 = vld [vmem:[%s7260_s13 + $0x48] sm:$0xff]  }
  0xfd   :  { %5640 = vmatprep.subr.bf16.mxu1 %v7220_v0  ;;  %5656 = vmatprep.mubr.msk.bf16.mxu1 %vm7221_vm0, %v7220_v0  ;;  %v6528_v2 = vld [vmem:[%s7260_s13] sm:$0xff]   ;;  %v6531_v5 = vld [vmem:[%s7260_s13 + $0x8] sm:$0xff]   ;;  %v6533_v7 = vld [vmem:[%s7260_s13 + $0x50] sm:$0xff]   ;;  %s7227_s19 = smov 48   ;;  %s7228_s12 = smov 40   ;;  %vm854_vm1 = vcmask 64512  }
  0xfe   :  { %5224 = vmatprep.subr.bf16.mxu0 %v6527_v1  ;;  %v6529_v3 = vld [vmem:[%s7260_s13 + $0x80] sm:$0xff]   ;;  %v6532_v6 = vld [vmem:[%s7260_s13 + $0x88] sm:$0xff]   ;;  %v6534_v8 = vld [vmem:[%s7260_s13 + $0x10] sm:$0xff]   ;;  %s7229_s18 = smov 56   ;;  %s7230_s22 = smov 80   ;;  %vm856_vm2 = vcmask 130048  }
  0xff   :  { %5225 = vmatpush3.bf16.msra.mxu0 %v6528_v2  ;;  %5641 = vmatpush3.bf16.msra.mxu1 %v6529_v3  ;;  %v6535_v9 = vld [vmem:[%s7260_s13 + $0x90] sm:$0xff]   ;;  %v6536_v10 = vld [vmem:[%s7260_s13 + $0x58] sm:$0xff]   ;;  %v6539_v13 = vld [vmem:[%s7260_s13 + $0x60] sm:$0xff]   ;;  %s7231_s23 = smov 72   ;;  %s7232_s26 = smov 96   ;;  %vm858_vm3 = vcmask 195584  }
 0x100   :  { %5226 = vmatprep.subr.bf16.mxu0 %v6530_v4  ;;  %5642 = vmatprep.subr.bf16.mxu1 %v7220_v0  ;;  %v6537_v11 = vld [vmem:[%s7260_s13 + $0x18] sm:$0xff]   ;;  %v6540_v14 = vld [vmem:[%s7260_s13 + $0x20] sm:$0xff]   ;;  %v6542_v16 = vld [vmem:[%s7260_s13 + $0x68] sm:$0xff]   ;;  %s7233_s9 = smov 88   ;;  %s7234_s28 = smov 112   ;;  %vm860_vm4 = vcmask 261120  }
 0x101   :  { %v6538_v12 = vld [vmem:[%s7260_s13 + $0x98] sm:$0xff]   ;;  %v6541_v15 = vld [vmem:[%s7260_s13 + $0xa0] sm:$0xff]   ;;  %v6543_v17 = vld [vmem:[%s7260_s13 + $0x28] sm:$0xff]   ;;  %s7235_s1 = smov 104   ;;  %s7236_s20 = smov 120   ;;  %vm862_vm5 = vcmask 326656  }
 0x102   :  { %v6544_v18 = vld [vmem:[%s7260_s13 + $0xa8] sm:$0xff]   ;;  %v6545_v19 = vld [vmem:[%s7260_s13 + $0x70] sm:$0xff]   ;;  %v283_v22 = vld [vmem:[%s7250_s5 + $0x18] sm:$0xff]  ;;  %vm864_vm6 = vcmask 392192   ;;  %vm866_vm7 = vcmask 457728   ;;  %vm868_vm8 = vcmask 523264  }
 0x103   :  { %5227 = vmatpush3.bf16.msra.mxu0 %v6531_v5  ;;  %5643 = vmatpush3.bf16.msra.mxu1 %v6532_v6  ;;  %v6546_v20 = vld [vmem:[%s7260_s13 + $0x30] sm:$0xff]   ;;  %v281_v21 = vld [vmem:[%s7250_s5 + $0x8] sm:$0xff]  ;;  %v6548_v24 = vld [vmem:[%s7260_s13 + $0x78] sm:$0xff]   ;;  %vm870_vm9 = vcmask 588800   ;;  %vm872_vm10 = vcmask 654336   ;;  %vm874_vm11 = vcmask 719872  }
 0x104   :  { %5228 = vmatprep.subr.bf16.mxu0 %v6533_v7  ;;  %5644 = vmatprep.subr.bf16.mxu1 %v7220_v0  ;;  %v6547_v23 = vld [vmem:[%s7260_s13 + $0xb0] sm:$0xff]   ;;  %v314_v25 = vpack.c.bf16 %v283_v22, %v281_v21  ;;  %v6549_v26 = vld [vmem:[%s7260_s13 + $0x38] sm:$0xff]   ;;  %v280_v28 = vld [vmem:[%s7250_s5] sm:$0xff]  ;;  %vm876_vm12 = vcmask 785408   ;;  %vm878_vm13 = vcmask 850944   ;;  %vm880_vm14 = vcmask 916480  }
 0x105   :  { %v6550_v27 = vld [vmem:[%s7260_s13 + $0xb8] sm:$0xff]   ;;  %v282_v29 = vld [vmem:[%s7250_s5 + $0x10] sm:$0xff]  ;;  %v284_v30 = vld [vmem:[%s7250_s5 + $0x20] sm:$0xff]  ;;  %s7224_s13 = smov 8   ;;  %vm882_vm15 = vcmask 982016   ;;  %s8885_s0 = sld [smem:[#allocation33_spill]] }
 0x106   :  { %559 = vmatprep.mubr.bf16.mxu0 %v314_v25  ;;  %v285_v31 = vld [vmem:[%s7250_s5 + $0x28] sm:$0xff]  ;;  %v287_v32 = vld [vmem:[%s7250_s5 + $0x38] sm:$0xff]  ;;  %v307_v33 = vpack.c.bf16 %v282_v29, %v280_v28  ;;  %v321_v34 = vpack.c.bf16 %v284_v30, %v282_v29  ;;  %v286_v36 = vld [vmem:[%s7250_s5 + $0x30] sm:$0xff]  ;;  %s8886_s4 = sld [smem:[#allocation34_spill]]  ;;  %s8887_s2 = sld [smem:[#allocation36_spill]] }
 0x107   :  { %5229 = vmatpush3.bf16.msra.mxu0 %v6534_v8  ;;  %5645 = vmatpush3.bf16.msra.mxu1 %v6535_v9  ;;  %v315_v35 = vpack.c.bf16 %v287_v32, %v285_v31  ;;  %v288_v37 = vld [vmem:[%s7250_s5 + $0x40] sm:$0xff]  ;;  %v289_v38 = vld [vmem:[%s7250_s5 + $0x48] sm:$0xff]  ;;  %v291_v39 = vld [vmem:[%s7250_s5 + $0x58] sm:$0xff]  ;;  %v308_v40 = vpack.c.bf16 %v286_v36, %v284_v30  ;;  %s8888_s27 = sld [smem:[#allocation35_spill]]  ;;  %s8889_s7 = sld [smem:[#allocation38_spill]] }
 0x108   :  { %5230 = vmatprep.subr.bf16.mxu0 %v6536_v10  ;;  %5646 = vmatprep.subr.bf16.mxu1 %v7220_v0  ;;  %v322_v41 = vpack.c.bf16 %v288_v37, %v286_v36  ;;  %v316_v42 = vpack.c.bf16 %v291_v39, %v289_v38  ;;  %v290_v43 = vld [vmem:[%s7250_s5 + $0x50] sm:$0xff]  ;;  %v292_v44 = vld [vmem:[%s7250_s5 + $0x60] sm:$0xff]  ;;  %v293_v45 = vld [vmem:[%s7250_s5 + $0x68] sm:$0xff]  ;;  %s8890_s10 = sld [smem:[#allocation37_spill]]  ;;  %s8891_s11 = sld [smem:[#allocation40_spill]] }
 0x109   :  { %v295_v46 = vld [vmem:[%s7250_s5 + $0x78] sm:$0xff]  ;;  %v309_v47 = vpack.c.bf16 %v290_v43, %v288_v37  ;;  %v323_v48 = vpack.c.bf16 %v292_v44, %v290_v43  ;;  %v294_v50 = vld [vmem:[%s7250_s5 + $0x70] sm:$0xff]  ;;  %v296_v51 = vld [vmem:[%s7250_s5 + $0x80] sm:$0xff]  ;;  %s8892_s15 = sld [smem:[#allocation41_spill]]  ;;  %s8893_s30 = sld [smem:[#allocation42_spill]] }
 0x10a   :  { %v317_v49 = vpack.c.bf16 %v295_v46, %v293_v45  ;;  %v297_v52 = vld [vmem:[%s7250_s5 + $0x88] sm:$0xff]  ;;  %v299_v53 = vld [vmem:[%s7250_s5 + $0x98] sm:$0xff]  ;;  %v310_v54 = vpack.c.bf16 %v294_v50, %v292_v44  ;;  %v324_v55 = vpack.c.bf16 %v296_v51, %v294_v50  ;;  %v298_v57 = vld [vmem:[%s7250_s5 + $0x90] sm:$0xff]  ;;  %s8894_s6 = sld [smem:[#allocation39_spill]]  ;;  %s8895_s24 = sld [smem:[#allocation45_spill]] }
 0x10b   :  { %5231 = vmatpush3.bf16.msra.mxu0 %v6537_v11  ;;  %5647 = vmatpush3.bf16.msra.mxu1 %v6538_v12  ;;  %v318_v56 = vpack.c.bf16 %v299_v53, %v297_v52  ;;  %v300_v58 = vld [vmem:[%s7250_s5 + $0xa0] sm:$0xff]  ;;  %v301_v59 = vld [vmem:[%s7250_s5 + $0xa8] sm:$0xff]  ;;  %v303_v60 = vld [vmem:[%s7250_s5 + $0xb8] sm:$0xff]  ;;  %v311_v61 = vpack.c.bf16 %v298_v57, %v296_v51  ;;  %v7222_v12 = vmov 0.0|0.0   ;;  %s8896_s8 = sld [smem:[#allocation48_spill]] }
 0x10c   :  { %5232 = vmatprep.subr.bf16.mxu0 %v6539_v13  ;;  %5648 = vmatprep.subr.bf16.mxu1 %v7220_v0  ;;  %v325_v62 = vpack.c.bf16 %v300_v58, %v298_v57  ;;  %v319_v63 = vpack.c.bf16 %v303_v60, %v301_v59  ;;  %v302_v1 = vld [vmem:[%s7250_s5 + $0xb0] sm:$0xff]  ;;  %v304_v2 = vld [vmem:[%s7250_s5 + $0xc0] sm:$0xff]  ;;  %v305_v3 = vld [vmem:[%s7250_s5 + $0xc8] sm:$0xff] }
 0x10d   :  { %v312_v4 = vpack.c.bf16 %v302_v1, %v300_v58  ;;  %v326_v5 = vpack.c.bf16 %v304_v2, %v302_v1  ;;  %v320_v6 = vpack.c.bf16 %v305_v3, %v305_v3  ;;  %v306_v7 = vld [vmem:[%s7250_s5 + $0xd0] sm:$0xff]  ;;  %v313_v8 = vpack.c.bf16 %v304_v2, %v304_v2  ;;  %v703_v10 = vld [vmem:[%s7270_s21] sm:$0xff]  ;;  %v704_v11 = vld [vmem:[%s7270_s21 + $0x8] sm:$0xff]  ;;  %s7223_s5 = smov 24  }
 0x10e   :  { %v327_v9 = vpack.c.bf16 %v306_v7, %v306_v7  ;;  %v6215_v13 = vpack.c.bf16 %v704_v11, %v703_v10  ;;  %v710_v21 = vld [vmem:[%s7270_s21 + $0x38] sm:$0xff]  ;;  %v715_v29 = vld [vmem:[%s7270_s21 + $0x60] sm:$0xff]  ;;  %v716_v30 = vld [vmem:[%s7270_s21 + $0x68] sm:$0xff] }
 0x10f   :  { %5233 = vmatpush3.bf16.msra.mxu0 %v6540_v14  ;;  %5649 = vmatpush3.bf16.msra.mxu1 %v6541_v15  ;;  %v705_v14 = vld [vmem:[%s7270_s21 + $0x10] sm:$0xff]  ;;  %v706_v15 = vld [vmem:[%s7270_s21 + $0x18] sm:$0xff]  ;;  %v6233_v31 = vpack.c.bf16 %v716_v30, %v715_v29  ;;  %v7607_v37 = vld [vmem:[%s7265_s17] ss:$0 sm:$0xff]  ;;  %s7225_s17 = smov 32  }
 0x110   :  { %5234 = vmatprep.subr.bf16.mxu0 %v6542_v16  ;;  %5650 = vmatprep.subr.bf16.mxu1 %v7220_v0  ;;  %v6218_v16 = vpack.c.bf16 %v706_v15, %v705_v14  ;;  %v717_v32 = vld [vmem:[%s7270_s21 + $0x70] sm:$0xff] }
 0x113   :  { %5235 = vmatpush3.bf16.msra.mxu0 %v6543_v17  ;;  %5651 = vmatpush3.bf16.msra.mxu1 %v6544_v18  ;;  %v707_v17 = vld [vmem:[%s7270_s21 + $0x20] sm:$0xff]  ;;  %v708_v18 = vld [vmem:[%s7270_s21 + $0x28] sm:$0xff] }
 0x114   :  { %5236 = vmatprep.subr.bf16.mxu0 %v6545_v19  ;;  %5652 = vmatprep.subr.bf16.mxu1 %v7220_v0  ;;  %v6221_v19 = vpack.c.bf16 %v708_v18, %v707_v17 }
 0x117   :  { %5237 = vmatpush3.bf16.msra.mxu0 %v6546_v20  ;;  %5653 = vmatpush3.bf16.msra.mxu1 %v6547_v23  ;;  %v709_v20 = vld [vmem:[%s7270_s21 + $0x30] sm:$0xff]  ;;  %v711_v23 = vld [vmem:[%s7270_s21 + $0x40] sm:$0xff] }
 0x118   :  { %5238 = vmatprep.subr.bf16.mxu0 %v6548_v24  ;;  %5654 = vmatprep.subr.bf16.mxu1 %v7220_v0  ;;  %v6224_v22 = vpack.c.bf16 %v710_v21, %v709_v20  ;;  %v712_v24 = vld [vmem:[%s7270_s21 + $0x48] sm:$0xff] }
 0x119   :  { %v6227_v25 = vpack.c.bf16 %v712_v24, %v711_v23 }
 0x11b   :  { %5239 = vmatpush3.bf16.msra.mxu0 %v6549_v26  ;;  %5655 = vmatpush3.bf16.msra.mxu1 %v6550_v27  ;;  %v713_v26 = vld [vmem:[%s7270_s21 + $0x50] sm:$0xff]  ;;  %v714_v27 = vld [vmem:[%s7270_s21 + $0x58] sm:$0xff] }
 0x11c   :  { %6214 = vmatprep.subr.bf16.mxu0 %v7222_v12  ;;  %6238 = vmatprep.subr.bf16.mxu1 %v7222_v12  ;;  %v6230_v28 = vpack.c.bf16 %v714_v27, %v713_v26 }
 0x11e   :  { %560 = vmatmul.mubr.bf16.vlgmr.msra.gmra.mrb[0].mxu0 %v307_v33  ;;  %5657 = vmatmul.mubr.bf16.vlgmr.msra.gmra.mrb[0].mxu1 %v321_v34  ;;  %v718_v33 = vld [vmem:[%s7270_s21 + $0x78] sm:$0xff]  ;;  %s7226_s21 = smov 16  }
 0x11f   :  { %567 = vmatprep.mubr.bf16.mxu0 %v315_v35  ;;  %5660 = vmatprep.mubr.msk.bf16.mxu1 %vm7221_vm0, %v7220_v0  ;;  %v6236_v34 = vpack.c.bf16 %v718_v33, %v717_v32 }
 0x120   :  { %6216 = vmatpush3.bf16.msra.mxu0 %v6215_v13  ;;  %6240 = vmatpush3.bf16.msra.mxu1 %v6215_v13 }
 0x121   :  { %6217 = vmatprep.subr.bf16.mxu0 %v7222_v12  ;;  %6241 = vmatprep.subr.bf16.mxu1 %v7222_v12 }
 0x124   :  { %6219 = vmatpush3.bf16.msra.mxu0 %v6218_v16  ;;  %6243 = vmatpush3.bf16.msra.mxu1 %v6218_v16 }
 0x125   :  { %6220 = vmatprep.subr.bf16.mxu0 %v7222_v12  ;;  %6244 = vmatprep.subr.bf16.mxu1 %v7222_v12 }
 0x126   :  { %568 = vmatmul.mubr.bf16.gmra.mrb[4].mxu0 %v308_v40  ;;  %5661 = vmatmul.mubr.bf16.gmra.mrb[4].mxu1 %v322_v41 }
 0x127   :  { %575 = vmatprep.mubr.bf16.mxu0 %v316_v42  ;;  %5664 = vmatprep.mubr.msk.bf16.mxu1 %vm7221_vm0, %v7220_v0 }
 0x128   :  { %6222 = vmatpush3.bf16.msra.mxu0 %v6221_v19  ;;  %6246 = vmatpush3.bf16.msra.mxu1 %v6221_v19 }
 0x129   :  { %6223 = vmatprep.subr.bf16.mxu0 %v7222_v12  ;;  %6247 = vmatprep.subr.bf16.mxu1 %v7222_v12 }
 0x12c   :  { %6225 = vmatpush3.bf16.msra.mxu0 %v6224_v22  ;;  %6249 = vmatpush3.bf16.msra.mxu1 %v6224_v22 }
 0x12d   :  { %6226 = vmatprep.subr.bf16.mxu0 %v7222_v12  ;;  %6250 = vmatprep.subr.bf16.mxu1 %v7222_v12 }
 0x12e   :  { %576 = vmatmul.mubr.bf16.gmra.mrb[8].mxu0 %v309_v47  ;;  %5665 = vmatmul.mubr.bf16.gmra.mrb[8].mxu1 %v323_v48 }
 0x12f   :  { %583 = vmatprep.mubr.bf16.mxu0 %v317_v49  ;;  %5668 = vmatprep.mubr.msk.bf16.mxu1 %vm7221_vm0, %v7220_v0 }
 0x130   :  { %6228 = vmatpush3.bf16.msra.mxu0 %v6227_v25  ;;  %6252 = vmatpush3.bf16.msra.mxu1 %v6227_v25 }
 0x131   :  { %6229 = vmatprep.subr.bf16.mxu0 %v7222_v12  ;;  %6253 = vmatprep.subr.bf16.mxu1 %v7222_v12 }
 0x134   :  { %6231 = vmatpush3.bf16.msra.mxu0 %v6230_v28  ;;  %6255 = vmatpush3.bf16.msra.mxu1 %v6230_v28 }
 0x135   :  { %6232 = vmatprep.subr.bf16.mxu0 %v7222_v12  ;;  %6256 = vmatprep.subr.bf16.mxu1 %v7222_v12 }
 0x136   :  { %584 = vmatmul.mubr.bf16.gmra.mrb[12].mxu0 %v310_v54  ;;  %5669 = vmatmul.mubr.bf16.gmra.mrb[12].mxu1 %v324_v55 }
 0x137   :  { %591 = vmatprep.mubr.bf16.mxu0 %v318_v56  ;;  %5672 = vmatprep.mubr.msk.bf16.mxu1 %vm7221_vm0, %v7220_v0 }
 0x138   :  { %6234 = vmatpush3.bf16.msra.mxu0 %v6233_v31  ;;  %6258 = vmatpush3.bf16.msra.mxu1 %v6233_v31 }
 0x139   :  { %6235 = vmatprep.subr.bf16.mxu0 %v7222_v12  ;;  %6259 = vmatprep.subr.bf16.mxu1 %v7222_v12 }
 0x13c   :  { %6237 = vmatpush3.bf16.msra.mxu0 %v6236_v34  ;;  %6261 = vmatpush3.bf16.msra.mxu1 %v6236_v34 }
 0x13d   :  { %5754 = vmatprep.subr.bf16.mxu1 %v7220_v0 }
 0x13e   :  { %592 = vmatmul.mubr.bf16.gmra.mrb[16].mxu0 %v311_v61  ;;  %5673 = vmatmul.mubr.bf16.gmra.mrb[16].mxu1 %v325_v62 }
 0x13f   :  { %599 = vmatprep.mubr.bf16.mxu0 %v319_v63  ;;  %5676 = vmatprep.mubr.msk.bf16.mxu1 %vm7221_vm0, %v7220_v0 }
 0x146   :  { %600 = vmatmul.mubr.bf16.gmra.mrb[20].mxu0 %v312_v4  ;;  %5677 = vmatmul.mubr.bf16.gmra.mrb[20].mxu1 %v326_v5 }
 0x147   :  { %607 = vmatprep.mubr.bf16.mxu0 %v320_v6  ;;  %5680 = vmatprep.mubr.msk.bf16.mxu1 %vm7221_vm0, %v7220_v0 }
 0x14e   :  { %608 = vmatmul.mubr.bf16.gmra.mrb[24].mxu0 %v313_v8  ;;  %5681 = vmatmul.mubr.bf16.gmra.mrb[24].mxu1 %v327_v9 }
 0x14f   :  { %5716 = vmatprep.mubr.msk.f32.mxu0 %vm7221_vm0, %v7220_v0  ;;  %5751 = vmatprep.mubr.msk.f32.mxu1 %vm7221_vm0, %v7220_v0 }
 0x1f1   :  { %v5240_v35 = vpop.f32.mrb[0].mxu0  ;;  %v649_v38 = vpop.f32.mrb[0].mxu1 }
 0x1f2   :  { %v5241_v36 = vpop.f32.mrb[1].mxu0  ;;  %v5658_v41 = vpop.f32.mrb[1].mxu1 }
 0x1f3   :  { %v5242_v39 = vadd.f32 %v5241_v36, %v5240_v35  ;;  %v5243_v40 = vpop.f32.mrb[2].mxu0  ;;  %v652_v43 = vpop.f32.mrb[2].mxu1 }
 0x1f4   :  { %v5244_v42 = vpop.f32.mrb[3].mxu0  ;;  %v5659_v46 = vpop.f32.mrb[3].mxu1 }
 0x1f5   :  { %v562_v44 = vadd.f32 %v5242_v39, %v7607_v37  ;;  %v5245_v45 = vadd.f32 %v5244_v42, %v5243_v40 }
 0x1f7   :  { %v7610_v47 = vadd.f32 %v649_v38, %v562_v44  ;;  %v565_v48 = vadd.f32 %v5245_v45, %v7607_v37 }
 0x1f9   :  { %v7613_v49 = vadd.f32 %v652_v43, %v565_v48  ;;  %v5246_v50 = vpop.f32.mrb[4].mxu0  ;;  %v657_v52 = vpop.f32.mrb[4].mxu1 }
 0x1fa   :  { %v5247_v51 = vpop.f32.mrb[5].mxu0  ;;  %v5662_v55 = vpop.f32.mrb[5].mxu1 }
 0x1fb   :  { %v5248_v53 = vadd.f32 %v5247_v51, %v5246_v50  ;;  %v5249_v54 = vpop.f32.mrb[6].mxu0  ;;  %v660_v57 = vpop.f32.mrb[6].mxu1  ;;  %v719_v15 = vadd.f32 %v7613_v49, %v7610_v47 }
 0x1fc   :  { %v5250_v56 = vpop.f32.mrb[7].mxu0  ;;  %v5663_v60 = vpop.f32.mrb[7].mxu1 }
 0x1fd   :  { %v570_v58 = vadd.f32 %v5248_v53, %v7607_v37  ;;  %v5251_v59 = vadd.f32 %v5250_v56, %v5249_v54 }
 0x1ff   :  { %v7616_v61 = vadd.f32 %v657_v52, %v570_v58  ;;  %v573_v62 = vadd.f32 %v5251_v59, %v7607_v37 }
 0x201   :  { %v7619_v63 = vadd.f32 %v660_v57, %v573_v62  ;;  %v5252_v1 = vpop.f32.mrb[8].mxu0  ;;  %v665_v3 = vpop.f32.mrb[8].mxu1  ;;  %v720_v20 = vadd.f32 %v719_v15, %v7616_v61 }
 0x202   :  { %v5253_v2 = vpop.f32.mrb[9].mxu0  ;;  %v5666_v6 = vpop.f32.mrb[9].mxu1 }
 0x203   :  { %v5254_v4 = vadd.f32 %v5253_v2, %v5252_v1  ;;  %v5255_v5 = vpop.f32.mrb[10].mxu0  ;;  %v668_v8 = vpop.f32.mrb[10].mxu1  ;;  %v721_v29 = vadd.f32 %v720_v20, %v7619_v63 }
 0x204   :  { %v5256_v7 = vpop.f32.mrb[11].mxu0  ;;  %v5667_v11 = vpop.f32.mrb[11].mxu1 }
 0x205   :  { %v578_v9 = vadd.f32 %v5254_v4, %v7607_v37  ;;  %v5257_v10 = vadd.f32 %v5256_v7, %v5255_v5 }
 0x207   :  { %v7622_v13 = vadd.f32 %v665_v3, %v578_v9  ;;  %v581_v14 = vadd.f32 %v5257_v10, %v7607_v37 }
 0x209   :  { %v7627_v16 = vadd.f32 %v668_v8, %v581_v14  ;;  %v5258_v17 = vpop.f32.mrb[12].mxu0  ;;  %v673_v19 = vpop.f32.mrb[12].mxu1  ;;  %v722_v32 = vadd.f32 %v721_v29, %v7622_v13 }
 0x20a   :  { %v5259_v18 = vpop.f32.mrb[13].mxu0  ;;  %v5670_v23 = vpop.f32.mrb[13].mxu1 }
 0x20b   :  { %v5260_v21 = vadd.f32 %v5259_v18, %v5258_v17  ;;  %v5261_v22 = vpop.f32.mrb[14].mxu0  ;;  %v676_v25 = vpop.f32.mrb[14].mxu1  ;;  %v723_v43 = vadd.f32 %v722_v32, %v7627_v16 }
 0x20c   :  { %v5262_v24 = vpop.f32.mrb[15].mxu0  ;;  %v5671_v28 = vpop.f32.mrb[15].mxu1 }
 0x20d   :  { %v586_v26 = vadd.f32 %v5260_v21, %v7607_v37  ;;  %v5263_v27 = vadd.f32 %v5262_v24, %v5261_v22 }
 0x20f   :  { %v7632_v30 = vadd.f32 %v673_v19, %v586_v26  ;;  %v589_v31 = vadd.f32 %v5263_v27, %v7607_v37 }
 0x211   :  { %v7636_v33 = vadd.f32 %v676_v25, %v589_v31  ;;  %v5264_v34 = vpop.f32.mrb[16].mxu0  ;;  %v681_v36 = vpop.f32.mrb[16].mxu1  ;;  %v724_v48 = vadd.f32 %v723_v43, %v7632_v30 }
 0x212   :  { %v5265_v35 = vpop.f32.mrb[17].mxu0  ;;  %v5674_v40 = vpop.f32.mrb[17].mxu1 }
 0x213   :  { %v5266_v38 = vadd.f32 %v5265_v35, %v5264_v34  ;;  %v5267_v39 = vpop.f32.mrb[18].mxu0  ;;  %v684_v42 = vpop.f32.mrb[18].mxu1  ;;  %v725_v56 = vadd.f32 %v724_v48, %v7636_v33  ;;  %v7679_v40 = vld [vmem:[%s7280_s29] sm:$0x1]  ;;  %s8884_s29 = sld [smem:[#allocation32_spill]] }
 0x214   :  { %v5268_v41 = vpop.f32.mrb[19].mxu0  ;;  %v5675_v46 = vpop.f32.mrb[19].mxu1 }
 0x215   :  { %v594_v44 = vadd.f32 %v5266_v38, %v7607_v37  ;;  %v5269_v45 = vadd.f32 %v5268_v41, %v5267_v39 }
 0x217   :  { %v7641_v50 = vadd.f32 %v681_v36, %v594_v44  ;;  %v597_v51 = vadd.f32 %v5269_v45, %v7607_v37 }
 0x219   :  { %v7644_v52 = vadd.f32 %v684_v42, %v597_v51  ;;  %v5270_v53 = vpop.f32.mrb[20].mxu0  ;;  %v689_v55 = vpop.f32.mrb[20].mxu1  ;;  %v726_v1 = vadd.f32 %v725_v56, %v7641_v50 }
 0x21a   :  { %v5271_v54 = vpop.f32.mrb[21].mxu0  ;;  %v5678_v59 = vpop.f32.mrb[21].mxu1 }
 0x21b   :  { %v5272_v57 = vadd.f32 %v5271_v54, %v5270_v53  ;;  %v5273_v58 = vpop.f32.mrb[22].mxu0  ;;  %v692_v62 = vpop.f32.mrb[22].mxu1  ;;  %v727_v7 = vadd.f32 %v726_v1, %v7644_v52 }
 0x21c   :  { %v5274_v60 = vpop.f32.mrb[23].mxu0  ;;  %v5679_v4 = vpop.f32.mrb[23].mxu1 }
 0x21d   :  { %v602_v2 = vadd.f32 %v5272_v57, %v7607_v37  ;;  %v5275_v3 = vadd.f32 %v5274_v60, %v5273_v58 }
 0x21f   :  { %v7649_v5 = vadd.f32 %v689_v55, %v602_v2  ;;  %v605_v6 = vadd.f32 %v5275_v3, %v7607_v37 }
 0x221   :  { %v7653_v8 = vadd.f32 %v692_v62, %v605_v6  ;;  %v5276_v9 = vpop.f32.mrb[24].mxu0  ;;  %v697_v11 = vpop.f32.mrb[24].mxu1  ;;  %v728_v14 = vadd.f32 %v727_v7, %v7649_v5 }
 0x222   :  { %v5277_v10 = vpop.f32.mrb[25].mxu0  ;;  %v5682_v18 = vpop.f32.mrb[25].mxu1 }
 0x223   :  { %v5278_v15 = vadd.f32 %v5277_v10, %v5276_v9  ;;  %v5279_v17 = vpop.f32.mrb[26].mxu0  ;;  %v700_v20 = vpop.f32.mrb[26].mxu1  ;;  %v729_v23 = vadd.f32 %v728_v14, %v7653_v8 }
 0x224   :  { %v5280_v19 = vpop.f32.mrb[27].mxu0  ;;  %v5683_v22 = vpop.f32.mrb[27].mxu1 }
 0x225   :  { %v610_v21 = vadd.f32 %v5278_v15, %v7607_v37  ;;  %v884_v37 = vlaneseq }
 0x227   :  { %v7658_v24 = vadd.f32 %v697_v11, %v610_v21  ;;  %v885_v38 = vshrl.u32 %v884_v37, 7 }
 0x229   :  { %v730_v25 = vadd.f32 %v729_v23, %v7658_v24  ;;  %v7676_v39 = vsub.s32 0, %v885_v38 }
 0x22b   :  { %v731_v26 = vrot.slane %v730_v25, 4  ;;  %v7683_v41 = vrot.slane %v7679_v40, %v7676_v39 }
 0x22d   :  { %v732_v27 = vadd.f32 %v731_v26, %v730_v25 }
 0x22f   :  { %v733_v28 = vrot.slane %v732_v27, 2 }
 0x231   :  { %v734_v29 = vadd.f32 %v733_v28, %v732_v27 }
 0x233   :  { %v735_v31 = vrot.slane %v734_v29, 1 }
 0x235   :  { %v736_v32 = vadd.f32 %v735_v31, %v734_v29 }
 0x237   :  { %5717 = vmatmul.mubr.f32.vlgmr.msra.gmra.mrb[28].mxu0 %v736_v32 }
 0x30a   :  { %v803_v34 = vpop.f32.mrb[28].mxu0 }
 0x30b   :  { %v807_v35 = vmul.f32 0.000739645, %v803_v34  ;;  %v5718_v36 = vpop.f32.mrb[29].mxu0 }
 0x30d   :  { %815 = vrot.lane.b32.xlu1 %v807_v35, %s7223_s5  ;;  %809 = vrot.lane.b32.xlu0 %v807_v35, %s7224_s13 }
 0x311   :  { %818 = vrot.lane.b32.xlu1 %v807_v35, %s7225_s17  ;;  %812 = vrot.lane.b32.xlu0 %v807_v35, %s7226_s21 }
 0x315   :  { %824 = vrot.lane.b32.xlu1 %v807_v35, %s7227_s19  ;;  %821 = vrot.lane.b32.xlu0 %v807_v35, %s7228_s12 }
 0x319   :  { %830 = vrot.lane.b32.xlu1 %v807_v35, %s7214_s16  ;;  %827 = vrot.lane.b32.xlu0 %v807_v35, %s7229_s18 }
 0x31d   :  { %836 = vrot.lane.b32.xlu1 %v807_v35, %s7230_s22  ;;  %833 = vrot.lane.b32.xlu0 %v807_v35, %s7231_s23 }
 0x321   :  { %842 = vrot.lane.b32.xlu1 %v807_v35, %s7232_s26  ;;  %839 = vrot.lane.b32.xlu0 %v807_v35, %s7233_s9 }
 0x325   :  { %848 = vrot.lane.b32.xlu1 %v807_v35, %s7234_s28  ;;  %845 = vrot.lane.b32.xlu0 %v807_v35, %s7235_s1 }
 0x329   :  { %851 = vrot.lane.b32.xlu0 %v807_v35, %s7236_s20 }
 0x32d   :  { %1078 = vrot.lane.b32.xlu0 %v7683_v41, %s7224_s13 }
 0x331   :  { %1081 = vrot.lane.b32.xlu0 %v7683_v41, %s7226_s21 }
 0x335   :  { %1084 = vrot.lane.b32.xlu0 %v7683_v41, %s7223_s5 }
 0x339   :  { %1087 = vrot.lane.b32.xlu0 %v7683_v41, %s7225_s17 }
 0x33d   :  { %1090 = vrot.lane.b32.xlu0 %v7683_v41, %s7228_s12 }
 0x341   :  { %1093 = vrot.lane.b32.xlu0 %v7683_v41, %s7227_s19 }
 0x345   :  { %1096 = vrot.lane.b32.xlu0 %v7683_v41, %s7229_s18 }
 0x349   :  { %1099 = vrot.lane.b32.xlu0 %v7683_v41, %s7214_s16 }
 0x34d   :  { %1102 = vrot.lane.b32.xlu0 %v7683_v41, %s7231_s23 }
 0x351   :  { %1105 = vrot.lane.b32.xlu0 %v7683_v41, %s7230_s22 }
 0x37f   :  { %v816_v42 = vpop.permute.xlu1 %815  ;;  %v810_v43 = vpop.permute.xlu0 %809 }
 0x380   :  { %v855_v44 = vsel %vm854_vm1, %v807_v35, %v810_v43 }
 0x383   :  { %v819_v45 = vpop.permute.xlu1 %818  ;;  %v813_v46 = vpop.permute.xlu0 %812 }
 0x384   :  { %v857_v48 = vsel %vm856_vm2, %v855_v44, %v813_v46 }
 0x385   :  { %v859_v51 = vsel %vm858_vm3, %v857_v48, %v816_v42 }
 0x386   :  { %v861_v53 = vsel %vm860_vm4, %v859_v51, %v819_v45 }
 0x387   :  { %v825_v54 = vpop.permute.xlu1 %824  ;;  %v822_v55 = vpop.permute.xlu0 %821 }
 0x388   :  { %v863_v56 = vsel %vm862_vm5, %v861_v53, %v822_v55 }
 0x389   :  { %v865_v58 = vsel %vm864_vm6, %v863_v56, %v825_v54 }
 0x38b   :  { %v831_v57 = vpop.permute.xlu1 %830  ;;  %v828_v59 = vpop.permute.xlu0 %827 }
 0x38c   :  { %v867_v60 = vsel %vm866_vm7, %v865_v58, %v828_v59 }
 0x38d   :  { %v869_v1 = vsel %vm868_vm8, %v867_v60, %v831_v57 }
 0x38f   :  { %v837_v62 = vpop.permute.xlu1 %836  ;;  %v834_v2 = vpop.permute.xlu0 %833 }
 0x390   :  { %v871_v3 = vsel %vm870_vm9, %v869_v1, %v834_v2 }
 0x391   :  { %v873_v6 = vsel %vm872_vm10, %v871_v3, %v837_v62 }
 0x393   :  { %v843_v4 = vpop.permute.xlu1 %842  ;;  %v840_v7 = vpop.permute.xlu0 %839 }
 0x394   :  { %v875_v9 = vsel %vm874_vm11, %v873_v6, %v840_v7  ;;  %v1003_v6 = vld [vmem:[%s8884_s29] sm:$0x1]  ;;  %s8897_s29 = sld [smem:[#allocation43_spill]] }
 0x395   :  { %v877_v10 = vsel %vm876_vm12, %v875_v9, %v843_v4 }
 0x397   :  { %v846_v11 = vpop.permute.xlu0 %845  ;;  %v849_v14 = vpop.permute.xlu1 %848 }
 0x398   :  { %v879_v15 = vsel %vm878_vm13, %v877_v10, %v846_v11  ;;  %v6551_v11 = vld [vmem:[%s8885_s0 + $0x40] sm:$0xff]  }
 0x399   :  { %v881_v17 = vsel %vm880_vm14, %v879_v15, %v849_v14  ;;  %v6552_v14 = vld [vmem:[%s8885_s0 + $0x80] sm:$0xff]   ;;  %5331 = vmatprep.subr.bf16.mxu0 %v6551_v11 }
 0x39a   :  { %v6553_v15 = vld [vmem:[%s8885_s0] sm:$0xff]  }
 0x39b   :  { %v852_v18 = vpop.permute.xlu0 %851  ;;  %5332 = vmatpush3.bf16.msra.mxu0 %v6553_v15 }
 0x39c   :  { %v883_v19 = vsel %vm882_vm15, %v881_v17, %v852_v18  ;;  %v6554_v17 = vld [vmem:[%s8885_s0 + $0x48] sm:$0xff]  }
 0x39d   :  { %v887_v20 = vrot.slane %v883_v19, %v7676_v39  ;;  %v6555_v18 = vld [vmem:[%s8885_s0 + $0x88] sm:$0xff]   ;;  %5333 = vmatprep.subr.bf16.mxu0 %v6554_v17 }
 0x39e   :  { %v6556_v19 = vld [vmem:[%s8885_s0 + $0x8] sm:$0xff]  }
 0x39f   :  { %v7722_v21 = vsub.f32 %v7610_v47, %v887_v20  ;;  %v7725_v22 = vsub.f32 %v7613_v49, %v887_v20  ;;  %v7728_v23 = vsub.f32 %v7616_v61, %v887_v20  ;;  %v7735_v27 = vsub.f32 %v7619_v63, %v887_v20  ;;  %5334 = vmatpush3.bf16.msra.mxu0 %v6556_v19 }
 0x3a0   :  { %v7738_v28 = vsub.f32 %v7622_v13, %v887_v20  ;;  %v7743_v29 = vsub.f32 %v7627_v16, %v887_v20  ;;  %v7748_v32 = vsub.f32 %v7632_v30, %v887_v20  ;;  %v7753_v13 = vsub.f32 %v7636_v33, %v887_v20 }
 0x3a1   :  { %v901_v25 = vmul.f32 %v7722_v21, %v7722_v21  ;;  %v902_v26 = vmul.f32 %v7725_v22, %v7725_v22  ;;  %v903_v47 = vmul.f32 %v7728_v23, %v7728_v23  ;;  %v904_v61 = vmul.f32 %v7735_v27, %v7735_v27 }
 0x3a2   :  { %v905_v63 = vmul.f32 %v7738_v28, %v7738_v28  ;;  %v906_v35 = vmul.f32 %v7743_v29, %v7743_v29  ;;  %v7758_v16 = vsub.f32 %v7641_v50, %v887_v20  ;;  %v907_v37 = vmul.f32 %v7748_v32, %v7748_v32 }
 0x3a3   :  { %v914_v49 = vadd.f32 %v902_v26, %v901_v25  ;;  %v7763_v30 = vsub.f32 %v7644_v52, %v887_v20  ;;  %v908_v42 = vmul.f32 %v7753_v13, %v7753_v13  ;;  %v7768_v33 = vsub.f32 %v7649_v5, %v887_v20  ;;  %v6558_v25 = vld [vmem:[%s8885_s0 + $0x90] sm:$0xff]  }
 0x3a4   :  { %v909_v44 = vmul.f32 %v7758_v16, %v7758_v16  ;;  %v7773_v50 = vsub.f32 %v7653_v8, %v887_v20  ;;  %v7778_v52 = vsub.f32 %v7658_v24, %v887_v20  ;;  %v6557_v20 = vld [vmem:[%s8885_s0 + $0x50] sm:$0xff]  }
 0x3a5   :  { %v915_v31 = vadd.f32 %v914_v49, %v903_v47  ;;  %v910_v46 = vmul.f32 %v7763_v30, %v7763_v30  ;;  %v911_v51 = vmul.f32 %v7768_v33, %v7768_v33  ;;  %5335 = vmatprep.subr.bf16.mxu0 %v6557_v20  ;;  %v6559_v26 = vld [vmem:[%s8885_s0 + $0x10] sm:$0xff]   ;;  %v6560_v47 = vld [vmem:[%s8885_s0 + $0x58] sm:$0xff]  }
 0x3a6   :  { %v912_v5 = vmul.f32 %v7773_v50, %v7773_v50  ;;  %v913_v55 = vmul.f32 %v7778_v52, %v7778_v52  ;;  %v6561_v49 = vld [vmem:[%s8885_s0 + $0x98] sm:$0xff]   ;;  %5336 = vmatpush3.bf16.msra.mxu0 %v6559_v26 }
 0x3a7   :  { %v916_v34 = vadd.f32 %v915_v31, %v904_v61  ;;  %5337 = vmatprep.subr.bf16.mxu0 %v6560_v47  ;;  %v6562_v61 = vld [vmem:[%s8885_s0 + $0x18] sm:$0xff]   ;;  %v6563_v31 = vld [vmem:[%s8885_s0 + $0x60] sm:$0xff]  }
 0x3a9   :  { %v917_v36 = vadd.f32 %v916_v34, %v905_v63  ;;  %v6564_v63 = vld [vmem:[%s8885_s0 + $0xa0] sm:$0xff]  }
 0x3aa   :  { %5338 = vmatpush3.bf16.msra.mxu0 %v6562_v61  ;;  %v6565_v34 = vld [vmem:[%s8885_s0 + $0x20] sm:$0xff]  }
 0x3ab   :  { %v918_v38 = vadd.f32 %v917_v36, %v906_v35  ;;  %5339 = vmatprep.subr.bf16.mxu0 %v6563_v31  ;;  %v6566_v35 = vld [vmem:[%s8885_s0 + $0x68] sm:$0xff]  }
 0x3ac   :  { %v6567_v36 = vld [vmem:[%s8885_s0 + $0xa8] sm:$0xff]  }
 0x3ad   :  { %v919_v43 = vadd.f32 %v918_v38, %v907_v37  ;;  %v6568_v37 = vld [vmem:[%s8885_s0 + $0x28] sm:$0xff]   ;;  %v6569_v38 = vld [vmem:[%s8885_s0 + $0x70] sm:$0xff]  }
 0x3ae   :  { %5340 = vmatpush3.bf16.msra.mxu0 %v6565_v34 }
 0x3af   :  { %v920_v45 = vadd.f32 %v919_v43, %v908_v42  ;;  %5341 = vmatprep.subr.bf16.mxu0 %v6566_v35  ;;  %v6570_v42 = vld [vmem:[%s8885_s0 + $0xb0] sm:$0xff]  }
 0x3b0   :  { %v6571_v43 = vld [vmem:[%s8885_s0 + $0x30] sm:$0xff]  }
 0x3b1   :  { %v921_v48 = vadd.f32 %v920_v45, %v909_v44  ;;  %v6572_v44 = vld [vmem:[%s8885_s0 + $0x78] sm:$0xff]  }
 0x3b2   :  { %5342 = vmatpush3.bf16.msra.mxu0 %v6568_v37  ;;  %v6573_v45 = vld [vmem:[%s8885_s0 + $0xb8] sm:$0xff]  }
 0x3b3   :  { %v922_v53 = vadd.f32 %v921_v48, %v910_v46  ;;  %5343 = vmatprep.subr.bf16.mxu0 %v6569_v38  ;;  %v6574_v46 = vld [vmem:[%s8885_s0 + $0x38] sm:$0xff]   ;;  %v1079_v48 = vpop.permute.xlu0 %1078  ;;  %s8898_s0 = sld [smem:[#allocation44_spill]] }
 0x3b5   :  { %v923_v54 = vadd.f32 %v922_v53, %v911_v51 }
 0x3b6   :  { %5344 = vmatpush3.bf16.msra.mxu0 %v6571_v43 }
 0x3b7   :  { %v924_v8 = vadd.f32 %v923_v54, %v912_v5  ;;  %5345 = vmatprep.subr.bf16.mxu0 %v6572_v44  ;;  %v1082_v51 = vpop.permute.xlu0 %1081 }
 0x3b9   :  { %v925_v56 = vadd.f32 %v924_v8, %v913_v55 }
 0x3ba   :  { %5346 = vmatpush3.bf16.msra.mxu0 %v6574_v46 }
 0x3bb   :  { %v926_v57 = vrot.slane %v925_v56, 4  ;;  %6262 = vmatprep.subr.bf16.mxu0 %v7222_v12  ;;  %v1085_v53 = vpop.permute.xlu0 %1084 }
 0x3bd   :  { %v927_v58 = vadd.f32 %v926_v57, %v925_v56 }
 0x3bf   :  { %v928_v59 = vrot.slane %v927_v58, 2  ;;  %v1088_v5 = vpop.permute.xlu0 %1087 }
 0x3c1   :  { %v929_v60 = vadd.f32 %v928_v59, %v927_v58 }
 0x3c3   :  { %v930_v24 = vrot.slane %v929_v60, 1  ;;  %v1091_v54 = vpop.permute.xlu0 %1090 }
 0x3c5   :  { %v931_v62 = vadd.f32 %v930_v24, %v929_v60 }
 0x3c7   :  { %5752 = vmatmul.mubr.f32.vlgmr.msra.gmra.mrb[28].mxu1 %v931_v62  ;;  %v1094_v8 = vpop.permute.xlu0 %1093  ;;  %v1123_v62 = vsel %vm854_vm1, %v7679_v40, %v1079_v48 }
 0x3c8   :  { %5770 = vmatprep.mubr.msk.bf16.mxu1 %vm7221_vm0, %v7220_v0  ;;  %5755 = vmatpush3.bf16.msra.mxu1 %v6552_v14 }
 0x3c9   :  { %5756 = vmatprep.subr.bf16.mxu1 %v7220_v0 }
 0x3cb   :  { %v1097_v58 = vpop.permute.xlu0 %1096 }
 0x3cc   :  { %5757 = vmatpush3.bf16.msra.mxu1 %v6555_v18 }
 0x3cd   :  { %5758 = vmatprep.subr.bf16.mxu1 %v7220_v0 }
 0x3cf   :  { %v1100_v60 = vpop.permute.xlu0 %1099 }
 0x3d0   :  { %5759 = vmatpush3.bf16.msra.mxu1 %v6558_v25 }
 0x3d1   :  { %5760 = vmatprep.subr.bf16.mxu1 %v7220_v0 }
 0x3d4   :  { %5761 = vmatpush3.bf16.msra.mxu1 %v6561_v49 }
 0x3d5   :  { %5762 = vmatprep.subr.bf16.mxu1 %v7220_v0 }
 0x3d8   :  { %5763 = vmatpush3.bf16.msra.mxu1 %v6564_v63 }
 0x3d9   :  { %5764 = vmatprep.subr.bf16.mxu1 %v7220_v0 }
 0x3dc   :  { %5765 = vmatpush3.bf16.msra.mxu1 %v6567_v36 }
 0x3dd   :  { %5766 = vmatprep.subr.bf16.mxu1 %v7220_v0 }
 0x3e0   :  { %5767 = vmatpush3.bf16.msra.mxu1 %v6570_v42 }
 0x3e1   :  { %5768 = vmatprep.subr.bf16.mxu1 %v7220_v0 }
 0x3e4   :  { %5769 = vmatpush3.bf16.msra.mxu1 %v6573_v45 }
 0x3e5   :  { %6286 = vmatprep.subr.bf16.mxu1 %v7222_v12 }
 0x49a   :  { %v998_v1 = vpop.f32.mrb[28].mxu1 }
 0x49b   :  { %v1002_v2 = vmul.f32 0.000739645, %v998_v1  ;;  %v5753_v3 = vpop.f32.mrb[29].mxu1 }
 0x49d   :  { %v1004_v4 = vadd.f32 1e-05, %v1002_v2  ;;  %v1103_v2 = vpop.permute.xlu0 %1102 }
 0x49f   :  { %6743 = vrsqrt.f32 %v1004_v4 }
 0x4a9   :  { %v6744_v7 = vpop.eup %6743 }
 0x4aa   :  { %v7789_v9 = vmul.f32 %v6744_v7, %v1003_v6  ;;  %v1106_v6 = vpop.permute.xlu0 %1105 }
 0x4ac   :  { %v7793_v10 = vrot.slane %v7789_v9, %v7676_v39 }
 0x4ae   :  { %1015 = vrot.lane.b32.xlu0 %v7793_v10, %s7226_s21  ;;  %1012 = vrot.lane.b32.xlu1 %v7793_v10, %s7224_s13 }
 0x4b2   :  { %1018 = vrot.lane.b32.xlu1 %v7793_v10, %s7223_s5  ;;  %1108 = vrot.lane.b32.xlu0 %v7683_v41, %s7233_s9 }
 0x4b6   :  { %1021 = vrot.lane.b32.xlu1 %v7793_v10, %s7225_s17  ;;  %1111 = vrot.lane.b32.xlu0 %v7683_v41, %s7232_s26 }
 0x4ba   :  { %1024 = vrot.lane.b32.xlu1 %v7793_v10, %s7228_s12  ;;  %1114 = vrot.lane.b32.xlu0 %v7683_v41, %s7235_s1 }
 0x4be   :  { %1027 = vrot.lane.b32.xlu1 %v7793_v10, %s7227_s19  ;;  %1120 = vrot.lane.b32.xlu0 %v7683_v41, %s7236_s20 }
 0x4c2   :  { %1030 = vrot.lane.b32.xlu1 %v7793_v10, %s7229_s18 }
 0x4c6   :  { %1033 = vrot.lane.b32.xlu1 %v7793_v10, %s7214_s16 }
 0x4ca   :  { %1036 = vrot.lane.b32.xlu1 %v7793_v10, %s7231_s23 }
 0x4ce   :  { %1039 = vrot.lane.b32.xlu1 %v7793_v10, %s7230_s22 }
 0x4d2   :  { %1042 = vrot.lane.b32.xlu1 %v7793_v10, %s7233_s9 }
 0x4d6   :  { %1045 = vrot.lane.b32.xlu1 %v7793_v10, %s7232_s26 }
 0x4da   :  { %1048 = vrot.lane.b32.xlu1 %v7793_v10, %s7235_s1 }
 0x4de   :  { %1051 = vrot.lane.b32.xlu1 %v7793_v10, %s7234_s28 }
 0x4e2   :  { %1054 = vrot.lane.b32.xlu1 %v7793_v10, %s7236_s20 }
 0x4e6   :  { %1117 = vrot.lane.b32.xlu1 %v7683_v41, %s7234_s28  ;;  %v1124_v41 = vsel %vm856_vm2, %v1123_v62, %v1082_v51 }
 0x4e7   :  { %v1125_v4 = vsel %vm858_vm3, %v1124_v41, %v1085_v53 }
 0x4e8   :  { %v1126_v10 = vsel %vm860_vm4, %v1125_v4, %v1088_v5 }
 0x4e9   :  { %v1127_v11 = vsel %vm862_vm5, %v1126_v10, %v1091_v54 }
 0x4ea   :  { %v1128_v17 = vsel %vm864_vm6, %v1127_v11, %v1094_v8 }
 0x4eb   :  { %v1129_v19 = vsel %vm866_vm7, %v1128_v17, %v1097_v58 }
 0x4ec   :  { %v1130_v47 = vsel %vm868_vm8, %v1129_v19, %v1100_v60 }
 0x4ed   :  { %v1131_v63 = vsel %vm870_vm9, %v1130_v47, %v1103_v2 }
 0x4ee   :  { %v1132_v38 = vsel %vm872_vm10, %v1131_v63, %v1106_v6 }
 0x520   :  { %v1013_v55 = vpop.permute.xlu1 %1012  ;;  %v1016_v15 = vpop.permute.xlu0 %1015 }
 0x521   :  { %v1057_v40 = vsel %vm854_vm1, %v7789_v9, %v1013_v55 }
 0x522   :  { %v1058_v25 = vsel %vm856_vm2, %v1057_v40, %v1016_v15 }
 0x524   :  { %v1019_v56 = vpop.permute.xlu1 %1018  ;;  %v1109_v20 = vpop.permute.xlu0 %1108 }
 0x525   :  { %v1059_v49 = vsel %vm858_vm3, %v1058_v25, %v1019_v56  ;;  %v1133_v46 = vsel %vm874_vm11, %v1132_v38, %v1109_v20 }
 0x528   :  { %v1022_v57 = vpop.permute.xlu1 %1021  ;;  %v1112_v9 = vpop.permute.xlu0 %1111 }
 0x529   :  { %v1060_v61 = vsel %vm860_vm4, %v1059_v49, %v1022_v57  ;;  %v1134_v55 = vsel %vm876_vm12, %v1133_v46, %v1112_v9 }
 0x52c   :  { %v1025_v59 = vpop.permute.xlu1 %1024  ;;  %v1115_v51 = vpop.permute.xlu0 %1114 }
 0x52d   :  { %v1061_v31 = vsel %vm862_vm5, %v1060_v61, %v1025_v59  ;;  %v1135_v58 = vsel %vm878_vm13, %v1134_v55, %v1115_v51  ;;  %v1510_v55 = vld [vmem:[%s8886_s4 + $0x18] sm:$0xff] }
 0x530   :  { %v1028_v24 = vpop.permute.xlu1 %1027  ;;  %v1121_v57 = vpop.permute.xlu0 %1120 }
 0x531   :  { %v1062_v34 = vsel %vm864_vm6, %v1061_v31, %v1028_v24 }
 0x534   :  { %v1031_v1 = vpop.permute.xlu1 %1030 }
 0x535   :  { %v1063_v36 = vsel %vm866_vm7, %v1062_v34, %v1031_v1 }
 0x538   :  { %v1034_v3 = vpop.permute.xlu1 %1033 }
 0x539   :  { %v1064_v37 = vsel %vm868_vm8, %v1063_v36, %v1034_v3 }
 0x53c   :  { %v1037_v7 = vpop.permute.xlu1 %1036 }
 0x53d   :  { %v1065_v42 = vsel %vm870_vm9, %v1064_v37, %v1037_v7 }
 0x540   :  { %v1040_v14 = vpop.permute.xlu1 %1039 }
 0x541   :  { %v1066_v43 = vsel %vm872_vm10, %v1065_v42, %v1040_v14 }
 0x544   :  { %v1043_v18 = vpop.permute.xlu1 %1042 }
 0x545   :  { %v1067_v45 = vsel %vm874_vm11, %v1066_v43, %v1043_v18 }
 0x548   :  { %v1046_v26 = vpop.permute.xlu1 %1045 }
 0x549   :  { %v1068_v48 = vsel %vm876_vm12, %v1067_v45, %v1046_v26 }
 0x54c   :  { %v1049_v35 = vpop.permute.xlu1 %1048 }
 0x54d   :  { %v1069_v53 = vsel %vm878_vm13, %v1068_v48, %v1049_v35 }
 0x550   :  { %v1052_v44 = vpop.permute.xlu1 %1051 }
 0x551   :  { %v1070_v5 = vsel %vm880_vm14, %v1069_v53, %v1052_v44  ;;  %v1508_v53 = vld [vmem:[%s8886_s4 + $0x8] sm:$0xff] }
 0x554   :  { %v1055_v54 = vpop.permute.xlu1 %1054 }
 0x555   :  { %v1071_v8 = vsel %vm882_vm15, %v1070_v5, %v1055_v54  ;;  %v1509_v54 = vld [vmem:[%s8886_s4 + $0x10] sm:$0xff] }
 0x556   :  { %v1141_v56 = vrot.slane %v1071_v8, %v7676_v39  ;;  %v6266_v8 = vpack.c.bf16 %v1510_v55, %v1509_v54 }
 0x558   :  { %v1118_v59 = vpop.permute.xlu1 %1117  ;;  %v1143_v62 = vmul.f32 %v1141_v56, %v7725_v22  ;;  %v1145_v1 = vmul.f32 %v1141_v56, %v7735_v27  ;;  %v1144_v41 = vmul.f32 %v1141_v56, %v7728_v23  ;;  %v1146_v3 = vmul.f32 %v1141_v56, %v7738_v28 }
 0x559   :  { %v1136_v60 = vsel %vm880_vm14, %v1135_v58, %v1118_v59  ;;  %v1142_v4 = vmul.f32 %v1141_v56, %v7722_v21  ;;  %v1147_v6 = vmul.f32 %v1141_v56, %v7743_v29  ;;  %v1149_v7 = vmul.f32 %v1141_v56, %v7753_v13  ;;  %v1513_v59 = vld [vmem:[%s8886_s4 + $0x30] sm:$0xff] }
 0x55a   :  { %v1137_v24 = vsel %vm882_vm15, %v1136_v60, %v1121_v57  ;;  %v1148_v10 = vmul.f32 %v1141_v56, %v7748_v32  ;;  %v1150_v11 = vmul.f32 %v1141_v56, %v7758_v16  ;;  %v1151_v23 = vmul.f32 %v1141_v56, %v7763_v30  ;;  %v1512_v57 = vld [vmem:[%s8886_s4 + $0x28] sm:$0xff]  ;;  %v1514_v60 = vld [vmem:[%s8886_s4 + $0x38] sm:$0xff] }
 0x55b   :  { %v1158_v2 = vrot.slane %v1137_v24, %v7676_v39  ;;  %v1153_v32 = vmul.f32 %v1141_v56, %v7773_v50  ;;  %v1152_v50 = vmul.f32 %v1141_v56, %v7768_v33  ;;  %v1154_v37 = vmul.f32 %v1141_v56, %v7778_v52  ;;  %v1507_v52 = vld [vmem:[%s8886_s4] sm:$0xff] }
 0x55c   :  { %v6263_v5 = vpack.c.bf16 %v1508_v53, %v1507_v52  ;;  %v1511_v56 = vld [vmem:[%s8886_s4 + $0x20] sm:$0xff]  ;;  %v6272_v24 = vpack.c.bf16 %v1514_v60, %v1513_v59 }
 0x55d   :  { %v1160_v14 = vadd.f32 %v1158_v2, %v1143_v62  ;;  %v1162_v22 = vadd.f32 %v1158_v2, %v1145_v1  ;;  %v1161_v15 = vadd.f32 %v1158_v2, %v1144_v41  ;;  %v1163_v27 = vadd.f32 %v1158_v2, %v1146_v3  ;;  %v1515_v62 = vld [vmem:[%s8886_s4 + $0x40] sm:$0xff]  ;;  %v1516_v1 = vld [vmem:[%s8886_s4 + $0x48] sm:$0xff]  ;;  %v1517_v41 = vld [vmem:[%s8886_s4 + $0x50] sm:$0xff] }
 0x55e   :  { %v1159_v17 = vadd.f32 %v1158_v2, %v1142_v4  ;;  %v1164_v18 = vadd.f32 %v1158_v2, %v1147_v6  ;;  %v1166_v40 = vadd.f32 %v1158_v2, %v1149_v7  ;;  %v1165_v47 = vadd.f32 %v1158_v2, %v1148_v10  ;;  %v1518_v3 = vld [vmem:[%s8886_s4 + $0x58] sm:$0xff]  ;;  %v1519_v6 = vld [vmem:[%s8886_s4 + $0x60] sm:$0xff]  ;;  %v1520_v7 = vld [vmem:[%s8886_s4 + $0x68] sm:$0xff] }
 0x55f   :  { %v1173_v28 = vmax.f32 %v1160_v14, 0.0  ;;  %v1175_v19 = vmax.f32 %v1162_v22, 0.0  ;;  %v1174_v21 = vmax.f32 %v1161_v15, 0.0  ;;  %v1176_v20 = vmax.f32 %v1163_v27, 0.0  ;;  %v1521_v10 = vld [vmem:[%s8886_s4 + $0x70] sm:$0xff]  ;;  %v1522_v14 = vld [vmem:[%s8886_s4 + $0x78] sm:$0xff] }
 0x560   :  { %v1172_v29 = vmax.f32 %v1159_v17, 0.0  ;;  %v1177_v25 = vmax.f32 %v1164_v18, 0.0  ;;  %v1179_v13 = vmax.f32 %v1166_v40, 0.0  ;;  %v1167_v49 = vadd.f32 %v1158_v2, %v1150_v11  ;;  %v5018_v18 = vld [vmem:[#allocation2] ss:$0 sm:$0xff]  ;;  %s8899_s4 = sld [smem:[#allocation31_spill]] }
 0x561   :  { %v1188_v26 = vpack.c.bf16 %v1175_v19, %v1173_v28  ;;  %v1191_v16 = vpack.c.bf16 %v1176_v20, %v1174_v21  ;;  %v1168_v63 = vadd.f32 %v1158_v2, %v1151_v23  ;;  %v1170_v34 = vadd.f32 %v1158_v2, %v1153_v32 }
 0x562   :  { %v1185_v61 = vpack.c.bf16 %v1174_v21, %v1172_v29  ;;  %v1189_v31 = vpack.c.bf16 %v1179_v13, %v1177_v25  ;;  %v1178_v30 = vmax.f32 %v1165_v47, 0.0  ;;  %v1180_v35 = vmax.f32 %v1167_v49, 0.0 }
 0x563   :  { %1425 = vmatprep.mubr.bf16.mxu0 %v1188_v26  ;;  %5771 = vmatmul.mubr.bf16.vlgmr.msra.gmra.mrb[32].mxu1 %v1191_v16  ;;  %v1181_v9 = vmax.f32 %v1168_v63, 0.0  ;;  %v1183_v36 = vmax.f32 %v1170_v34, 0.0  ;;  %v1169_v42 = vadd.f32 %v1158_v2, %v1152_v50  ;;  %v1171_v43 = vadd.f32 %v1158_v2, %v1154_v37 }
 0x564   :  { %1426 = vmatmul.mubr.bf16.vlgmr.msra.gmra.mrb[32].mxu0 %v1185_v61  ;;  %5774 = vmatprep.mubr.msk.bf16.mxu1 %vm7221_vm0, %v7220_v0  ;;  %v1192_v38 = vpack.c.bf16 %v1180_v35, %v1178_v30  ;;  %v1186_v44 = vpack.c.bf16 %v1178_v30, %v1176_v20  ;;  %v6269_v58 = vpack.c.bf16 %v1512_v57, %v1511_v56 }
 0x565   :  { %1433 = vmatprep.mubr.bf16.mxu0 %v1189_v31  ;;  %v1190_v45 = vpack.c.bf16 %v1183_v36, %v1181_v9  ;;  %v1182_v46 = vmax.f32 %v1169_v42, 0.0  ;;  %v1184_v48 = vmax.f32 %v1171_v43, 0.0  ;;  %6264 = vmatpush3.bf16.msra.mxu0 %v6263_v5  ;;  %v6275_v2 = vpack.c.bf16 %v1516_v1, %v1515_v62 }
 0x566   :  { %6288 = vmatpush3.bf16.msra.mxu1 %v6263_v5  ;;  %6265 = vmatprep.subr.bf16.mxu0 %v7222_v12  ;;  %v6278_v4 = vpack.c.bf16 %v1518_v3, %v1517_v41  ;;  %v6281_v11 = vpack.c.bf16 %v1520_v7, %v1519_v6  ;;  %v6284_v22 = vpack.c.bf16 %v1522_v14, %v1521_v10 }
 0x567   :  { %v1193_v33 = vpack.c.bf16 %v1184_v48, %v1182_v46  ;;  %v1187_v51 = vpack.c.bf16 %v1182_v46, %v1180_v35  ;;  %6289 = vmatprep.subr.bf16.mxu1 %v7222_v12 }
 0x569   :  { %6267 = vmatpush3.bf16.msra.mxu0 %v6266_v8 }
 0x56a   :  { %6291 = vmatpush3.bf16.msra.mxu1 %v6266_v8  ;;  %6268 = vmatprep.subr.bf16.mxu0 %v7222_v12 }
 0x56b   :  { %5775 = vmatmul.mubr.bf16.gmra.mrb[36].mxu1 %v1192_v38  ;;  %6292 = vmatprep.subr.bf16.mxu1 %v7222_v12 }
 0x56c   :  { %1434 = vmatmul.mubr.bf16.gmra.mrb[36].mxu0 %v1186_v44  ;;  %5778 = vmatprep.mubr.msk.bf16.mxu1 %vm7221_vm0, %v7220_v0 }
 0x56d   :  { %1441 = vmatprep.mubr.bf16.mxu0 %v1190_v45  ;;  %6270 = vmatpush3.bf16.msra.mxu0 %v6269_v58 }
 0x56e   :  { %6294 = vmatpush3.bf16.msra.mxu1 %v6269_v58  ;;  %6271 = vmatprep.subr.bf16.mxu0 %v7222_v12 }
 0x56f   :  { %6295 = vmatprep.subr.bf16.mxu1 %v7222_v12 }
 0x571   :  { %6273 = vmatpush3.bf16.msra.mxu0 %v6272_v24 }
 0x572   :  { %6297 = vmatpush3.bf16.msra.mxu1 %v6272_v24  ;;  %6274 = vmatprep.subr.bf16.mxu0 %v7222_v12 }
 0x573   :  { %5779 = vmatmul.mubr.bf16.gmra.mrb[40].mxu1 %v1193_v33  ;;  %6298 = vmatprep.subr.bf16.mxu1 %v7222_v12 }
 0x574   :  { %1442 = vmatmul.mubr.bf16.gmra.mrb[40].mxu0 %v1187_v51  ;;  %5849 = vmatprep.mubr.msk.f32.mxu1 %vm7221_vm0, %v7220_v0 }
 0x575   :  { %5814 = vmatprep.mubr.msk.f32.mxu0 %vm7221_vm0, %v7220_v0  ;;  %6276 = vmatpush3.bf16.msra.mxu0 %v6275_v2 }
 0x576   :  { %6300 = vmatpush3.bf16.msra.mxu1 %v6275_v2  ;;  %6277 = vmatprep.subr.bf16.mxu0 %v7222_v12 }
 0x577   :  { %6301 = vmatprep.subr.bf16.mxu1 %v7222_v12 }
 0x579   :  { %6279 = vmatpush3.bf16.msra.mxu0 %v6278_v4 }
 0x57a   :  { %6303 = vmatpush3.bf16.msra.mxu1 %v6278_v4  ;;  %6280 = vmatprep.subr.bf16.mxu0 %v7222_v12 }
 0x57b   :  { %6304 = vmatprep.subr.bf16.mxu1 %v7222_v12 }
 0x57d   :  { %6282 = vmatpush3.bf16.msra.mxu0 %v6281_v11 }
 0x57e   :  { %6306 = vmatpush3.bf16.msra.mxu1 %v6281_v11  ;;  %6283 = vmatprep.subr.bf16.mxu0 %v7222_v12 }
 0x57f   :  { %6307 = vmatprep.subr.bf16.mxu1 %v7222_v12 }
 0x581   :  { %6285 = vmatpush3.bf16.msra.mxu0 %v6284_v22 }
 0x582   :  { %6309 = vmatpush3.bf16.msra.mxu1 %v6284_v22 }
 0x583   :  { %5852 = vmatprep.subr.bf16.mxu1 %v7220_v0 }
 0x636   :  { %v1484_v15 = vpop.f32.mrb[32].mxu1 }
 0x637   :  { %v5347_v27 = vpop.f32.mrb[32].mxu0  ;;  %v5772_v17 = vpop.f32.mrb[33].mxu1 }
 0x638   :  { %v5348_v40 = vpop.f32.mrb[33].mxu0  ;;  %v1487_v23 = vpop.f32.mrb[34].mxu1 }
 0x639   :  { %v5349_v28 = vadd.f32 %v5348_v40, %v5347_v27  ;;  %v5350_v19 = vpop.f32.mrb[34].mxu0  ;;  %v5773_v21 = vpop.f32.mrb[35].mxu1 }
 0x63a   :  { %v5351_v20 = vpop.f32.mrb[35].mxu0 }
 0x63b   :  { %v1428_v29 = vadd.f32 %v5349_v28, %v5018_v18  ;;  %v5352_v25 = vadd.f32 %v5351_v20, %v5350_v19 }
 0x63d   :  { %v7954_v13 = vadd.f32 %v1484_v15, %v1428_v29  ;;  %v1431_v32 = vadd.f32 %v5352_v25, %v5018_v18 }
 0x63e   :  { %v1492_v26 = vpop.f32.mrb[36].mxu1 }
 0x63f   :  { %v7956_v16 = vadd.f32 %v1487_v23, %v1431_v32  ;;  %v5353_v47 = vpop.f32.mrb[36].mxu0  ;;  %v5776_v49 = vpop.f32.mrb[37].mxu1 }
 0x640   :  { %v5354_v61 = vpop.f32.mrb[37].mxu0  ;;  %v1495_v31 = vpop.f32.mrb[38].mxu1 }
 0x641   :  { %v5355_v63 = vadd.f32 %v5354_v61, %v5353_v47  ;;  %v5356_v34 = vpop.f32.mrb[38].mxu0  ;;  %v5777_v30 = vpop.f32.mrb[39].mxu1  ;;  %v1523_v42 = vadd.f32 %v7956_v16, %v7954_v13 }
 0x642   :  { %v5357_v35 = vpop.f32.mrb[39].mxu0 }
 0x643   :  { %v1436_v9 = vadd.f32 %v5355_v63, %v5018_v18  ;;  %v5358_v36 = vadd.f32 %v5357_v35, %v5356_v34 }
 0x645   :  { %v1493_v50 = vadd.f32 %v1492_v26, %v1436_v9  ;;  %v1439_v37 = vadd.f32 %v5358_v36, %v5018_v18 }
 0x646   :  { %v1500_v38 = vpop.f32.mrb[40].mxu1 }
 0x647   :  { %v1496_v43 = vadd.f32 %v1495_v31, %v1439_v37  ;;  %v5359_v44 = vpop.f32.mrb[40].mxu0  ;;  %v5780_v45 = vpop.f32.mrb[41].mxu1  ;;  %v1524_v33 = vadd.f32 %v1523_v42, %v1493_v50 }
 0x648   :  { %v5360_v46 = vpop.f32.mrb[41].mxu0  ;;  %v1503_v48 = vpop.f32.mrb[42].mxu1 }
 0x649   :  { %v5361_v51 = vadd.f32 %v5360_v46, %v5359_v44  ;;  %v5362_v52 = vpop.f32.mrb[42].mxu0  ;;  %v5781_v53 = vpop.f32.mrb[43].mxu1  ;;  %v1525_v8 = vadd.f32 %v1524_v33, %v1496_v43 }
 0x64a   :  { %v5363_v5 = vpop.f32.mrb[43].mxu0 }
 0x64b   :  { %v1444_v54 = vadd.f32 %v5361_v51, %v5018_v18  ;;  %v5364_v55 = vadd.f32 %v5363_v5, %v5362_v52 }
 0x64d   :  { %v1501_v56 = vadd.f32 %v1500_v38, %v1444_v54  ;;  %v1447_v57 = vadd.f32 %v5364_v55, %v5018_v18  ;;  %v6575_v54 = vld [vmem:[%s8887_s2 + $0x40] sm:$0xff]  }
 0x64e   :  { %v6576_v55 = vld [vmem:[%s8887_s2 + $0x80] sm:$0xff]   ;;  %5410 = vmatprep.subr.bf16.mxu0 %v6575_v54 }
 0x64f   :  { %v1526_v58 = vadd.f32 %v1525_v8, %v1501_v56  ;;  %v1504_v59 = vadd.f32 %v1503_v48, %v1447_v57  ;;  %v7999_v48 = vld [vmem:[#allocation5] sm:$0x1]  ;;  %v6579_v57 = vld [vmem:[%s8887_s2 + $0x88] sm:$0xff]  }
 0x650   :  { %v8003_v33 = vrot.slane %v7999_v48, %v7676_v39  ;;  %v6577_v8 = vld [vmem:[%s8887_s2] sm:$0xff]  }
 0x651   :  { %v1527_v60 = vadd.f32 %v1526_v58, %v1504_v59  ;;  %v1732_v58 = vld [vmem:[%s8888_s27] sm:$0x1]  ;;  %s8901_s27 = sld [smem:[#allocation47_spill]] }
 0x653   :  { %v1528_v24 = vrot.slane %v1527_v60, 4 }
 0x655   :  { %v1529_v62 = vadd.f32 %v1528_v24, %v1527_v60  ;;  %v6580_v60 = vld [vmem:[%s8887_s2 + $0x8] sm:$0xff]   ;;  %v6581_v24 = vld [vmem:[%s8887_s2 + $0x50] sm:$0xff]  }
 0x657   :  { %v1530_v1 = vrot.slane %v1529_v62, 2 }
 0x659   :  { %v1531_v2 = vadd.f32 %v1530_v1, %v1529_v62  ;;  %v6582_v62 = vld [vmem:[%s8887_s2 + $0x90] sm:$0xff]  }
 0x65b   :  { %v1532_v41 = vrot.slane %v1531_v2, 1 }
 0x65d   :  { %v1533_v3 = vadd.f32 %v1532_v41, %v1531_v2  ;;  %v6583_v41 = vld [vmem:[%s8887_s2 + $0x10] sm:$0xff]  }
 0x65f   :  { %5815 = vmatmul.mubr.f32.vlgmr.msra.gmra.mrb[30].mxu0 %v1533_v3  ;;  %v6584_v3 = vld [vmem:[%s8887_s2 + $0x58] sm:$0xff]  }
 0x660   :  { %5411 = vmatpush3.bf16.msra.mxu0 %v6577_v8 }
 0x732   :  { %v1600_v4 = vpop.f32.mrb[30].mxu0 }
 0x733   :  { %v1604_v6 = vmul.f32 0.0034722222, %v1600_v4  ;;  %v5816_v7 = vpop.f32.mrb[31].mxu0  ;;  %v6585_v4 = vld [vmem:[%s8887_s2 + $0x98] sm:$0xff]  }
 0x734   :  { %v6587_v7 = vld [vmem:[%s8887_s2 + $0x60] sm:$0xff]  }
 0x735   :  { %1609 = vrot.lane.b32.xlu0 %v1604_v6, %s7225_s17  ;;  %1606 = vrot.lane.b32.xlu1 %v1604_v6, %s7226_s21 }
 0x739   :  { %1615 = vrot.lane.b32.xlu0 %v1604_v6, %s7214_s16  ;;  %1612 = vrot.lane.b32.xlu1 %v1604_v6, %s7227_s19 }
 0x73d   :  { %1621 = vrot.lane.b32.xlu0 %v1604_v6, %s7232_s26  ;;  %1618 = vrot.lane.b32.xlu1 %v1604_v6, %s7230_s22 }
 0x741   :  { %1624 = vrot.lane.b32.xlu1 %v1604_v6, %s7234_s28 }
 0x745   :  { %1775 = vrot.lane.b32.xlu1 %v8003_v33, %s7226_s21 }
 0x749   :  { %1778 = vrot.lane.b32.xlu1 %v8003_v33, %s7225_s17 }
 0x74d   :  { %1781 = vrot.lane.b32.xlu1 %v8003_v33, %s7227_s19 }
 0x751   :  { %1784 = vrot.lane.b32.xlu1 %v8003_v33, %s7214_s16 }
 0x7a7   :  { %v1610_v10 = vpop.permute.xlu0 %1609  ;;  %v1607_v11 = vpop.permute.xlu1 %1606 }
 0x7a8   :  { %v1627_v14 = vsel %vm856_vm2, %v1604_v6, %v1607_v11  ;;  %v6586_v6 = vld [vmem:[%s8887_s2 + $0x18] sm:$0xff]   ;;  %v6589_v11 = vld [vmem:[%s8887_s2 + $0x20] sm:$0xff]  }
 0x7a9   :  { %v1628_v15 = vsel %vm860_vm4, %v1627_v14, %v1610_v10  ;;  %v6588_v10 = vld [vmem:[%s8887_s2 + $0xa0] sm:$0xff]   ;;  %v6590_v14 = vld [vmem:[%s8887_s2 + $0x68] sm:$0xff]  }
 0x7ab   :  { %v1616_v22 = vpop.permute.xlu0 %1615  ;;  %v1613_v27 = vpop.permute.xlu1 %1612 }
 0x7ac   :  { %v1629_v17 = vsel %vm864_vm6, %v1628_v15, %v1613_v27  ;;  %v6592_v15 = vld [vmem:[%s8887_s2 + $0x28] sm:$0xff]   ;;  %v6593_v27 = vld [vmem:[%s8887_s2 + $0x70] sm:$0xff]  }
 0x7ad   :  { %v1630_v18 = vsel %vm868_vm8, %v1629_v17, %v1616_v22  ;;  %v6591_v22 = vld [vmem:[%s8887_s2 + $0xa8] sm:$0xff]   ;;  %v6594_v17 = vld [vmem:[%s8887_s2 + $0xb0] sm:$0xff]  }
 0x7af   :  { %v1619_v40 = vpop.permute.xlu1 %1618  ;;  %v1622_v23 = vpop.permute.xlu0 %1621 }
 0x7b0   :  { %v1631_v28 = vsel %vm872_vm10, %v1630_v18, %v1619_v40  ;;  %v6595_v18 = vld [vmem:[%s8887_s2 + $0x30] sm:$0xff]   ;;  %v6596_v40 = vld [vmem:[%s8887_s2 + $0x78] sm:$0xff]  }
 0x7b1   :  { %v1632_v19 = vsel %vm876_vm12, %v1631_v28, %v1622_v23  ;;  %v6597_v23 = vld [vmem:[%s8887_s2 + $0xb8] sm:$0xff]  }
 0x7b2   :  { %v6598_v28 = vld [vmem:[%s8887_s2 + $0x38] sm:$0xff]  }
 0x7b3   :  { %v1625_v21 = vpop.permute.xlu1 %1624 }
 0x7b4   :  { %v1633_v20 = vsel %vm880_vm14, %v1632_v19, %v1625_v21 }
 0x7b5   :  { %v1637_v29 = vrot.slane %v1633_v20, %v7676_v39 }
 0x7b7   :  { %v7976_v25 = vsub.f32 %v7954_v13, %v1637_v29  ;;  %v7979_v32 = vsub.f32 %v7956_v16, %v1637_v29  ;;  %v7981_v26 = vsub.f32 %v1493_v50, %v1637_v29  ;;  %v7983_v47 = vsub.f32 %v1496_v43, %v1637_v29  ;;  %v1776_v19 = vpop.permute.xlu1 %1775 }
 0x7b8   :  { %v7989_v31 = vsub.f32 %v1501_v56, %v1637_v29  ;;  %v1643_v34 = vsub.f32 %v1504_v59, %v1637_v29  ;;  %v6578_v56 = vld [vmem:[%s8887_s2 + $0x48] sm:$0xff]   ;;  %s8900_s2 = sld [smem:[#allocation46_spill]] }
 0x7b9   :  { %v1644_v49 = vmul.f32 %v7976_v25, %v7976_v25  ;;  %v1645_v61 = vmul.f32 %v7979_v32, %v7979_v32  ;;  %v1646_v63 = vmul.f32 %v7981_v26, %v7981_v26  ;;  %v1647_v16 = vmul.f32 %v7983_v47, %v7983_v47  ;;  %5412 = vmatprep.subr.bf16.mxu0 %v6578_v56 }
 0x7ba   :  { %v1648_v35 = vmul.f32 %v7989_v31, %v7989_v31  ;;  %v1649_v36 = vmul.f32 %v1643_v34, %v1643_v34  ;;  %5413 = vmatpush3.bf16.msra.mxu0 %v6580_v60 }
 0x7bb   :  { %v1650_v13 = vadd.f32 %v1645_v61, %v1644_v49  ;;  %5414 = vmatprep.subr.bf16.mxu0 %v6581_v24  ;;  %v1779_v21 = vpop.permute.xlu1 %1778 }
 0x7bd   :  { %v1651_v30 = vadd.f32 %v1650_v13, %v1646_v63  ;;  %v1796_v13 = vsel %vm856_vm2, %v7999_v48, %v1776_v19  ;;  %v2119_v19 = vld [vmem:[%s8889_s7 + $0x48] sm:$0xff] }
 0x7be   :  { %5415 = vmatpush3.bf16.msra.mxu0 %v6583_v41  ;;  %v2110_v41 = vld [vmem:[%s8889_s7] sm:$0xff] }
 0x7bf   :  { %v1652_v9 = vadd.f32 %v1651_v30, %v1647_v16  ;;  %5416 = vmatprep.subr.bf16.mxu0 %v6584_v3  ;;  %v1782_v29 = vpop.permute.xlu1 %1781  ;;  %v2111_v3 = vld [vmem:[%s8889_s7 + $0x8] sm:$0xff] }
 0x7c1   :  { %v1653_v50 = vadd.f32 %v1652_v9, %v1648_v35  ;;  %v1797_v35 = vsel %vm860_vm4, %v1796_v13, %v1779_v21 }
 0x7c2   :  { %5417 = vmatpush3.bf16.msra.mxu0 %v6586_v6 }
 0x7c3   :  { %v1654_v37 = vadd.f32 %v1653_v50, %v1649_v36  ;;  %5418 = vmatprep.subr.bf16.mxu0 %v6587_v7  ;;  %v1785_v61 = vpop.permute.xlu1 %1784 }
 0x7c5   :  { %v1655_v38 = vrot.slane %v1654_v37, 4 }
 0x7c6   :  { %5419 = vmatpush3.bf16.msra.mxu0 %v6589_v11  ;;  %v6311_v11 = vpack.c.bf16 %v2111_v3, %v2110_v41 }
 0x7c7   :  { %v1656_v42 = vadd.f32 %v1655_v38, %v1654_v37  ;;  %5420 = vmatprep.subr.bf16.mxu0 %v6590_v14  ;;  %v1798_v37 = vsel %vm864_vm6, %v1797_v35, %v1782_v29  ;;  %v2112_v14 = vld [vmem:[%s8889_s7 + $0x10] sm:$0xff]  ;;  %v2121_v29 = vld [vmem:[%s8889_s7 + $0x58] sm:$0xff] }
 0x7c9   :  { %v1657_v43 = vrot.slane %v1656_v42, 2 }
 0x7ca   :  { %5421 = vmatpush3.bf16.msra.mxu0 %v6592_v15  ;;  %v2114_v15 = vld [vmem:[%s8889_s7 + $0x20] sm:$0xff] }
 0x7cb   :  { %v1658_v44 = vadd.f32 %v1657_v43, %v1656_v42  ;;  %5422 = vmatprep.subr.bf16.mxu0 %v6593_v27  ;;  %v2115_v27 = vld [vmem:[%s8889_s7 + $0x28] sm:$0xff] }
 0x7cd   :  { %v1659_v45 = vrot.slane %v1658_v44, 1 }
 0x7ce   :  { %5423 = vmatpush3.bf16.msra.mxu0 %v6595_v18  ;;  %v2116_v18 = vld [vmem:[%s8889_s7 + $0x30] sm:$0xff] }
 0x7cf   :  { %v1660_v46 = vadd.f32 %v1659_v45, %v1658_v44  ;;  %5424 = vmatprep.subr.bf16.mxu0 %v6596_v40  ;;  %v2117_v40 = vld [vmem:[%s8889_s7 + $0x38] sm:$0xff] }
 0x7d1   :  { %5850 = vmatmul.mubr.f32.vlgmr.msra.gmra.mrb[30].mxu1 %v1660_v46  ;;  %v1799_v46 = vsel %vm868_vm8, %v1798_v37, %v1785_v61 }
 0x7d2   :  { %5868 = vmatprep.mubr.msk.bf16.mxu1 %vm7221_vm0, %v7220_v0  ;;  %5853 = vmatpush3.bf16.msra.mxu1 %v6576_v55 }
 0x7d3   :  { %5854 = vmatprep.subr.bf16.mxu1 %v7220_v0  ;;  %5425 = vmatpush3.bf16.msra.mxu0 %v6598_v28  ;;  %v2118_v28 = vld [vmem:[%s8889_s7 + $0x40] sm:$0xff] }
 0x7d4   :  { %6310 = vmatprep.subr.bf16.mxu0 %v7222_v12  ;;  %v6323_v21 = vpack.c.bf16 %v2119_v19, %v2118_v28  ;;  %v6603_v28 = vld [vmem:[%s8892_s15 + $0x48] sm:$0xff]  }
 0x7d5   :  { %v6604_v19 = vld [vmem:[%s8893_s30 + $0x48] sm:$0xff]  }
 0x7d6   :  { %5855 = vmatpush3.bf16.msra.mxu1 %v6579_v57 }
 0x7d7   :  { %5856 = vmatprep.subr.bf16.mxu1 %v7220_v0 }
 0x7da   :  { %5857 = vmatpush3.bf16.msra.mxu1 %v6582_v62 }
 0x7db   :  { %5858 = vmatprep.subr.bf16.mxu1 %v7220_v0 }
 0x7de   :  { %5859 = vmatpush3.bf16.msra.mxu1 %v6585_v4 }
 0x7df   :  { %5860 = vmatprep.subr.bf16.mxu1 %v7220_v0 }
 0x7e2   :  { %5861 = vmatpush3.bf16.msra.mxu1 %v6588_v10 }
 0x7e3   :  { %5862 = vmatprep.subr.bf16.mxu1 %v7220_v0 }
 0x7e6   :  { %5863 = vmatpush3.bf16.msra.mxu1 %v6591_v22 }
 0x7e7   :  { %5864 = vmatprep.subr.bf16.mxu1 %v7220_v0 }
 0x7ea   :  { %5865 = vmatpush3.bf16.msra.mxu1 %v6594_v17  ;;  %v6317_v17 = vpack.c.bf16 %v2115_v27, %v2114_v15  ;;  %v8138_v15 = vld [vmem:[%s8891_s11] sm:$0x1]  ;;  %s8904_s11 = sld [smem:[#allocation51_spill]] }
 0x7eb   :  { %5866 = vmatprep.subr.bf16.mxu1 %v7220_v0  ;;  %v8142_v27 = vrot.slane %v8138_v15, %v7676_v39 }
 0x7ee   :  { %5867 = vmatpush3.bf16.msra.mxu1 %v6597_v23  ;;  %v6320_v23 = vpack.c.bf16 %v2117_v40, %v2116_v18  ;;  %v6600_v18 = vld [vmem:[%s8893_s30 + $0x40] sm:$0xff]  }
 0x7ef   :  { %6334 = vmatprep.subr.bf16.mxu1 %v7222_v12  ;;  %v6601_v40 = vld [vmem:[%s8892_s15] sm:$0xff]  }
 0x8a4   :  { %v1727_v51 = vpop.f32.mrb[30].mxu1 }
 0x8a5   :  { %v1731_v52 = vmul.f32 0.0034722222, %v1727_v51  ;;  %v5851_v53 = vpop.f32.mrb[31].mxu1 }
 0x8a7   :  { %v1733_v5 = vadd.f32 1e-05, %v1731_v52 }
 0x8a9   :  { %6745 = vrsqrt.f32 %v1733_v5 }
 0x8b3   :  { %v6746_v59 = vpop.eup %6745 }
 0x8b4   :  { %v8024_v1 = vmul.f32 %v6746_v59, %v1732_v58 }
 0x8b6   :  { %v1740_v2 = vrot.slane %v8024_v1, %v7676_v39 }
 0x8b8   :  { %1744 = vrot.lane.b32.xlu1 %v1740_v2, %s7225_s17  ;;  %1741 = vrot.lane.b32.xlu0 %v1740_v2, %s7226_s21 }
 0x8bc   :  { %1747 = vrot.lane.b32.xlu0 %v1740_v2, %s7227_s19  ;;  %1787 = vrot.lane.b32.xlu1 %v8003_v33, %s7230_s22 }
 0x8c0   :  { %1750 = vrot.lane.b32.xlu0 %v1740_v2, %s7214_s16  ;;  %1793 = vrot.lane.b32.xlu1 %v8003_v33, %s7234_s28 }
 0x8c4   :  { %1753 = vrot.lane.b32.xlu0 %v1740_v2, %s7230_s22 }
 0x8c8   :  { %1756 = vrot.lane.b32.xlu0 %v1740_v2, %s7232_s26 }
 0x8cc   :  { %1759 = vrot.lane.b32.xlu0 %v1740_v2, %s7234_s28 }
 0x8d0   :  { %1790 = vrot.lane.b32.xlu0 %v8003_v33, %s7232_s26 }
 0x92a   :  { %v1742_v20 = vpop.permute.xlu0 %1741  ;;  %v1745_v30 = vpop.permute.xlu1 %1744 }
 0x92b   :  { %v1762_v34 = vsel %vm856_vm2, %v8024_v1, %v1742_v20  ;;  %v2120_v20 = vld [vmem:[%s8889_s7 + $0x50] sm:$0xff] }
 0x92c   :  { %v1763_v9 = vsel %vm860_vm4, %v1762_v34, %v1745_v30  ;;  %v6326_v61 = vpack.c.bf16 %v2121_v29, %v2120_v20  ;;  %v2125_v34 = vld [vmem:[%s8889_s7 + $0x78] sm:$0xff]  ;;  %v6606_v20 = vld [vmem:[%s8893_s30 + $0x8] sm:$0xff]   ;;  %v6607_v29 = vld [vmem:[%s8892_s15 + $0x50] sm:$0xff]  }
 0x92e   :  { %v1748_v49 = vpop.permute.xlu0 %1747  ;;  %v1788_v42 = vpop.permute.xlu1 %1787 }
 0x92f   :  { %v1764_v50 = vsel %vm864_vm6, %v1763_v9, %v1748_v49  ;;  %v1800_v52 = vsel %vm872_vm10, %v1799_v46, %v1788_v42  ;;  %v2122_v49 = vld [vmem:[%s8889_s7 + $0x60] sm:$0xff] }
 0x932   :  { %v1751_v63 = vpop.permute.xlu0 %1750  ;;  %v1794_v51 = vpop.permute.xlu1 %1793 }
 0x933   :  { %v1765_v38 = vsel %vm868_vm8, %v1764_v50, %v1751_v63  ;;  %v2123_v63 = vld [vmem:[%s8889_s7 + $0x68] sm:$0xff]  ;;  %v5043_v50 = vld [vmem:[%s8890_s10] ss:$0 sm:$0xff]  ;;  %s8903_s10 = sld [smem:[#allocation50_spill]] }
 0x934   :  { %v6329_v13 = vpack.c.bf16 %v2123_v63, %v2122_v49  ;;  %v6608_v49 = vld [vmem:[%s8893_s30 + $0x50] sm:$0xff]  }
 0x935   :  { %v6610_v63 = vld [vmem:[%s8893_s30 + $0x10] sm:$0xff]  }
 0x936   :  { %v1754_v16 = vpop.permute.xlu0 %1753 }
 0x937   :  { %v1766_v43 = vsel %vm872_vm10, %v1765_v38, %v1754_v16  ;;  %v2124_v16 = vld [vmem:[%s8889_s7 + $0x70] sm:$0xff] }
 0x938   :  { %v6332_v30 = vpack.c.bf16 %v2125_v34, %v2124_v16  ;;  %v6612_v16 = vld [vmem:[%s8893_s30 + $0x58] sm:$0xff]  }
 0x93a   :  { %v1757_v36 = vpop.permute.xlu0 %1756 }
 0x93b   :  { %v1767_v44 = vsel %vm876_vm12, %v1766_v43, %v1757_v36 }
 0x93e   :  { %v1760_v45 = vpop.permute.xlu0 %1759 }
 0x93f   :  { %v1768_v48 = vsel %vm880_vm14, %v1767_v44, %v1760_v45 }
 0x940   :  { %v1806_v33 = vrot.slane %v1768_v48, %v7676_v39 }
 0x942   :  { %v1791_v53 = vpop.permute.xlu0 %1790  ;;  %v1808_v55 = vmul.f32 %v1806_v33, %v7979_v32  ;;  %v1810_v56 = vmul.f32 %v1806_v33, %v7983_v47  ;;  %v1809_v57 = vmul.f32 %v1806_v33, %v7981_v26  ;;  %v1811_v58 = vmul.f32 %v1806_v33, %v7989_v31 }
 0x943   :  { %v1801_v5 = vsel %vm876_vm12, %v1800_v52, %v1791_v53  ;;  %v1807_v59 = vmul.f32 %v1806_v33, %v7976_v25  ;;  %v2113_v25 = vld [vmem:[%s8889_s7 + $0x18] sm:$0xff]  ;;  %s8902_s7 = sld [smem:[#allocation49_spill]] }
 0x944   :  { %v1802_v54 = vsel %vm880_vm14, %v1801_v5, %v1794_v51  ;;  %v6314_v22 = vpack.c.bf16 %v2113_v25, %v2112_v14 }
 0x945   :  { %v1815_v8 = vrot.slane %v1802_v54, %v7676_v39 }
 0x947   :  { %v1817_v60 = vadd.f32 %v1815_v8, %v1808_v55  ;;  %v1819_v24 = vadd.f32 %v1815_v8, %v1810_v56  ;;  %v1818_v62 = vadd.f32 %v1815_v8, %v1809_v57  ;;  %v1820_v1 = vadd.f32 %v1815_v8, %v1811_v58 }
 0x948   :  { %v1816_v2 = vadd.f32 %v1815_v8, %v1807_v59 }
 0x949   :  { %v1822_v32 = vmax.f32 %v1817_v60, 0.0  ;;  %v1824_v4 = vmax.f32 %v1819_v24, 0.0  ;;  %v1823_v6 = vmax.f32 %v1818_v62, 0.0  ;;  %v1825_v7 = vmax.f32 %v1820_v1, 0.0 }
 0x94a   :  { %v1821_v47 = vmax.f32 %v1816_v2, 0.0 }
 0x94b   :  { %v1827_v10 = vpack.c.bf16 %v1824_v4, %v1822_v32  ;;  %v1828_v26 = vpack.c.bf16 %v1825_v7, %v1823_v6 }
 0x94c   :  { %v1826_v31 = vpack.c.bf16 %v1823_v6, %v1821_v47 }
 0x94d   :  { %2060 = vmatprep.mubr.bf16.mxu0 %v1827_v10  ;;  %5869 = vmatmul.mubr.bf16.vlgmr.msra.gmra.mrb[44].mxu1 %v1828_v26 }
 0x94e   :  { %2061 = vmatmul.mubr.bf16.vlgmr.msra.gmra.mrb[44].mxu0 %v1826_v31  ;;  %6336 = vmatpush3.bf16.msra.mxu1 %v6311_v11 }
 0x94f   :  { %6312 = vmatpush3.bf16.msra.mxu0 %v6311_v11  ;;  %5904 = vmatprep.mubr.msk.f32.mxu0 %vm7221_vm0, %v7220_v0 }
 0x950   :  { %6313 = vmatprep.subr.bf16.mxu0 %v7222_v12  ;;  %6337 = vmatprep.subr.bf16.mxu1 %v7222_v12 }
 0x951   :  { %5939 = vmatprep.mubr.msk.f32.mxu1 %vm7221_vm0, %v7220_v0 }
 0x952   :  { %6339 = vmatpush3.bf16.msra.mxu1 %v6314_v22 }
 0x953   :  { %6315 = vmatpush3.bf16.msra.mxu0 %v6314_v22  ;;  %6340 = vmatprep.subr.bf16.mxu1 %v7222_v12 }
 0x954   :  { %6316 = vmatprep.subr.bf16.mxu0 %v7222_v12 }
 0x956   :  { %6342 = vmatpush3.bf16.msra.mxu1 %v6317_v17 }
 0x957   :  { %6318 = vmatpush3.bf16.msra.mxu0 %v6317_v17  ;;  %6343 = vmatprep.subr.bf16.mxu1 %v7222_v12  ;;  %v6599_v17 = vld [vmem:[%s8892_s15 + $0x40] sm:$0xff]  }
 0x958   :  { %6319 = vmatprep.subr.bf16.mxu0 %v7222_v12 }
 0x95a   :  { %6345 = vmatpush3.bf16.msra.mxu1 %v6320_v23 }
 0x95b   :  { %6321 = vmatpush3.bf16.msra.mxu0 %v6320_v23  ;;  %6346 = vmatprep.subr.bf16.mxu1 %v7222_v12  ;;  %v6602_v23 = vld [vmem:[%s8893_s30] sm:$0xff]  }
 0x95c   :  { %6322 = vmatprep.subr.bf16.mxu0 %v7222_v12 }
 0x95e   :  { %6348 = vmatpush3.bf16.msra.mxu1 %v6323_v21 }
 0x95f   :  { %6324 = vmatpush3.bf16.msra.mxu0 %v6323_v21  ;;  %6349 = vmatprep.subr.bf16.mxu1 %v7222_v12  ;;  %v6605_v21 = vld [vmem:[%s8892_s15 + $0x8] sm:$0xff]  }
 0x960   :  { %6325 = vmatprep.subr.bf16.mxu0 %v7222_v12 }
 0x962   :  { %6351 = vmatpush3.bf16.msra.mxu1 %v6326_v61 }
 0x963   :  { %6327 = vmatpush3.bf16.msra.mxu0 %v6326_v61  ;;  %6352 = vmatprep.subr.bf16.mxu1 %v7222_v12  ;;  %v6609_v61 = vld [vmem:[%s8892_s15 + $0x10] sm:$0xff]  }
 0x964   :  { %6328 = vmatprep.subr.bf16.mxu0 %v7222_v12 }
 0x966   :  { %6354 = vmatpush3.bf16.msra.mxu1 %v6329_v13 }
 0x967   :  { %6330 = vmatpush3.bf16.msra.mxu0 %v6329_v13  ;;  %6355 = vmatprep.subr.bf16.mxu1 %v7222_v12  ;;  %v6611_v13 = vld [vmem:[%s8892_s15 + $0x58] sm:$0xff]  }
 0x968   :  { %6331 = vmatprep.subr.bf16.mxu0 %v7222_v12 }
 0x96a   :  { %6357 = vmatpush3.bf16.msra.mxu1 %v6332_v30 }
 0x96b   :  { %6333 = vmatpush3.bf16.msra.mxu0 %v6332_v30  ;;  %5497 = vmatprep.subr.bf16.mxu1 %v6600_v18 }
 0x96c   :  { %5475 = vmatprep.subr.bf16.mxu0 %v6599_v17 }
 0xa20   :  { %v2103_v35 = vpop.f32.mrb[44].mxu1 }
 0xa21   :  { %v5426_v9 = vpop.f32.mrb[44].mxu0  ;;  %v5870_v36 = vpop.f32.mrb[45].mxu1 }
 0xa22   :  { %v5427_v37 = vpop.f32.mrb[45].mxu0  ;;  %v2106_v38 = vpop.f32.mrb[46].mxu1  ;;  %v6613_v36 = vld [vmem:[%s8892_s15 + $0x18] sm:$0xff]  }
 0xa23   :  { %v5428_v42 = vadd.f32 %v5427_v37, %v5426_v9  ;;  %v5429_v43 = vpop.f32.mrb[46].mxu0  ;;  %v5871_v44 = vpop.f32.mrb[47].mxu1  ;;  %v6615_v37 = vld [vmem:[%s8892_s15 + $0x60] sm:$0xff]  }
 0xa24   :  { %v5430_v45 = vpop.f32.mrb[47].mxu0  ;;  %v6618_v44 = vld [vmem:[%s8893_s30 + $0x20] sm:$0xff]  }
 0xa25   :  { %v2063_v46 = vadd.f32 %v5428_v42, %v5043_v50  ;;  %v5431_v48 = vadd.f32 %v5430_v45, %v5429_v43  ;;  %v2303_v42 = vld [vmem:[%s8894_s6] sm:$0x1]  ;;  %v6619_v45 = vld [vmem:[%s8892_s15 + $0x68] sm:$0xff]  }
 0xa26   :  { %v6617_v43 = vld [vmem:[%s8892_s15 + $0x20] sm:$0xff]  }
 0xa27   :  { %v2104_v33 = vadd.f32 %v2103_v35, %v2063_v46  ;;  %v2066_v51 = vadd.f32 %v5431_v48, %v5043_v50  ;;  %v6614_v50 = vld [vmem:[%s8893_s30 + $0x18] sm:$0xff]   ;;  %v6620_v48 = vld [vmem:[%s8893_s30 + $0x68] sm:$0xff]  }
 0xa29   :  { %v2107_v52 = vadd.f32 %v2106_v38, %v2066_v51  ;;  %v6616_v38 = vld [vmem:[%s8893_s30 + $0x60] sm:$0xff]   ;;  %v6621_v51 = vld [vmem:[%s8892_s15 + $0x28] sm:$0xff]  }
 0xa2b   :  { %v2126_v53 = vadd.f32 %v2107_v52, %v2104_v33 }
 0xa2d   :  { %v2127_v5 = vrot.slane %v2126_v53, 4 }
 0xa2f   :  { %v2128_v54 = vadd.f32 %v2127_v5, %v2126_v53  ;;  %v6623_v5 = vld [vmem:[%s8892_s15 + $0x70] sm:$0xff]  }
 0xa31   :  { %v2129_v55 = vrot.slane %v2128_v54, 2 }
 0xa33   :  { %v2130_v8 = vadd.f32 %v2129_v55, %v2128_v54  ;;  %v6624_v54 = vld [vmem:[%s8893_s30 + $0x70] sm:$0xff]  }
 0xa34   :  { %v6625_v55 = vld [vmem:[%s8892_s15 + $0x30] sm:$0xff]  }
 0xa35   :  { %v2131_v56 = vrot.slane %v2130_v8, 1 }
 0xa37   :  { %v2132_v57 = vadd.f32 %v2131_v56, %v2130_v8  ;;  %v6626_v8 = vld [vmem:[%s8893_s30 + $0x30] sm:$0xff]   ;;  %v6627_v56 = vld [vmem:[%s8892_s15 + $0x78] sm:$0xff]  }
 0xa39   :  { %5905 = vmatmul.mubr.f32.vlgmr.msra.gmra.mrb[48].mxu0 %v2132_v57  ;;  %v6628_v57 = vld [vmem:[%s8893_s30 + $0x78] sm:$0xff]  }
 0xa3a   :  { %5476 = vmatpush3.bf16.msra.mxu0 %v6601_v40 }
 0xa3b   :  { %5477 = vmatprep.subr.bf16.mxu0 %v6603_v28  ;;  %v6631_v28 = vld [vmem:[%s8895_s24] sm:$0xff]  }
 0xa3e   :  { %5478 = vmatpush3.bf16.msra.mxu0 %v6605_v21  ;;  %v6636_v21 = vld [vmem:[#allocation7 + $0x10] sm:$0xff]  }
 0xa3f   :  { %5479 = vmatprep.subr.bf16.mxu0 %v6607_v29  ;;  %v6638_v29 = vld [vmem:[#allocation7 + $0x18] sm:$0xff]  }
 0xa42   :  { %5480 = vmatpush3.bf16.msra.mxu0 %v6609_v61  ;;  %v6640_v61 = vld [vmem:[#allocation7 + $0x20] sm:$0xff]  }
 0xa43   :  { %5481 = vmatprep.subr.bf16.mxu0 %v6611_v13  ;;  %v6642_v13 = vld [vmem:[#allocation7 + $0x28] sm:$0xff]  }
 0xa46   :  { %5482 = vmatpush3.bf16.msra.mxu0 %v6613_v36 }
 0xa47   :  { %5483 = vmatprep.subr.bf16.mxu0 %v6615_v37  ;;  %v5068_v37 = vld [vmem:[%s8897_s29] ss:$0 sm:$0xff] }
 0xa4a   :  { %5484 = vmatpush3.bf16.msra.mxu0 %v6617_v43 }
 0xa4b   :  { %5485 = vmatprep.subr.bf16.mxu0 %v6619_v45 }
 0xa4e   :  { %5486 = vmatpush3.bf16.msra.mxu0 %v6621_v51 }
 0xa4f   :  { %5487 = vmatprep.subr.bf16.mxu0 %v6623_v5 }
 0xa52   :  { %5488 = vmatpush3.bf16.msra.mxu0 %v6625_v55  ;;  %v5102_v55 = vld [vmem:[%s8899_s4] ss:$0 sm:$0xff] }
 0xa53   :  { %5489 = vmatprep.subr.bf16.mxu0 %v6627_v56 }
 0xb0c   :  { %v2199_v58 = vpop.f32.mrb[48].mxu0 }
 0xb0d   :  { %v2203_v59 = vmul.f32 0.03125, %v2199_v58  ;;  %v5906_v60 = vpop.f32.mrb[49].mxu0  ;;  %v6629_v58 = vld [vmem:[%s8892_s15 + $0x38] sm:$0xff]   ;;  %s8905_s15 = sld [smem:[#allocation52_spill]] }
 0xb0e   :  { %5490 = vmatpush3.bf16.msra.mxu0 %v6629_v58  ;;  %v6647_v58 = vld [vmem:[%s8896_s8] ss:$12 sps:$4 sm:$0xff]  }
 0xb0f   :  { %2208 = vrot.lane.b32.xlu1 %v2203_v59, %s7214_s16  ;;  %2205 = vrot.lane.b32.xlu0 %v2203_v59, %s7225_s17 }
 0xb10   :  { %5942 = vmatprep.subr.bf16.mxu0 %v7220_v0 }
 0xb13   :  { %2211 = vrot.lane.b32.xlu0 %v2203_v59, %s7232_s26 }
 0xb17   :  { %2330 = vrot.lane.b32.xlu0 %v8142_v27, %s7225_s17 }
 0xb81   :  { %v2206_v24 = vpop.permute.xlu0 %2205  ;;  %v2209_v62 = vpop.permute.xlu1 %2208 }
 0xb82   :  { %v2214_v1 = vsel %vm860_vm4, %v2203_v59, %v2206_v24  ;;  %v6630_v59 = vld [vmem:[%s8893_s30 + $0x38] sm:$0xff]  }
 0xb83   :  { %v2215_v2 = vsel %vm868_vm8, %v2214_v1, %v2209_v62 }
 0xb85   :  { %v2212_v41 = vpop.permute.xlu0 %2211 }
 0xb86   :  { %v2216_v3 = vsel %vm876_vm12, %v2215_v2, %v2212_v41 }
 0xb87   :  { %v2220_v32 = vrot.slane %v2216_v3, %v7676_v39 }
 0xb89   :  { %v8129_v4 = vsub.f32 %v2104_v33, %v2220_v32  ;;  %v8131_v6 = vsub.f32 %v2107_v52, %v2220_v32  ;;  %v6622_v52 = vld [vmem:[%s8893_s30 + $0x28] sm:$0xff]   ;;  %v2331_v60 = vpop.permute.xlu0 %2330 }
 0xb8b   :  { %v2223_v7 = vmul.f32 %v8129_v4, %v8129_v4  ;;  %v2224_v47 = vmul.f32 %v8131_v6, %v8131_v6 }
 0xb8d   :  { %v2225_v10 = vadd.f32 %v2224_v47, %v2223_v7  ;;  %v2339_v47 = vsel %vm860_vm4, %v8138_v15, %v2331_v60  ;;  %v6632_v15 = vld [vmem:[#allocation7] sm:$0xff]  }
 0xb8f   :  { %v2226_v26 = vrot.slane %v2225_v10, 4 }
 0xb91   :  { %v2227_v11 = vadd.f32 %v2226_v26, %v2225_v10 }
 0xb93   :  { %v2228_v31 = vrot.slane %v2227_v11, 2 }
 0xb95   :  { %v2229_v14 = vadd.f32 %v2228_v31, %v2227_v11 }
 0xb97   :  { %v2230_v25 = vrot.slane %v2229_v14, 1 }
 0xb99   :  { %v2231_v22 = vadd.f32 %v2230_v25, %v2229_v14 }
 0xb9b   :  { %5940 = vmatmul.mubr.f32.vlgmr.msra.gmra.mrb[48].mxu1 %v2231_v22 }
 0xb9c   :  { %5498 = vmatpush3.bf16.msra.mxu1 %v6602_v23 }
 0xb9d   :  { %5499 = vmatprep.subr.bf16.mxu1 %v6604_v19  ;;  %v6635_v19 = vld [vmem:[%s8895_s24 + $0x10] sm:$0xff]  }
 0xba0   :  { %5500 = vmatpush3.bf16.msra.mxu1 %v6606_v20  ;;  %v6637_v20 = vld [vmem:[%s8895_s24 + $0x18] sm:$0xff]  }
 0xba1   :  { %5501 = vmatprep.subr.bf16.mxu1 %v6608_v49  ;;  %v6639_v49 = vld [vmem:[%s8895_s24 + $0x20] sm:$0xff]  }
 0xba4   :  { %5502 = vmatpush3.bf16.msra.mxu1 %v6610_v63  ;;  %v6641_v63 = vld [vmem:[%s8895_s24 + $0x28] sm:$0xff]  }
 0xba5   :  { %5503 = vmatprep.subr.bf16.mxu1 %v6612_v16  ;;  %v6643_v16 = vld [vmem:[%s8895_s24 + $0x30] sm:$0xff]  }
 0xba8   :  { %5504 = vmatpush3.bf16.msra.mxu1 %v6614_v50 }
 0xba9   :  { %5505 = vmatprep.subr.bf16.mxu1 %v6616_v38 }
 0xbac   :  { %5506 = vmatpush3.bf16.msra.mxu1 %v6618_v44 }
 0xbad   :  { %5507 = vmatprep.subr.bf16.mxu1 %v6620_v48 }
 0xbb0   :  { %5508 = vmatpush3.bf16.msra.mxu1 %v6622_v52 }
 0xbb1   :  { %5509 = vmatprep.subr.bf16.mxu1 %v6624_v54 }
 0xbb4   :  { %5510 = vmatpush3.bf16.msra.mxu1 %v6626_v8 }
 0xbb5   :  { %5511 = vmatprep.subr.bf16.mxu1 %v6628_v57 }
 0xbb8   :  { %5512 = vmatpush3.bf16.msra.mxu1 %v6630_v59  ;;  %v6650_v59 = vld [vmem:[%s8896_s8 + $0x8] ss:$12 sps:$4 sm:$0xff]  }
 0xbb9   :  { %5962 = vmatprep.subr.bf16.mxu1 %v7220_v0 }
 0xc6e   :  { %v2298_v34 = vpop.f32.mrb[48].mxu1 }
 0xc6f   :  { %v2302_v30 = vmul.f32 0.03125, %v2298_v34  ;;  %v5941_v35 = vpop.f32.mrb[49].mxu1  ;;  %v6644_v34 = vld [vmem:[#allocation7 + $0x30] sm:$0xff]  }
 0xc70   :  { %v6646_v35 = vld [vmem:[#allocation7 + $0x38] sm:$0xff]  }
 0xc71   :  { %v2304_v9 = vadd.f32 1e-05, %v2302_v30  ;;  %v6645_v30 = vld [vmem:[%s8895_s24 + $0x38] sm:$0xff]  }
 0xc73   :  { %6747 = vrsqrt.f32 %v2304_v9  ;;  %v6649_v9 = vld [vmem:[%s8896_s8 + $0x4] ss:$12 sps:$4 sm:$0xff]  }
 0xc7d   :  { %v6748_v46 = vpop.eup %6747 }
 0xc7e   :  { %v2306_v33 = vmul.f32 %v6748_v46, %v2303_v42  ;;  %v5085_v42 = vld [vmem:[%s8898_s0] ss:$0 sm:$0xff] }
 0xc80   :  { %v2311_v53 = vrot.slane %v2306_v33, %v7676_v39 }
 0xc82   :  { %2315 = vrot.lane.b32.xlu0 %v2311_v53, %s7214_s16  ;;  %2312 = vrot.lane.b32.xlu1 %v2311_v53, %s7225_s17 }
 0xc86   :  { %2318 = vrot.lane.b32.xlu1 %v2311_v53, %s7232_s26  ;;  %2336 = vrot.lane.b32.xlu0 %v8142_v27, %s7232_s26 }
 0xc8a   :  { %2333 = vrot.lane.b32.xlu1 %v8142_v27, %s7214_s16 }
 0xcf4   :  { %v2313_v24 = vpop.permute.xlu1 %2312  ;;  %v2316_v1 = vpop.permute.xlu0 %2315 }
 0xcf5   :  { %v2321_v62 = vsel %vm860_vm4, %v2306_v33, %v2313_v24  ;;  %v6653_v24 = vld [vmem:[%s8896_s8 + $0x1c] ss:$12 sps:$4 sm:$0xff]  }
 0xcf6   :  { %v2322_v2 = vsel %vm868_vm8, %v2321_v62, %v2316_v1  ;;  %v6651_v62 = vld [vmem:[%s8896_s8 + $0x18] ss:$12 sps:$4 sm:$0xff]   ;;  %v6654_v1 = vld [vmem:[%s8896_s8 + $0x20] ss:$12 sps:$4 sm:$0xff]  }
 0xcf8   :  { %v2319_v41 = vpop.permute.xlu1 %2318  ;;  %v2337_v7 = vpop.permute.xlu0 %2336 }
 0xcf9   :  { %v2323_v3 = vsel %vm876_vm12, %v2322_v2, %v2319_v41  ;;  %v6657_v2 = vld [vmem:[%s8896_s8 + $0x34] ss:$12 sps:$4 sm:$0xff]   ;;  %v6655_v41 = vld [vmem:[%s8896_s8 + $0x30] ss:$12 sps:$4 sm:$0xff]  }
 0xcfa   :  { %v2345_v32 = vrot.slane %v2323_v3, %v7676_v39  ;;  %v6658_v3 = vld [vmem:[%s8896_s8 + $0x38] ss:$12 sps:$4 sm:$0xff]  }
 0xcfc   :  { %v2334_v10 = vpop.permute.xlu1 %2333  ;;  %v2346_v31 = vmul.f32 %v2345_v32, %v8129_v4  ;;  %v2347_v14 = vmul.f32 %v2345_v32, %v8131_v6  ;;  %v6633_v4 = vld [vmem:[%s8895_s24 + $0x8] sm:$0xff]  }
 0xcfd   :  { %v2340_v26 = vsel %vm868_vm8, %v2339_v47, %v2334_v10  ;;  %v6634_v6 = vld [vmem:[#allocation7 + $0x8] sm:$0xff]  }
 0xcfe   :  { %v2341_v11 = vsel %vm876_vm12, %v2340_v26, %v2337_v7  ;;  %v6661_v32 = vld [vmem:[%s8896_s8 + $0x4c] ss:$12 sps:$4 sm:$0xff]   ;;  %v6659_v7 = vld [vmem:[%s8896_s8 + $0x48] ss:$12 sps:$4 sm:$0xff]   ;;  %v6662_v47 = vld [vmem:[%s8896_s8 + $0x50] ss:$12 sps:$4 sm:$0xff]  }
 0xcff   :  { %v2351_v25 = vrot.slane %v2341_v11, %v7676_v39  ;;  %v6665_v10 = vld [vmem:[%s8896_s8 + $0x64] ss:$12 sps:$4 sm:$0xff]   ;;  %v6663_v26 = vld [vmem:[%s8896_s8 + $0x60] ss:$12 sps:$4 sm:$0xff]   ;;  %v6666_v11 = vld [vmem:[%s8896_s8 + $0x68] ss:$12 sps:$4 sm:$0xff]  }
 0xd01   :  { %v2352_v22 = vadd.f32 %v2351_v25, %v2346_v31  ;;  %v2353_v27 = vadd.f32 %v2351_v25, %v2347_v14  ;;  %v6669_v31 = vld [vmem:[%s8896_s8 + $0x7c] ss:$12 sps:$4 sm:$0xff]   ;;  %v6667_v14 = vld [vmem:[%s8896_s8 + $0x78] ss:$12 sps:$4 sm:$0xff]   ;;  %v6670_v25 = vld [vmem:[%s8896_s8 + $0x80] ss:$12 sps:$4 sm:$0xff]  }
 0xd03   :  { %v2354_v17 = vmax.f32 %v2352_v22, 0.0  ;;  %v2355_v18 = vmax.f32 %v2353_v27, 0.0  ;;  %v6673_v22 = vld [vmem:[%s8896_s8 + $0x94] ss:$12 sps:$4 sm:$0xff]   ;;  %v6671_v27 = vld [vmem:[%s8896_s8 + $0x90] ss:$12 sps:$4 sm:$0xff]  }
 0xd05   :  { %v2356_v40 = vpack.c.bf16 %v2354_v17, %v2354_v17  ;;  %v2357_v23 = vpack.c.bf16 %v2355_v18, %v2355_v18  ;;  %v6674_v17 = vld [vmem:[%s8896_s8 + $0x98] ss:$12 sps:$4 sm:$0xff]   ;;  %v6675_v18 = vld [vmem:[%s8896_s8 + $0xa8] ss:$12 sps:$4 sm:$0xff]  }
 0xd07   :  { %2525 = vmatprep.mubr.bf16.mxu0 %v2357_v23  ;;  %2700 = vmatprep.mubr.bf16.mxu1 %v2357_v23  ;;  %v6678_v23 = vld [vmem:[%s8896_s8 + $0xb0] ss:$12 sps:$4 sm:$0xff]  }
 0xd08   :  { %2526 = vmatmul.mubr.bf16.vlgmr.msra.gmra.mrb[52].mxu0 %v2356_v40  ;;  %2701 = vmatmul.mubr.bf16.vlgmr.msra.gmra.mrb[52].mxu1 %v2356_v40  ;;  %v6677_v40 = vld [vmem:[%s8896_s8 + $0xac] ss:$12 sps:$4 sm:$0xff]  }
 0xd09   :  { %5943 = vmatpush3.bf16.msra.mxu0 %v6631_v28  ;;  %5963 = vmatpush3.bf16.msra.mxu1 %v6632_v15  ;;  %v7237_v28 = vmov 0   ;;  %v5103_v15 = vld [vmem:[%s8900_s2] ss:$0 sm:$0xff] }
 0xd0a   :  { %5944 = vmatprep.subr.bf16.mxu0 %v7220_v0  ;;  %5964 = vmatprep.subr.bf16.mxu1 %v7220_v0 }
 0xd0b   :  { %5958 = vmatprep.mubr.msk.bf16.mxu0 %vm7221_vm0, %v7220_v0  ;;  %5978 = vmatprep.mubr.msk.bf16.mxu1 %vm7221_vm0, %v7220_v0 }
 0xd0d   :  { %5945 = vmatpush3.bf16.msra.mxu0 %v6633_v4  ;;  %5965 = vmatpush3.bf16.msra.mxu1 %v6634_v6  ;;  %v5112_v4 = vld [vmem:[%s8901_s27] ss:$0 sm:$0xff] }
 0xd0e   :  { %5946 = vmatprep.subr.bf16.mxu0 %v7220_v0  ;;  %5966 = vmatprep.subr.bf16.mxu1 %v7220_v0 }
 0xd11   :  { %5947 = vmatpush3.bf16.msra.mxu0 %v6635_v19  ;;  %5967 = vmatpush3.bf16.msra.mxu1 %v6636_v21 }
 0xd12   :  { %5948 = vmatprep.subr.bf16.mxu0 %v7220_v0  ;;  %5968 = vmatprep.subr.bf16.mxu1 %v7220_v0 }
 0xd15   :  { %5949 = vmatpush3.bf16.msra.mxu0 %v6637_v20  ;;  %5969 = vmatpush3.bf16.msra.mxu1 %v6638_v29 }
 0xd16   :  { %5950 = vmatprep.subr.bf16.mxu0 %v7220_v0  ;;  %5970 = vmatprep.subr.bf16.mxu1 %v7220_v0 }
 0xd19   :  { %5951 = vmatpush3.bf16.msra.mxu0 %v6639_v49  ;;  %5971 = vmatpush3.bf16.msra.mxu1 %v6640_v61  ;;  %v3205_v61 = vld [vmem:[%s8902_s7] sm:$0xff] }
 0xd1a   :  { %5952 = vmatprep.subr.bf16.mxu0 %v7220_v0  ;;  %5972 = vmatprep.subr.bf16.mxu1 %v7220_v0 }
 0xd1d   :  { %5953 = vmatpush3.bf16.msra.mxu0 %v6641_v63  ;;  %5973 = vmatpush3.bf16.msra.mxu1 %v6642_v13  ;;  %v3206_v63 = vld [vmem:[%s8902_s7 + $0x8] sm:$0xff] }
 0xd1e   :  { %5954 = vmatprep.subr.bf16.mxu0 %v7220_v0  ;;  %5974 = vmatprep.subr.bf16.mxu1 %v7220_v0 }
 0xd21   :  { %5955 = vmatpush3.bf16.msra.mxu0 %v6643_v16  ;;  %5975 = vmatpush3.bf16.msra.mxu1 %v6644_v34 }
 0xd22   :  { %5956 = vmatprep.subr.bf16.mxu0 %v7220_v0  ;;  %5976 = vmatprep.subr.bf16.mxu1 %v7220_v0 }
 0xd25   :  { %5957 = vmatpush3.bf16.msra.mxu0 %v6645_v30  ;;  %5977 = vmatpush3.bf16.msra.mxu1 %v6646_v35 }
 0xd26   :  { %3108 = vmatprep.subr.bf16.mxu0 %v6649_v9  ;;  %5982 = vmatprep.subr.bf16.mxu1 %v7220_v0 }
 0xddb   :  { %v5491_v36 = vpop.f32.mrb[52].mxu0  ;;  %v5513_v50 = vpop.f32.mrb[52].mxu1 }
 0xddc   :  { %v5492_v38 = vpop.f32.mrb[53].mxu0  ;;  %v5514_v43 = vpop.f32.mrb[53].mxu1 }
 0xddd   :  { %v5493_v44 = vadd.f32 %v5492_v38, %v5491_v36  ;;  %v5515_v45 = vadd.f32 %v5514_v43, %v5513_v50  ;;  %v5494_v46 = vpop.f32.mrb[54].mxu0  ;;  %v5516_v48 = vpop.f32.mrb[54].mxu1  ;;  %v6359_v36 = vpack.c.bf16 %v3206_v63, %v3205_v61  ;;  %v3208_v38 = vld [vmem:[%s8902_s7 + $0x18] sm:$0xff]  ;;  %v3209_v43 = vld [vmem:[%s8902_s7 + $0x20] sm:$0xff] }
 0xdde   :  { %v5495_v33 = vpop.f32.mrb[55].mxu0  ;;  %v5517_v51 = vpop.f32.mrb[55].mxu1  ;;  %v3211_v46 = vld [vmem:[%s8902_s7 + $0x30] sm:$0xff]  ;;  %v3212_v48 = vld [vmem:[%s8902_s7 + $0x38] sm:$0xff] }
 0xddf   :  { %v2528_v52 = vadd.f32 %v5493_v44, %v5068_v37  ;;  %v2703_v53 = vadd.f32 %v5515_v45, %v5085_v42  ;;  %v3207_v37 = vld [vmem:[%s8902_s7 + $0x10] sm:$0xff]  ;;  %v3210_v44 = vld [vmem:[%s8902_s7 + $0x28] sm:$0xff]  ;;  %v6368_v33 = vpack.c.bf16 %v3212_v48, %v3211_v46  ;;  %v3213_v51 = vld [vmem:[%s8902_s7 + $0x40] sm:$0xff] }
 0xde0   :  { %v6362_v42 = vpack.c.bf16 %v3208_v38, %v3207_v37  ;;  %v6365_v45 = vpack.c.bf16 %v3210_v44, %v3209_v43 }
 0xde1   :  { %2708 = vst [vmem:[#allocation20] sm:$0xff] %v2528_v52  ;;  %v2711_v5 = vmul.f32 0.5, %v2703_v53  ;;  %2709 = vst [vmem:[#allocation22] sm:$0xff] %v2703_v53 }
 0xde3   :  { %v2712_v54 = vmul.f32 1.442695, %v2711_v5  ;;  %v3215_v5 = vld [vmem:[%s8902_s7 + $0x50] sm:$0xff] }
 0xde5   :  { %6749 = vpow2.f32 %v2712_v54  ;;  %v3216_v54 = vld [vmem:[%s8902_s7 + $0x58] sm:$0xff] }
 0xdef   :  { %v6750_v8 = vpop.eup %6749 }
 0xdf0   :  { %v2720_v56 = vmul.f32 %v6750_v8, %v5102_v55  ;;  %v6374_v55 = vpack.c.bf16 %v3216_v54, %v3215_v5  ;;  %v3217_v8 = vld [vmem:[%s8902_s7 + $0x60] sm:$0xff] }
 0xdf2   :  { %v2721_v57 = vadd.f32 %v2720_v56, %v2528_v52  ;;  %v3214_v52 = vld [vmem:[%s8902_s7 + $0x48] sm:$0xff] }
 0xdf3   :  { %v6371_v53 = vpack.c.bf16 %v3214_v52, %v3213_v51  ;;  %v3218_v56 = vld [vmem:[%s8902_s7 + $0x68] sm:$0xff] }
 0xdf4   :  { %v2722_v60 = vpack.c.bf16 %v2721_v57, %v2721_v57  ;;  %v6377_v57 = vpack.c.bf16 %v3218_v56, %v3217_v8 }
 0xdf6   :  { %5959 = vmatmul.mubr.bf16.vlgmr.msra.gmra.mrb[56].mxu0 %v2722_v60  ;;  %5979 = vmatmul.mubr.bf16.vlgmr.msra.gmra.mrb[56].mxu1 %v2722_v60 }
 0xdf7   :  { %3109 = vmatpush1.bf16.msra.mxu0 %v6647_v58  ;;  %5983 = vmatpush3.bf16.msra.mxu1 %v6650_v59  ;;  %v3219_v58 = vld [vmem:[%s8902_s7 + $0x70] sm:$0xff]  ;;  %v3220_v59 = vld [vmem:[%s8902_s7 + $0x78] sm:$0xff] }
 0xdf8   :  { %3110 = vmatprep.subr.bf16.mxu0 %v6653_v24  ;;  %5984 = vmatprep.subr.bf16.mxu1 %v7220_v0  ;;  %v6380_v60 = vpack.c.bf16 %v3220_v59, %v3219_v58  ;;  %v5145_v24 = vld [vmem:[#allocation8] ss:$0 sm:$0xff] }
 0xdf9   :  { %5998 = vmatprep.mubr.msk.bf16.mxu1 %vm7221_vm0, %v7220_v0  ;;  %3140 = vmatprep.mubr.bf16.mxu0 %v7237_v28 }
 0xdfb   :  { %3111 = vmatpush1.bf16.msra.mxu0 %v6651_v62  ;;  %5985 = vmatpush3.bf16.msra.mxu1 %v6654_v1 }
 0xdfc   :  { %3112 = vmatprep.subr.bf16.mxu0 %v6657_v2  ;;  %5986 = vmatprep.subr.bf16.mxu1 %v7220_v0 }
 0xdff   :  { %3113 = vmatpush1.bf16.msra.mxu0 %v6655_v41  ;;  %5987 = vmatpush3.bf16.msra.mxu1 %v6658_v3 }
 0xe00   :  { %3114 = vmatprep.subr.bf16.mxu0 %v6661_v32  ;;  %5988 = vmatprep.subr.bf16.mxu1 %v7220_v0 }
 0xe03   :  { %3115 = vmatpush1.bf16.msra.mxu0 %v6659_v7  ;;  %5989 = vmatpush3.bf16.msra.mxu1 %v6662_v47 }
 0xe04   :  { %3116 = vmatprep.subr.bf16.mxu0 %v6665_v10  ;;  %5990 = vmatprep.subr.bf16.mxu1 %v7220_v0 }
 0xe07   :  { %3117 = vmatpush1.bf16.msra.mxu0 %v6663_v26  ;;  %5991 = vmatpush3.bf16.msra.mxu1 %v6666_v11 }
 0xe08   :  { %3118 = vmatprep.subr.bf16.mxu0 %v6669_v31  ;;  %5992 = vmatprep.subr.bf16.mxu1 %v7220_v0 }
 0xe0b   :  { %3119 = vmatpush1.bf16.msra.mxu0 %v6667_v14  ;;  %5993 = vmatpush3.bf16.msra.mxu1 %v6670_v25 }
 0xe0c   :  { %3120 = vmatprep.subr.bf16.mxu0 %v6673_v22  ;;  %5994 = vmatprep.subr.bf16.mxu1 %v7220_v0 }
 0xe0f   :  { %3121 = vmatpush1.bf16.msra.mxu0 %v6671_v27  ;;  %5995 = vmatpush3.bf16.msra.mxu1 %v6674_v17 }
 0xe10   :  { %3122 = vmatprep.subr.bf16.mxu0 %v6677_v40  ;;  %5996 = vmatprep.subr.bf16.mxu1 %v7220_v0 }
 0xe13   :  { %3123 = vmatpush1.bf16.msra.mxu0 %v6675_v18  ;;  %5997 = vmatpush3.bf16.msra.mxu1 %v6678_v23 }
 0xe14   :  { %6358 = vmatprep.subr.bf16.mxu0 %v7222_v12  ;;  %6382 = vmatprep.subr.bf16.mxu1 %v7222_v12 }
 0xec9   :  { %v2828_v6 = vpop.f32.mrb[56].mxu0  ;;  %v2940_v19 = vpop.f32.mrb[56].mxu1 }
 0xeca   :  { %v2829_v21 = vadd.f32 %v5103_v15, %v2828_v6  ;;  %v2941_v20 = vadd.f32 %v5112_v4, %v2940_v19  ;;  %v5960_v29 = vpop.f32.mrb[57].mxu0  ;;  %v5980_v49 = vpop.f32.mrb[57].mxu1 }
 0xecb   :  { %v2831_v13 = vpop.f32.mrb[58].mxu0  ;;  %v2943_v16 = vpop.f32.mrb[58].mxu1 }
 0xecc   :  { %v2834_v34 = vmax.f32 %v2829_v21, 0.0  ;;  %v2946_v30 = vmax.f32 %v2941_v20, 0.0  ;;  %v5961_v35 = vpop.f32.mrb[59].mxu0  ;;  %v5981_v9 = vpop.f32.mrb[59].mxu1 }
 0xece   :  { %v2947_v50 = vpack.c.bf16 %v2946_v30, %v2834_v34 }
 0xed0   :  { %3141 = vmatmul.mubr.bf16.vlgmr.msra.gmra.mrb[60].mxu0 %v2947_v50  ;;  %5999 = vmatmul.mubr.bf16.vlgmr.msra.gmra.mrb[60].mxu1 %v2947_v50 }
 0xed1   :  { %6360 = vmatpush3.bf16.msra.mxu0 %v6359_v36  ;;  %6034 = vmatprep.mubr.msk.f32.mxu0 %vm7221_vm0, %v7220_v0 }
 0xed2   :  { %6361 = vmatprep.subr.bf16.mxu0 %v7222_v12  ;;  %6384 = vmatpush3.bf16.msra.mxu1 %v6359_v36 }
 0xed3   :  { %6385 = vmatprep.subr.bf16.mxu1 %v7222_v12  ;;  %6069 = vmatprep.mubr.msk.f32.mxu1 %vm7221_vm0, %v7220_v0 }
 0xed5   :  { %6363 = vmatpush3.bf16.msra.mxu0 %v6362_v42 }
 0xed6   :  { %6364 = vmatprep.subr.bf16.mxu0 %v7222_v12  ;;  %6387 = vmatpush3.bf16.msra.mxu1 %v6362_v42 }
 0xed7   :  { %6388 = vmatprep.subr.bf16.mxu1 %v7222_v12 }
 0xed9   :  { %6366 = vmatpush3.bf16.msra.mxu0 %v6365_v45 }
 0xeda   :  { %6390 = vmatpush3.bf16.msra.mxu1 %v6365_v45  ;;  %6367 = vmatprep.subr.bf16.mxu0 %v7222_v12 }
 0xedb   :  { %6391 = vmatprep.subr.bf16.mxu1 %v7222_v12 }
 0xedd   :  { %6369 = vmatpush3.bf16.msra.mxu0 %v6368_v33 }
 0xede   :  { %6393 = vmatpush3.bf16.msra.mxu1 %v6368_v33  ;;  %6370 = vmatprep.subr.bf16.mxu0 %v7222_v12 }
 0xedf   :  { %6394 = vmatprep.subr.bf16.mxu1 %v7222_v12 }
 0xee1   :  { %6372 = vmatpush3.bf16.msra.mxu0 %v6371_v53 }
 0xee2   :  { %6396 = vmatpush3.bf16.msra.mxu1 %v6371_v53  ;;  %6373 = vmatprep.subr.bf16.mxu0 %v7222_v12 }
 0xee3   :  { %6397 = vmatprep.subr.bf16.mxu1 %v7222_v12 }
 0xee5   :  { %6375 = vmatpush3.bf16.msra.mxu0 %v6374_v55 }
 0xee6   :  { %6399 = vmatpush3.bf16.msra.mxu1 %v6374_v55  ;;  %6376 = vmatprep.subr.bf16.mxu0 %v7222_v12 }
 0xee7   :  { %6400 = vmatprep.subr.bf16.mxu1 %v7222_v12 }
 0xee9   :  { %6378 = vmatpush3.bf16.msra.mxu0 %v6377_v57 }
 0xeea   :  { %6402 = vmatpush3.bf16.msra.mxu1 %v6377_v57  ;;  %6379 = vmatprep.subr.bf16.mxu0 %v7222_v12 }
 0xeeb   :  { %6403 = vmatprep.subr.bf16.mxu1 %v7222_v12 }
 0xeed   :  { %6381 = vmatpush3.bf16.msra.mxu0 %v6380_v60 }
 0xeee   :  { %6405 = vmatpush3.bf16.msra.mxu1 %v6380_v60 }
 0xeef   :  { %6072 = vmatprep.subr.bf16.mxu1 %v7220_v0 }
 0xfa3   :  { %v3142_v62 = vpop.f32.mrb[60].mxu0  ;;  %v3185_v1 = vpop.f32.mrb[60].mxu1 }
 0xfa4   :  { %v3199_v2 = vadd.f32 %v5145_v24, %v3142_v62  ;;  %v3144_v41 = vpop.f32.mrb[61].mxu0  ;;  %v6000_v3 = vpop.f32.mrb[61].mxu1  ;;  %v3201_v11 = vadd.f32 %v5145_v24, %v3185_v1 }
 0xfa5   :  { %v3200_v32 = vadd.f32 %v5145_v24, %v3144_v41  ;;  %v3146_v7 = vpop.f32.mrb[62].mxu0  ;;  %v3188_v47 = vpop.f32.mrb[62].mxu1 }
 0xfa6   :  { %v3148_v10 = vpop.f32.mrb[63].mxu0  ;;  %v6001_v26 = vpop.f32.mrb[63].mxu1  ;;  %v3202_v14 = vadd.f32 %v5145_v24, %v3146_v7  ;;  %v3204_v17 = vadd.f32 %v5145_v24, %v3188_v47  ;;  %v8345_v7 = vld [vmem:[#allocation11] sm:$0x1] }
 0xfa7   :  { %v3221_v31 = vadd.f32 %v3200_v32, %v3199_v2  ;;  %v3203_v27 = vadd.f32 %v5145_v24, %v3148_v10  ;;  %v8349_v47 = vrot.slane %v8345_v7, %v7676_v39 }
 0xfa9   :  { %v3222_v25 = vadd.f32 %v3221_v31, %v3201_v11 }
 0xfab   :  { %v3223_v22 = vadd.f32 %v3222_v25, %v3202_v14  ;;  %v6681_v25 = vld [vmem:[%s8903_s10 + $0x4] ss:$12 sps:$4 sm:$0xff]  }
 0xfac   :  { %3690 = vmatprep.subr.bf16.mxu0 %v6681_v25 }
 0xfad   :  { %v3224_v18 = vadd.f32 %v3223_v22, %v3203_v27  ;;  %v6682_v22 = vld [vmem:[%s8903_s10 + $0x8] ss:$12 sps:$4 sm:$0xff]  }
 0xfaf   :  { %v3225_v40 = vadd.f32 %v3224_v18, %v3204_v17  ;;  %v6686_v18 = vld [vmem:[%s8903_s10 + $0x20] ss:$12 sps:$4 sm:$0xff]  }
 0xfb1   :  { %v3226_v23 = vrot.slane %v3225_v40, 4 }
 0xfb3   :  { %v3227_v15 = vadd.f32 %v3226_v23, %v3225_v40  ;;  %v3430_v40 = vld [vmem:[#allocation10] sm:$0x1] }
 0xfb5   :  { %v3228_v4 = vrot.slane %v3227_v15, 2 }
 0xfb7   :  { %v3229_v6 = vadd.f32 %v3228_v4, %v3227_v15  ;;  %v6687_v15 = vld [vmem:[%s8903_s10 + $0x30] ss:$12 sps:$4 sm:$0xff]   ;;  %v6689_v4 = vld [vmem:[%s8903_s10 + $0x34] ss:$12 sps:$4 sm:$0xff]  }
 0xfb9   :  { %v3230_v19 = vrot.slane %v3229_v6, 1 }
 0xfbb   :  { %v3231_v21 = vadd.f32 %v3230_v19, %v3229_v6  ;;  %v6690_v6 = vld [vmem:[%s8903_s10 + $0x38] ss:$12 sps:$4 sm:$0xff]  }
 0xfbd   :  { %6035 = vmatmul.mubr.f32.vlgmr.msra.gmra.mrb[50].mxu0 %v3231_v21 }
 0xfbe   :  { %3722 = vmatprep.mubr.bf16.mxu0 %v7237_v28 }
0x1090   :  { %v3298_v20 = vpop.f32.mrb[50].mxu0 }
0x1091   :  { %v3302_v29 = vmul.f32 0.0034722222, %v3298_v20  ;;  %v6036_v49 = vpop.f32.mrb[51].mxu0  ;;  %v6691_v20 = vld [vmem:[%s8903_s10 + $0x48] ss:$12 sps:$4 sm:$0xff]  }
0x1092   :  { %v6694_v49 = vld [vmem:[%s8903_s10 + $0x50] ss:$12 sps:$4 sm:$0xff]  }
0x1093   :  { %3307 = vrot.lane.b32.xlu0 %v3302_v29, %s7225_s17  ;;  %3304 = vrot.lane.b32.xlu1 %v3302_v29, %s7226_s21 }
0x1097   :  { %3313 = vrot.lane.b32.xlu0 %v3302_v29, %s7214_s16  ;;  %3310 = vrot.lane.b32.xlu1 %v3302_v29, %s7227_s19 }
0x109b   :  { %3319 = vrot.lane.b32.xlu0 %v3302_v29, %s7232_s26  ;;  %3316 = vrot.lane.b32.xlu1 %v3302_v29, %s7230_s22 }
0x109f   :  { %3322 = vrot.lane.b32.xlu1 %v3302_v29, %s7234_s28 }
0x10a3   :  { %3473 = vrot.lane.b32.xlu1 %v8349_v47, %s7226_s21 }
0x10a7   :  { %3476 = vrot.lane.b32.xlu1 %v8349_v47, %s7225_s17 }
0x10ab   :  { %3479 = vrot.lane.b32.xlu1 %v8349_v47, %s7227_s19 }
0x10af   :  { %3482 = vrot.lane.b32.xlu1 %v8349_v47, %s7214_s16 }
0x1105   :  { %v3308_v61 = vpop.permute.xlu0 %3307  ;;  %v3305_v63 = vpop.permute.xlu1 %3304 }
0x1106   :  { %v3325_v13 = vsel %vm856_vm2, %v3302_v29, %v3305_v63  ;;  %v6693_v29 = vld [vmem:[%s8903_s10 + $0x4c] ss:$12 sps:$4 sm:$0xff]   ;;  %v6697_v63 = vld [vmem:[%s8903_s10 + $0x64] ss:$12 sps:$4 sm:$0xff]  }
0x1107   :  { %v3326_v34 = vsel %vm860_vm4, %v3325_v13, %v3308_v61  ;;  %v6695_v61 = vld [vmem:[%s8903_s10 + $0x60] ss:$12 sps:$4 sm:$0xff]   ;;  %v6698_v13 = vld [vmem:[%s8903_s10 + $0x68] ss:$12 sps:$4 sm:$0xff]  }
0x1109   :  { %v3314_v16 = vpop.permute.xlu0 %3313  ;;  %v3311_v30 = vpop.permute.xlu1 %3310 }
0x110a   :  { %v3327_v35 = vsel %vm864_vm6, %v3326_v34, %v3311_v30  ;;  %v6701_v34 = vld [vmem:[%s8903_s10 + $0x7c] ss:$12 sps:$4 sm:$0xff]   ;;  %v6702_v30 = vld [vmem:[%s8903_s10 + $0x80] ss:$12 sps:$4 sm:$0xff]  }
0x110b   :  { %v3328_v9 = vsel %vm868_vm8, %v3327_v35, %v3314_v16  ;;  %v6699_v16 = vld [vmem:[%s8903_s10 + $0x78] ss:$12 sps:$4 sm:$0xff]   ;;  %v6703_v35 = vld [vmem:[%s8903_s10 + $0x90] ss:$12 sps:$4 sm:$0xff]  }
0x110d   :  { %v3317_v36 = vpop.permute.xlu1 %3316  ;;  %v3320_v50 = vpop.permute.xlu0 %3319 }
0x110e   :  { %v3329_v37 = vsel %vm872_vm10, %v3328_v9, %v3317_v36  ;;  %v6705_v9 = vld [vmem:[%s8903_s10 + $0x94] ss:$12 sps:$4 sm:$0xff]   ;;  %v6706_v36 = vld [vmem:[%s8903_s10 + $0x98] ss:$12 sps:$4 sm:$0xff]  }
0x110f   :  { %v3330_v38 = vsel %vm876_vm12, %v3329_v37, %v3320_v50  ;;  %v6709_v50 = vld [vmem:[%s8903_s10 + $0xac] ss:$12 sps:$4 sm:$0xff]   ;;  %v6710_v37 = vld [vmem:[%s8903_s10 + $0xb0] ss:$12 sps:$4 sm:$0xff]  }
0x1111   :  { %v3323_v42 = vpop.permute.xlu1 %3322 }
0x1112   :  { %v3331_v43 = vsel %vm880_vm14, %v3330_v38, %v3323_v42  ;;  %v6707_v38 = vld [vmem:[%s8903_s10 + $0xa8] ss:$12 sps:$4 sm:$0xff]  }
0x1113   :  { %v3335_v44 = vrot.slane %v3331_v43, %v7676_v39 }
0x1115   :  { %v8319_v45 = vsub.f32 %v3199_v2, %v3335_v44  ;;  %v8321_v46 = vsub.f32 %v3200_v32, %v3335_v44  ;;  %v8323_v48 = vsub.f32 %v3201_v11, %v3335_v44  ;;  %v8325_v33 = vsub.f32 %v3202_v14, %v3335_v44  ;;  %v6679_v14 = vld [vmem:[%s8903_s10] ss:$12 sps:$4 sm:$0xff]   ;;  %v3474_v42 = vpop.permute.xlu1 %3473 }
0x1116   :  { %v8331_v53 = vsub.f32 %v3203_v27, %v3335_v44  ;;  %v8335_v55 = vsub.f32 %v3204_v17, %v3335_v44  ;;  %3691 = vmatpush1.bf16.msra.mxu0 %v6679_v14  ;;  %v6683_v27 = vld [vmem:[%s8903_s10 + $0x18] ss:$12 sps:$4 sm:$0xff]   ;;  %v6685_v17 = vld [vmem:[%s8903_s10 + $0x1c] ss:$12 sps:$4 sm:$0xff]  }
0x1117   :  { %v3342_v51 = vmul.f32 %v8319_v45, %v8319_v45  ;;  %v3343_v52 = vmul.f32 %v8321_v46, %v8321_v46  ;;  %v3344_v5 = vmul.f32 %v8323_v48, %v8323_v48  ;;  %v3345_v8 = vmul.f32 %v8325_v33, %v8325_v33  ;;  %3692 = vmatprep.subr.bf16.mxu0 %v6685_v17 }
0x1118   :  { %v3346_v57 = vmul.f32 %v8331_v53, %v8331_v53  ;;  %v3347_v59 = vmul.f32 %v8335_v55, %v8335_v55 }
0x1119   :  { %v3348_v54 = vadd.f32 %v3343_v52, %v3342_v51  ;;  %v3477_v43 = vpop.permute.xlu1 %3476 }
0x111a   :  { %3693 = vmatpush1.bf16.msra.mxu0 %v6683_v27 }
0x111b   :  { %v3349_v56 = vadd.f32 %v3348_v54, %v3344_v5  ;;  %3694 = vmatprep.subr.bf16.mxu0 %v6689_v4 }
0x111d   :  { %v3350_v58 = vadd.f32 %v3349_v56, %v3345_v8  ;;  %v3480_v51 = vpop.permute.xlu1 %3479  ;;  %v3494_v8 = vsel %vm856_vm2, %v8345_v7, %v3474_v42  ;;  %v3843_v42 = vld [vmem:[%s8904_s11 + $0x30] sm:$0xff] }
0x111e   :  { %3695 = vmatpush1.bf16.msra.mxu0 %v6687_v15 }
0x111f   :  { %v3351_v60 = vadd.f32 %v3350_v58, %v3346_v57  ;;  %3696 = vmatprep.subr.bf16.mxu0 %v6693_v29 }
0x1121   :  { %v3352_v24 = vadd.f32 %v3351_v60, %v3347_v59  ;;  %v3483_v5 = vpop.permute.xlu1 %3482  ;;  %v3495_v59 = vsel %vm860_vm4, %v3494_v8, %v3477_v43  ;;  %v3844_v43 = vld [vmem:[%s8904_s11 + $0x38] sm:$0xff] }
0x1122   :  { %3697 = vmatpush1.bf16.msra.mxu0 %v6691_v20  ;;  %v3848_v8 = vld [vmem:[%s8904_s11 + $0x58] sm:$0xff] }
0x1123   :  { %v3353_v62 = vrot.slane %v3352_v24, 4  ;;  %3698 = vmatprep.subr.bf16.mxu0 %v6697_v63 }
0x1125   :  { %v3354_v1 = vadd.f32 %v3353_v62, %v3352_v24 }
0x1126   :  { %3699 = vmatpush1.bf16.msra.mxu0 %v6695_v61 }
0x1127   :  { %v3355_v2 = vrot.slane %v3354_v1, 2  ;;  %3700 = vmatprep.subr.bf16.mxu0 %v6701_v34 }
0x1129   :  { %v3356_v41 = vadd.f32 %v3355_v2, %v3354_v1  ;;  %v3496_v1 = vsel %vm864_vm6, %v3495_v59, %v3480_v51  ;;  %v3845_v51 = vld [vmem:[%s8904_s11 + $0x40] sm:$0xff] }
0x112a   :  { %3701 = vmatpush1.bf16.msra.mxu0 %v6699_v16 }
0x112b   :  { %v3357_v3 = vrot.slane %v3356_v41, 1  ;;  %3702 = vmatprep.subr.bf16.mxu0 %v6705_v9  ;;  %v3840_v9 = vld [vmem:[%s8904_s11 + $0x18] sm:$0xff] }
0x112d   :  { %v3358_v32 = vadd.f32 %v3357_v3, %v3356_v41 }
0x112e   :  { %3703 = vmatpush1.bf16.msra.mxu0 %v6703_v35  ;;  %v3839_v35 = vld [vmem:[%s8904_s11 + $0x10] sm:$0xff] }
0x112f   :  { %6070 = vmatmul.mubr.f32.vlgmr.msra.gmra.mrb[50].mxu1 %v3358_v32  ;;  %3704 = vmatprep.subr.bf16.mxu0 %v6709_v50  ;;  %v3841_v50 = vld [vmem:[%s8904_s11 + $0x20] sm:$0xff] }
0x1130   :  { %6088 = vmatprep.mubr.msk.bf16.mxu1 %vm7221_vm0, %v7220_v0  ;;  %6073 = vmatpush3.bf16.msra.mxu1 %v6682_v22 }
0x1131   :  { %6074 = vmatprep.subr.bf16.mxu1 %v7220_v0 }
0x1132   :  { %3705 = vmatpush1.bf16.msra.mxu0 %v6707_v38 }
0x1133   :  { %6406 = vmatprep.subr.bf16.mxu0 %v7222_v12 }
0x1134   :  { %6075 = vmatpush3.bf16.msra.mxu1 %v6686_v18 }
0x1135   :  { %6076 = vmatprep.subr.bf16.mxu1 %v7220_v0 }
0x1138   :  { %6077 = vmatpush3.bf16.msra.mxu1 %v6690_v6 }
0x1139   :  { %6078 = vmatprep.subr.bf16.mxu1 %v7220_v0 }
0x113c   :  { %6079 = vmatpush3.bf16.msra.mxu1 %v6694_v49 }
0x113d   :  { %6080 = vmatprep.subr.bf16.mxu1 %v7220_v0 }
0x1140   :  { %6081 = vmatpush3.bf16.msra.mxu1 %v6698_v13 }
0x1141   :  { %6082 = vmatprep.subr.bf16.mxu1 %v7220_v0 }
0x1144   :  { %6083 = vmatpush3.bf16.msra.mxu1 %v6702_v30 }
0x1145   :  { %6084 = vmatprep.subr.bf16.mxu1 %v7220_v0 }
0x1148   :  { %6085 = vmatpush3.bf16.msra.mxu1 %v6706_v36  ;;  %v6410_v36 = vpack.c.bf16 %v3840_v9, %v3839_v35 }
0x1149   :  { %6086 = vmatprep.subr.bf16.mxu1 %v7220_v0 }
0x114c   :  { %6087 = vmatpush3.bf16.msra.mxu1 %v6710_v37  ;;  %v3842_v37 = vld [vmem:[%s8904_s11 + $0x28] sm:$0xff] }
0x114d   :  { %6430 = vmatprep.subr.bf16.mxu1 %v7222_v12  ;;  %v6413_v38 = vpack.c.bf16 %v3842_v37, %v3841_v50 }
0x1202   :  { %v3425_v10 = vpop.f32.mrb[50].mxu1 }
0x1203   :  { %v3429_v26 = vmul.f32 0.0034722222, %v3425_v10  ;;  %v6071_v11 = vpop.f32.mrb[51].mxu1 }
0x1205   :  { %v3431_v31 = vadd.f32 1e-05, %v3429_v26 }
0x1207   :  { %6751 = vrsqrt.f32 %v3431_v31 }
0x1211   :  { %v6752_v23 = vpop.eup %6751 }
0x1212   :  { %v3433_v19 = vmul.f32 %v6752_v23, %v3430_v40 }
0x1214   :  { %v3438_v21 = vrot.slane %v3433_v19, %v7676_v39 }
0x1216   :  { %3442 = vrot.lane.b32.xlu1 %v3438_v21, %s7225_s17  ;;  %3439 = vrot.lane.b32.xlu0 %v3438_v21, %s7226_s21 }
0x121a   :  { %3445 = vrot.lane.b32.xlu0 %v3438_v21, %s7227_s19  ;;  %3485 = vrot.lane.b32.xlu1 %v8349_v47, %s7230_s22 }
0x121e   :  { %3448 = vrot.lane.b32.xlu0 %v3438_v21, %s7214_s16  ;;  %3491 = vrot.lane.b32.xlu1 %v8349_v47, %s7234_s28 }
0x1222   :  { %3451 = vrot.lane.b32.xlu0 %v3438_v21, %s7230_s22 }
0x1226   :  { %3454 = vrot.lane.b32.xlu0 %v3438_v21, %s7232_s26 }
0x122a   :  { %3457 = vrot.lane.b32.xlu0 %v3438_v21, %s7234_s28 }
0x122e   :  { %3488 = vrot.lane.b32.xlu0 %v8349_v47, %s7232_s26  ;;  %v3497_v47 = vsel %vm868_vm8, %v3496_v1, %v3483_v5  ;;  %v5170_v1 = vld [vmem:[#allocation13] ss:$0 sm:$0xff] }
0x1288   :  { %v3440_v44 = vpop.permute.xlu0 %3439  ;;  %v3443_v58 = vpop.permute.xlu1 %3442 }
0x1289   :  { %v3460_v57 = vsel %vm856_vm2, %v3433_v19, %v3440_v44  ;;  %v6416_v44 = vpack.c.bf16 %v3844_v43, %v3843_v42 }
0x128a   :  { %v3461_v60 = vsel %vm860_vm4, %v3460_v57, %v3443_v58  ;;  %v3849_v57 = vld [vmem:[%s8904_s11 + $0x60] sm:$0xff]  ;;  %v3850_v58 = vld [vmem:[%s8904_s11 + $0x68] sm:$0xff] }
0x128b   :  { %v6425_v59 = vpack.c.bf16 %v3850_v58, %v3849_v57 }
0x128c   :  { %v3446_v52 = vpop.permute.xlu0 %3445  ;;  %v3486_v41 = vpop.permute.xlu1 %3485 }
0x128d   :  { %v3462_v62 = vsel %vm864_vm6, %v3461_v60, %v3446_v52  ;;  %v3498_v31 = vsel %vm872_vm10, %v3497_v47, %v3486_v41  ;;  %v3846_v52 = vld [vmem:[%s8904_s11 + $0x48] sm:$0xff]  ;;  %v3851_v60 = vld [vmem:[%s8904_s11 + $0x70] sm:$0xff] }
0x128e   :  { %v6419_v5 = vpack.c.bf16 %v3846_v52, %v3845_v51 }
0x1290   :  { %v3449_v54 = vpop.permute.xlu0 %3448  ;;  %v3492_v11 = vpop.permute.xlu1 %3491 }
0x1291   :  { %v3463_v2 = vsel %vm868_vm8, %v3462_v62, %v3449_v54  ;;  %v3847_v54 = vld [vmem:[%s8904_s11 + $0x50] sm:$0xff] }
0x1294   :  { %v3452_v56 = vpop.permute.xlu0 %3451 }
0x1295   :  { %v3464_v3 = vsel %vm872_vm10, %v3463_v2, %v3452_v56  ;;  %v6422_v56 = vpack.c.bf16 %v3848_v8, %v3847_v54 }
0x1298   :  { %v3455_v24 = vpop.permute.xlu0 %3454 }
0x1299   :  { %v3465_v32 = vsel %vm876_vm12, %v3464_v3, %v3455_v24  ;;  %v3852_v24 = vld [vmem:[%s8904_s11 + $0x78] sm:$0xff] }
0x129a   :  { %v6428_v62 = vpack.c.bf16 %v3852_v24, %v3851_v60 }
0x129c   :  { %v3458_v7 = vpop.permute.xlu0 %3457 }
0x129d   :  { %v3466_v10 = vsel %vm880_vm14, %v3465_v32, %v3458_v7 }
0x129e   :  { %v3504_v26 = vrot.slane %v3466_v10, %v7676_v39 }
0x12a0   :  { %v3489_v14 = vpop.permute.xlu0 %3488  ;;  %v3505_v17 = vmul.f32 %v3504_v26, %v8319_v45  ;;  %v3506_v18 = vmul.f32 %v3504_v26, %v8321_v46  ;;  %v3507_v6 = vmul.f32 %v3504_v26, %v8323_v48  ;;  %v3508_v19 = vmul.f32 %v3504_v26, %v8325_v33 }
0x12a1   :  { %v3499_v25 = vsel %vm876_vm12, %v3498_v31, %v3489_v14  ;;  %v3509_v49 = vmul.f32 %v3504_v26, %v8331_v53  ;;  %v3510_v61 = vmul.f32 %v3504_v26, %v8335_v55  ;;  %v3837_v53 = vld [vmem:[%s8904_s11] sm:$0xff]  ;;  %v3838_v55 = vld [vmem:[%s8904_s11 + $0x8] sm:$0xff] }
0x12a2   :  { %v3500_v22 = vsel %vm880_vm14, %v3499_v25, %v3492_v11  ;;  %v6407_v30 = vpack.c.bf16 %v3838_v55, %v3837_v53 }
0x12a3   :  { %v3514_v27 = vrot.slane %v3500_v22, %v7676_v39 }
0x12a5   :  { %v3515_v40 = vadd.f32 %v3514_v27, %v3505_v17  ;;  %v3516_v23 = vadd.f32 %v3514_v27, %v3506_v18  ;;  %v3517_v20 = vadd.f32 %v3514_v27, %v3507_v6  ;;  %v3518_v29 = vadd.f32 %v3514_v27, %v3508_v19 }
0x12a6   :  { %v3519_v33 = vadd.f32 %v3514_v27, %v3509_v49  ;;  %v3520_v63 = vadd.f32 %v3514_v27, %v3510_v61 }
0x12a7   :  { %v3521_v15 = vmax.f32 %v3515_v40, 0.0  ;;  %v3522_v4 = vmax.f32 %v3516_v23, 0.0  ;;  %v3523_v45 = vmax.f32 %v3517_v20, 0.0  ;;  %v3524_v46 = vmax.f32 %v3518_v29, 0.0 }
0x12a8   :  { %v3525_v13 = vmax.f32 %v3519_v33, 0.0  ;;  %v3526_v16 = vmax.f32 %v3520_v63, 0.0 }
0x12a9   :  { %v3527_v21 = vpack.c.bf16 %v3522_v4, %v3521_v15  ;;  %v3528_v48 = vpack.c.bf16 %v3524_v46, %v3523_v45 }
0x12aa   :  { %v3529_v34 = vpack.c.bf16 %v3526_v16, %v3525_v13 }
0x12ab   :  { %3723 = vmatmul.mubr.bf16.vlgmr.msra.gmra.mrb[64].mxu0 %v3527_v21  ;;  %6089 = vmatmul.mubr.bf16.vlgmr.msra.gmra.mrb[64].mxu1 %v3527_v21 }
0x12ac   :  { %3732 = vmatprep.mubr.bf16.mxu0 %v7237_v28  ;;  %6092 = vmatprep.mubr.msk.bf16.mxu1 %vm7221_vm0, %v7220_v0 }
0x12ad   :  { %6408 = vmatpush3.bf16.msra.mxu0 %v6407_v30  ;;  %6432 = vmatpush3.bf16.msra.mxu1 %v6407_v30 }
0x12ae   :  { %6409 = vmatprep.subr.bf16.mxu0 %v7222_v12  ;;  %6433 = vmatprep.subr.bf16.mxu1 %v7222_v12 }
0x12b1   :  { %6411 = vmatpush3.bf16.msra.mxu0 %v6410_v36  ;;  %6435 = vmatpush3.bf16.msra.mxu1 %v6410_v36 }
0x12b2   :  { %6412 = vmatprep.subr.bf16.mxu0 %v7222_v12  ;;  %6436 = vmatprep.subr.bf16.mxu1 %v7222_v12 }
0x12b3   :  { %3733 = vmatmul.mubr.bf16.gmra.mrb[68].mxu0 %v3528_v48  ;;  %6093 = vmatmul.mubr.bf16.gmra.mrb[68].mxu1 %v3528_v48 }
0x12b4   :  { %3742 = vmatprep.mubr.bf16.mxu0 %v7237_v28  ;;  %6096 = vmatprep.mubr.msk.bf16.mxu1 %vm7221_vm0, %v7220_v0 }
0x12b5   :  { %6414 = vmatpush3.bf16.msra.mxu0 %v6413_v38  ;;  %6438 = vmatpush3.bf16.msra.mxu1 %v6413_v38 }
0x12b6   :  { %6415 = vmatprep.subr.bf16.mxu0 %v7222_v12  ;;  %6439 = vmatprep.subr.bf16.mxu1 %v7222_v12 }
0x12b9   :  { %6417 = vmatpush3.bf16.msra.mxu0 %v6416_v44  ;;  %6441 = vmatpush3.bf16.msra.mxu1 %v6416_v44 }
0x12ba   :  { %6418 = vmatprep.subr.bf16.mxu0 %v7222_v12  ;;  %6442 = vmatprep.subr.bf16.mxu1 %v7222_v12 }
0x12bb   :  { %3743 = vmatmul.mubr.bf16.gmra.mrb[72].mxu0 %v3529_v34  ;;  %6097 = vmatmul.mubr.bf16.gmra.mrb[72].mxu1 %v3529_v34 }
0x12bc   :  { %6132 = vmatprep.mubr.msk.f32.mxu0 %vm7221_vm0, %v7220_v0  ;;  %6167 = vmatprep.mubr.msk.f32.mxu1 %vm7221_vm0, %v7220_v0 }
0x12bd   :  { %6420 = vmatpush3.bf16.msra.mxu0 %v6419_v5  ;;  %6444 = vmatpush3.bf16.msra.mxu1 %v6419_v5 }
0x12be   :  { %6421 = vmatprep.subr.bf16.mxu0 %v7222_v12  ;;  %6445 = vmatprep.subr.bf16.mxu1 %v7222_v12 }
0x12c1   :  { %6423 = vmatpush3.bf16.msra.mxu0 %v6422_v56  ;;  %6447 = vmatpush3.bf16.msra.mxu1 %v6422_v56 }
0x12c2   :  { %6424 = vmatprep.subr.bf16.mxu0 %v7222_v12  ;;  %6448 = vmatprep.subr.bf16.mxu1 %v7222_v12 }
0x12c5   :  { %6426 = vmatpush3.bf16.msra.mxu0 %v6425_v59  ;;  %6450 = vmatpush3.bf16.msra.mxu1 %v6425_v59 }
0x12c6   :  { %6427 = vmatprep.subr.bf16.mxu0 %v7222_v12  ;;  %6451 = vmatprep.subr.bf16.mxu1 %v7222_v12 }
0x12c9   :  { %6429 = vmatpush3.bf16.msra.mxu0 %v6428_v62  ;;  %6453 = vmatpush3.bf16.msra.mxu1 %v6428_v62 }
0x12ca   :  { %6170 = vmatprep.subr.bf16.mxu1 %v7220_v0 }
0x137e   :  { %v3724_v2 = vpop.f32.mrb[64].mxu0  ;;  %v3787_v41 = vpop.f32.mrb[64].mxu1 }
0x137f   :  { %v8470_v3 = vadd.f32 %v5170_v1, %v3724_v2  ;;  %v3726_v32 = vpop.f32.mrb[65].mxu0  ;;  %v6090_v7 = vpop.f32.mrb[65].mxu1 }
0x1380   :  { %v8472_v47 = vadd.f32 %v5170_v1, %v3726_v32  ;;  %v3728_v10 = vpop.f32.mrb[66].mxu0  ;;  %v3790_v26 = vpop.f32.mrb[66].mxu1 }
0x1381   :  { %v3811_v11 = vadd.f32 %v3787_v41, %v3728_v10  ;;  %v3730_v31 = vpop.f32.mrb[67].mxu0  ;;  %v6091_v14 = vpop.f32.mrb[67].mxu1 }
0x1382   :  { %v3853_v12 = vadd.f32 %v8472_v47, %v8470_v3  ;;  %v8479_v18 = vadd.f32 %v5170_v1, %v3730_v31 }
0x1383   :  { %v8476_v25 = vadd.f32 %v5170_v1, %v3811_v11 }
0x1385   :  { %v3854_v22 = vadd.f32 %v3853_v12, %v8476_v25 }
0x1386   :  { %v3734_v27 = vpop.f32.mrb[68].mxu0  ;;  %v3795_v17 = vpop.f32.mrb[68].mxu1 }
0x1387   :  { %v3812_v40 = vadd.f32 %v3790_v26, %v3734_v27  ;;  %v3736_v23 = vpop.f32.mrb[69].mxu0  ;;  %v6094_v15 = vpop.f32.mrb[69].mxu1  ;;  %v3855_v19 = vadd.f32 %v3854_v22, %v8479_v18 }
0x1388   :  { %v3738_v4 = vpop.f32.mrb[70].mxu0  ;;  %v3798_v6 = vpop.f32.mrb[70].mxu1  ;;  %v8484_v46 = vadd.f32 %v5170_v1, %v3736_v23 }
0x1389   :  { %v8482_v21 = vadd.f32 %v5170_v1, %v3812_v40  ;;  %v3813_v20 = vadd.f32 %v3795_v17, %v3738_v4  ;;  %v3740_v29 = vpop.f32.mrb[71].mxu0  ;;  %v6095_v45 = vpop.f32.mrb[71].mxu1 }
0x138a   :  { %v8490_v13 = vadd.f32 %v5170_v1, %v3740_v29 }
0x138b   :  { %v3856_v49 = vadd.f32 %v3855_v19, %v8482_v21  ;;  %v8488_v48 = vadd.f32 %v5170_v1, %v3813_v20 }
0x138d   :  { %v3857_v61 = vadd.f32 %v3856_v49, %v8484_v46 }
0x138e   :  { %v3744_v33 = vpop.f32.mrb[72].mxu0  ;;  %v3803_v63 = vpop.f32.mrb[72].mxu1 }
0x138f   :  { %v3858_v16 = vadd.f32 %v3857_v61, %v8488_v48  ;;  %v3814_v34 = vadd.f32 %v3798_v6, %v3744_v33  ;;  %v3746_v53 = vpop.f32.mrb[73].mxu0  ;;  %v6098_v55 = vpop.f32.mrb[73].mxu1 }
0x1390   :  { %v3748_v30 = vpop.f32.mrb[74].mxu0  ;;  %v3806_v35 = vpop.f32.mrb[74].mxu1  ;;  %v8496_v42 = vadd.f32 %v5170_v1, %v3746_v53 }
0x1391   :  { %v3859_v9 = vadd.f32 %v3858_v16, %v8490_v13  ;;  %v8494_v36 = vadd.f32 %v5170_v1, %v3814_v34  ;;  %v3815_v50 = vadd.f32 %v3803_v63, %v3748_v30  ;;  %v3750_v37 = vpop.f32.mrb[75].mxu0  ;;  %v6099_v38 = vpop.f32.mrb[75].mxu1  ;;  %v8505_v54 = vadd.f32 %v5170_v1, %v3806_v35 }
0x1392   :  { %v8502_v52 = vadd.f32 %v5170_v1, %v3750_v37 }
0x1393   :  { %v3860_v43 = vadd.f32 %v3859_v9, %v8494_v36  ;;  %v8500_v51 = vadd.f32 %v5170_v1, %v3815_v50  ;;  %v8525_v1 = vld [vmem:[#allocation16] sm:$0x1] }
0x1394   :  { %v8529_v7 = vrot.slane %v8525_v1, %v7676_v39 }
0x1395   :  { %v3861_v44 = vadd.f32 %v3860_v43, %v8496_v42 }
0x1397   :  { %v3862_v5 = vadd.f32 %v3861_v44, %v8500_v51 }
0x1399   :  { %v3863_v8 = vadd.f32 %v3862_v5, %v8502_v52 }
0x139b   :  { %v3864_v56 = vadd.f32 %v3863_v8, %v8505_v54 }
0x139d   :  { %v3865_v57 = vrot.slane %v3864_v56, 4 }
0x139f   :  { %v3866_v58 = vadd.f32 %v3865_v57, %v3864_v56 }
0x13a1   :  { %v3867_v59 = vrot.slane %v3866_v58, 2 }
0x13a3   :  { %v3868_v60 = vadd.f32 %v3867_v59, %v3866_v58 }
0x13a5   :  { %v3869_v24 = vrot.slane %v3868_v60, 1 }
0x13a7   :  { %v3870_v62 = vadd.f32 %v3869_v24, %v3868_v60 }
0x13a9   :  { %6133 = vmatmul.mubr.f32.vlgmr.msra.gmra.mrb[76].mxu0 %v3870_v62 }
0x13aa   :  { %4503 = vmatprep.mubr.bf16.mxu0 %v7237_v28 }
0x147c   :  { %v3937_v2 = vpop.f32.mrb[76].mxu0 }
0x147d   :  { %v3941_v41 = vmul.f32 0.000739645, %v3937_v2  ;;  %v6134_v32 = vpop.f32.mrb[77].mxu0 }
0x147f   :  { %3946 = vrot.lane.b32.xlu1 %v3941_v41, %s7226_s21  ;;  %3943 = vrot.lane.b32.xlu0 %v3941_v41, %s7224_s13 }
0x1483   :  { %3952 = vrot.lane.b32.xlu1 %v3941_v41, %s7225_s17  ;;  %3949 = vrot.lane.b32.xlu0 %v3941_v41, %s7223_s5 }
0x1487   :  { %3958 = vrot.lane.b32.xlu1 %v3941_v41, %s7227_s19  ;;  %3955 = vrot.lane.b32.xlu0 %v3941_v41, %s7228_s12 }
0x148b   :  { %3964 = vrot.lane.b32.xlu1 %v3941_v41, %s7214_s16  ;;  %3961 = vrot.lane.b32.xlu0 %v3941_v41, %s7229_s18 }
0x148f   :  { %3970 = vrot.lane.b32.xlu1 %v3941_v41, %s7230_s22  ;;  %3967 = vrot.lane.b32.xlu0 %v3941_v41, %s7231_s23 }
0x1493   :  { %3976 = vrot.lane.b32.xlu1 %v3941_v41, %s7232_s26  ;;  %3973 = vrot.lane.b32.xlu0 %v3941_v41, %s7233_s9 }
0x1497   :  { %3982 = vrot.lane.b32.xlu1 %v3941_v41, %s7234_s28  ;;  %3979 = vrot.lane.b32.xlu0 %v3941_v41, %s7235_s1 }
0x149b   :  { %3985 = vrot.lane.b32.xlu0 %v3941_v41, %s7236_s20 }
0x149f   :  { %4197 = vrot.lane.b32.xlu0 %v8529_v7, %s7224_s13 }
0x14a3   :  { %4200 = vrot.lane.b32.xlu0 %v8529_v7, %s7226_s21 }
0x14a7   :  { %4203 = vrot.lane.b32.xlu0 %v8529_v7, %s7223_s5 }
0x14ab   :  { %4206 = vrot.lane.b32.xlu0 %v8529_v7, %s7225_s17 }
0x14af   :  { %4209 = vrot.lane.b32.xlu0 %v8529_v7, %s7228_s12 }
0x14b3   :  { %4212 = vrot.lane.b32.xlu0 %v8529_v7, %s7227_s19 }
0x14b7   :  { %4215 = vrot.lane.b32.xlu0 %v8529_v7, %s7229_s18 }
0x14bb   :  { %4218 = vrot.lane.b32.xlu0 %v8529_v7, %s7214_s16 }
0x14bf   :  { %4221 = vrot.lane.b32.xlu0 %v8529_v7, %s7231_s23 }
0x14c3   :  { %4224 = vrot.lane.b32.xlu0 %v8529_v7, %s7230_s22 }
0x14f1   :  { %v3947_v10 = vpop.permute.xlu1 %3946  ;;  %v3944_v26 = vpop.permute.xlu0 %3943 }
0x14f2   :  { %v3988_v11 = vsel %vm854_vm1, %v3941_v41, %v3944_v26 }
0x14f3   :  { %v3989_v14 = vsel %vm856_vm2, %v3988_v11, %v3947_v10 }
0x14f5   :  { %v3953_v31 = vpop.permute.xlu1 %3952  ;;  %v3950_v12 = vpop.permute.xlu0 %3949 }
0x14f6   :  { %v3990_v22 = vsel %vm858_vm3, %v3989_v14, %v3950_v12 }
0x14f7   :  { %v3991_v17 = vsel %vm860_vm4, %v3990_v22, %v3953_v31 }
0x14f9   :  { %v3959_v27 = vpop.permute.xlu1 %3958  ;;  %v3956_v40 = vpop.permute.xlu0 %3955 }
0x14fa   :  { %v3992_v23 = vsel %vm862_vm5, %v3991_v17, %v3956_v40 }
0x14fb   :  { %v3993_v4 = vsel %vm864_vm6, %v3992_v23, %v3959_v27 }
0x14fd   :  { %v3965_v15 = vpop.permute.xlu1 %3964  ;;  %v3962_v6 = vpop.permute.xlu0 %3961 }
0x14fe   :  { %v3994_v19 = vsel %vm866_vm7, %v3993_v4, %v3962_v6 }
0x14ff   :  { %v3995_v29 = vsel %vm868_vm8, %v3994_v19, %v3965_v15 }
0x1501   :  { %v3971_v20 = vpop.permute.xlu1 %3970  ;;  %v3968_v45 = vpop.permute.xlu0 %3967 }
0x1502   :  { %v3996_v49 = vsel %vm870_vm9, %v3995_v29, %v3968_v45 }
0x1503   :  { %v3997_v33 = vsel %vm872_vm10, %v3996_v49, %v3971_v20 }
0x1505   :  { %v3977_v61 = vpop.permute.xlu1 %3976  ;;  %v3974_v63 = vpop.permute.xlu0 %3973 }
0x1506   :  { %v3998_v16 = vsel %vm874_vm11, %v3997_v33, %v3974_v63  ;;  %v4122_v33 = vld [vmem:[#allocation14] sm:$0x1] }
0x1507   :  { %v3999_v34 = vsel %vm876_vm12, %v3998_v16, %v3977_v61 }
0x1509   :  { %v3980_v53 = vpop.permute.xlu0 %3979  ;;  %v3983_v55 = vpop.permute.xlu1 %3982 }
0x150a   :  { %v4000_v30 = vsel %vm878_vm13, %v3999_v34, %v3980_v53  ;;  %v6711_v53 = vld [vmem:[%s8905_s15] ss:$12 sps:$4 sm:$0xff]  }
0x150b   :  { %v4001_v35 = vsel %vm880_vm14, %v4000_v30, %v3983_v55  ;;  %v6713_v55 = vld [vmem:[%s8905_s15 + $0x4] ss:$12 sps:$4 sm:$0xff]   ;;  %v6714_v30 = vld [vmem:[%s8905_s15 + $0x8] ss:$12 sps:$4 sm:$0xff]  }
0x150c   :  { %4471 = vmatprep.subr.bf16.mxu0 %v6713_v55 }
0x150d   :  { %v3986_v9 = vpop.permute.xlu0 %3985  ;;  %4472 = vmatpush1.bf16.msra.mxu0 %v6711_v53 }
0x150e   :  { %v4002_v50 = vsel %vm882_vm15, %v4001_v35, %v3986_v9  ;;  %v6715_v35 = vld [vmem:[%s8905_s15 + $0x18] ss:$12 sps:$4 sm:$0xff]   ;;  %v6717_v9 = vld [vmem:[%s8905_s15 + $0x1c] ss:$12 sps:$4 sm:$0xff]  }
0x150f   :  { %v4006_v37 = vrot.slane %v4002_v50, %v7676_v39  ;;  %v6718_v50 = vld [vmem:[%s8905_s15 + $0x20] ss:$12 sps:$4 sm:$0xff]   ;;  %4473 = vmatprep.subr.bf16.mxu0 %v6717_v9 }
0x1511   :  { %v8568_v38 = vsub.f32 %v8470_v3, %v4006_v37  ;;  %v8571_v43 = vsub.f32 %v8472_v47, %v4006_v37  ;;  %v8574_v44 = vsub.f32 %v8476_v25, %v4006_v37  ;;  %v8581_v56 = vsub.f32 %v8479_v18, %v4006_v37  ;;  %4474 = vmatpush1.bf16.msra.mxu0 %v6715_v35 }
0x1512   :  { %v8584_v57 = vsub.f32 %v8482_v21, %v4006_v37  ;;  %v8589_v58 = vsub.f32 %v8484_v46, %v4006_v37  ;;  %v8594_v60 = vsub.f32 %v8488_v48, %v4006_v37  ;;  %v8599_v21 = vsub.f32 %v8490_v13, %v4006_v37 }
0x1513   :  { %v4020_v5 = vmul.f32 %v8568_v38, %v8568_v38  ;;  %v4021_v8 = vmul.f32 %v8571_v43, %v8571_v43  ;;  %v4022_v3 = vmul.f32 %v8574_v44, %v8574_v44  ;;  %v4023_v25 = vmul.f32 %v8581_v56, %v8581_v56 }
0x1514   :  { %v4024_v18 = vmul.f32 %v8584_v57, %v8584_v57  ;;  %v4025_v62 = vmul.f32 %v8589_v58, %v8589_v58  ;;  %v8604_v46 = vsub.f32 %v8494_v36, %v4006_v37  ;;  %v4026_v41 = vmul.f32 %v8594_v60, %v8594_v60 }
0x1515   :  { %v4033_v47 = vadd.f32 %v4021_v8, %v4020_v5  ;;  %v8609_v48 = vsub.f32 %v8496_v42, %v4006_v37  ;;  %v4027_v10 = vmul.f32 %v8599_v21, %v8599_v21  ;;  %v8614_v13 = vsub.f32 %v8500_v51, %v4006_v37  ;;  %v6721_v5 = vld [vmem:[%s8905_s15 + $0x34] ss:$12 sps:$4 sm:$0xff]   ;;  %v6722_v8 = vld [vmem:[%s8905_s15 + $0x38] ss:$12 sps:$4 sm:$0xff]  }
0x1516   :  { %v4028_v11 = vmul.f32 %v8604_v46, %v8604_v46  ;;  %v8619_v36 = vsub.f32 %v8502_v52, %v4006_v37  ;;  %v8624_v42 = vsub.f32 %v8505_v54, %v4006_v37  ;;  %v6719_v37 = vld [vmem:[%s8905_s15 + $0x30] ss:$12 sps:$4 sm:$0xff]   ;;  %4475 = vmatprep.subr.bf16.mxu0 %v6721_v5 }
0x1517   :  { %v4034_v59 = vadd.f32 %v4033_v47, %v4022_v3  ;;  %v4029_v14 = vmul.f32 %v8609_v48, %v8609_v48  ;;  %v4030_v22 = vmul.f32 %v8614_v13, %v8614_v13  ;;  %4476 = vmatpush1.bf16.msra.mxu0 %v6719_v37  ;;  %v6723_v3 = vld [vmem:[%s8905_s15 + $0x48] ss:$12 sps:$4 sm:$0xff]   ;;  %v6725_v47 = vld [vmem:[%s8905_s15 + $0x4c] ss:$12 sps:$4 sm:$0xff]  }
0x1518   :  { %v4031_v51 = vmul.f32 %v8619_v36, %v8619_v36  ;;  %v4032_v40 = vmul.f32 %v8624_v42, %v8624_v42  ;;  %4477 = vmatprep.subr.bf16.mxu0 %v6725_v47 }
0x1519   :  { %v4035_v24 = vadd.f32 %v4034_v59, %v4023_v25  ;;  %v6726_v25 = vld [vmem:[%s8905_s15 + $0x50] ss:$12 sps:$4 sm:$0xff]   ;;  %v6727_v59 = vld [vmem:[%s8905_s15 + $0x60] ss:$12 sps:$4 sm:$0xff]  }
0x151b   :  { %v4036_v2 = vadd.f32 %v4035_v24, %v4024_v18  ;;  %4478 = vmatpush1.bf16.msra.mxu0 %v6723_v3  ;;  %v6729_v18 = vld [vmem:[%s8905_s15 + $0x64] ss:$12 sps:$4 sm:$0xff]   ;;  %v6730_v24 = vld [vmem:[%s8905_s15 + $0x68] ss:$12 sps:$4 sm:$0xff]  }
0x151c   :  { %4479 = vmatprep.subr.bf16.mxu0 %v6729_v18 }
0x151d   :  { %v4037_v32 = vadd.f32 %v4036_v2, %v4025_v62  ;;  %v6731_v62 = vld [vmem:[%s8905_s15 + $0x78] ss:$12 sps:$4 sm:$0xff]   ;;  %v6733_v2 = vld [vmem:[%s8905_s15 + $0x7c] ss:$12 sps:$4 sm:$0xff]  }
0x151f   :  { %v4038_v26 = vadd.f32 %v4037_v32, %v4026_v41  ;;  %4480 = vmatpush1.bf16.msra.mxu0 %v6727_v59  ;;  %v6734_v41 = vld [vmem:[%s8905_s15 + $0x80] ss:$12 sps:$4 sm:$0xff]   ;;  %v6735_v32 = vld [vmem:[%s8905_s15 + $0x90] ss:$12 sps:$4 sm:$0xff]  }
0x1520   :  { %4481 = vmatprep.subr.bf16.mxu0 %v6733_v2 }
0x1521   :  { %v4039_v31 = vadd.f32 %v4038_v26, %v4027_v10  ;;  %v6737_v10 = vld [vmem:[%s8905_s15 + $0x94] ss:$12 sps:$4 sm:$0xff]   ;;  %v6738_v26 = vld [vmem:[%s8905_s15 + $0x98] ss:$12 sps:$4 sm:$0xff]  }
0x1523   :  { %v4040_v12 = vadd.f32 %v4039_v31, %v4028_v11  ;;  %4482 = vmatpush1.bf16.msra.mxu0 %v6731_v62  ;;  %v6741_v11 = vld [vmem:[%s8905_s15 + $0xac] ss:$12 sps:$4 sm:$0xff]   ;;  %v6742_v31 = vld [vmem:[%s8905_s15 + $0xb0] ss:$12 sps:$4 sm:$0xff]  }
0x1524   :  { %4483 = vmatprep.subr.bf16.mxu0 %v6737_v10 }
0x1525   :  { %v4041_v27 = vadd.f32 %v4040_v12, %v4029_v14  ;;  %v6739_v14 = vld [vmem:[%s8905_s15 + $0xa8] ss:$12 sps:$4 sm:$0xff]   ;;  %v4198_v12 = vpop.permute.xlu0 %4197 }
0x1527   :  { %v4042_v17 = vadd.f32 %v4041_v27, %v4030_v22  ;;  %4484 = vmatpush1.bf16.msra.mxu0 %v6735_v32 }
0x1528   :  { %4485 = vmatprep.subr.bf16.mxu0 %v6741_v11 }
0x1529   :  { %v4043_v52 = vadd.f32 %v4042_v17, %v4031_v51  ;;  %v4201_v22 = vpop.permute.xlu0 %4200 }
0x152b   :  { %v4044_v23 = vadd.f32 %v4043_v52, %v4032_v40  ;;  %4486 = vmatpush1.bf16.msra.mxu0 %v6739_v14 }
0x152d   :  { %v4045_v15 = vrot.slane %v4044_v23, 4  ;;  %v4204_v27 = vpop.permute.xlu0 %4203 }
0x152f   :  { %v4046_v4 = vadd.f32 %v4045_v15, %v4044_v23 }
0x1531   :  { %v4047_v6 = vrot.slane %v4046_v4, 2  ;;  %v4207_v51 = vpop.permute.xlu0 %4206 }
0x1533   :  { %v4048_v19 = vadd.f32 %v4047_v6, %v4046_v4 }
0x1535   :  { %v4049_v20 = vrot.slane %v4048_v19, 1  ;;  %v4210_v17 = vpop.permute.xlu0 %4209 }
0x1537   :  { %v4050_v54 = vadd.f32 %v4049_v20, %v4048_v19 }
0x1539   :  { %6168 = vmatmul.mubr.f32.vlgmr.msra.gmra.mrb[76].mxu1 %v4050_v54  ;;  %v4213_v52 = vpop.permute.xlu0 %4212  ;;  %v4242_v54 = vsel %vm854_vm1, %v8525_v1, %v4198_v12 }
0x153a   :  { %6186 = vmatprep.mubr.msk.bf16.mxu1 %vm7221_vm0, %v7220_v0  ;;  %6171 = vmatpush3.bf16.msra.mxu1 %v6714_v30 }
0x153b   :  { %6172 = vmatprep.subr.bf16.mxu1 %v7220_v0 }
0x153d   :  { %v4216_v4 = vpop.permute.xlu0 %4215 }
0x153e   :  { %6173 = vmatpush3.bf16.msra.mxu1 %v6718_v50 }
0x153f   :  { %6174 = vmatprep.subr.bf16.mxu1 %v7220_v0 }
0x1541   :  { %v4219_v19 = vpop.permute.xlu0 %4218 }
0x1542   :  { %6175 = vmatpush3.bf16.msra.mxu1 %v6722_v8 }
0x1543   :  { %6176 = vmatprep.subr.bf16.mxu1 %v7220_v0 }
0x1546   :  { %6177 = vmatpush3.bf16.msra.mxu1 %v6726_v25 }
0x1547   :  { %6178 = vmatprep.subr.bf16.mxu1 %v7220_v0 }
0x154a   :  { %6179 = vmatpush3.bf16.msra.mxu1 %v6730_v24 }
0x154b   :  { %6180 = vmatprep.subr.bf16.mxu1 %v7220_v0 }
0x154e   :  { %6181 = vmatpush3.bf16.msra.mxu1 %v6734_v41 }
0x154f   :  { %6182 = vmatprep.subr.bf16.mxu1 %v7220_v0 }
0x1552   :  { %6183 = vmatpush3.bf16.msra.mxu1 %v6738_v26 }
0x1553   :  { %6184 = vmatprep.subr.bf16.mxu1 %v7220_v0 }
0x1556   :  { %6185 = vmatpush3.bf16.msra.mxu1 %v6742_v31 }
0x160c   :  { %v4117_v29 = vpop.f32.mrb[76].mxu1 }
0x160d   :  { %v4121_v45 = vmul.f32 0.000739645, %v4117_v29  ;;  %v6169_v49 = vpop.f32.mrb[77].mxu1 }
0x160f   :  { %v4123_v61 = vadd.f32 1e-05, %v4121_v45  ;;  %v4222_v45 = vpop.permute.xlu0 %4221 }
0x1611   :  { %6753 = vrsqrt.f32 %v4123_v61 }
0x161b   :  { %v6754_v63 = vpop.eup %6753 }
0x161c   :  { %v8634_v16 = vmul.f32 %v6754_v63, %v4122_v33  ;;  %v4225_v33 = vpop.permute.xlu0 %4224 }
0x161e   :  { %v8638_v34 = vrot.slane %v8634_v16, %v7676_v39 }
0x1620   :  { %4134 = vrot.lane.b32.xlu0 %v8638_v34, %s7226_s21  ;;  %4131 = vrot.lane.b32.xlu1 %v8638_v34, %s7224_s13 }
0x1624   :  { %4137 = vrot.lane.b32.xlu1 %v8638_v34, %s7223_s5  ;;  %4227 = vrot.lane.b32.xlu0 %v8529_v7, %s7233_s9 }
0x1628   :  { %4140 = vrot.lane.b32.xlu1 %v8638_v34, %s7225_s17  ;;  %4230 = vrot.lane.b32.xlu0 %v8529_v7, %s7232_s26 }
0x162c   :  { %4143 = vrot.lane.b32.xlu1 %v8638_v34, %s7228_s12  ;;  %4233 = vrot.lane.b32.xlu0 %v8529_v7, %s7235_s1 }
0x1630   :  { %4146 = vrot.lane.b32.xlu1 %v8638_v34, %s7227_s19  ;;  %4239 = vrot.lane.b32.xlu0 %v8529_v7, %s7236_s20 }
0x1634   :  { %4149 = vrot.lane.b32.xlu1 %v8638_v34, %s7229_s18 }
0x1638   :  { %4152 = vrot.lane.b32.xlu1 %v8638_v34, %s7214_s16  ;;  %s7238_s16 = smov [#allocation20]  }
0x1639   :  { %s4923_s5 = sshll.u32 %s7238_s16, 4  ;;  %s4924_s5 = int_to_ptr.vmem [resolvable:$true] %s4923_s5 }
0x163a   :  { %s7087_s17 = scalar_lea.vmem %s4924_s5, 128  ;;  %p7092_p11 = scmp.lt.s32.totalorder %s4924_s5, %s4924_s5 }
0x163b   :  { %p7088_p10 = scmp.ne.s32.totalorder %s4924_s5, %s7087_s17  ;;  %p7093_p12 = scmp.lt.s32.totalorder %s7087_s17, %s7087_s17 }
0x163c   :  { %4155 = vrot.lane.b32.xlu1 %v8638_v34, %s7231_s23 }
0x163d   :  { %p7094_p13 = por %p7093_p12, %p7092_p11 }
0x163f   :  { %p7095_p0 = pnand %p7094_p13, %p7088_p10 }
0x1640   :  { %4158 = vrot.lane.b32.xlu1 %v8638_v34, %s7230_s22 }
0x1644   :  { %4161 = vrot.lane.b32.xlu1 %v8638_v34, %s7233_s9 }
0x1648   :  { %4164 = vrot.lane.b32.xlu1 %v8638_v34, %s7232_s26 }
0x164c   :  { %4167 = vrot.lane.b32.xlu1 %v8638_v34, %s7235_s1 }
0x1650   :  { %4170 = vrot.lane.b32.xlu1 %v8638_v34, %s7234_s28 }
0x1654   :  { %4173 = vrot.lane.b32.xlu1 %v8638_v34, %s7236_s20 }
0x1658   :  { %4236 = vrot.lane.b32.xlu1 %v8529_v7, %s7234_s28  ;;  %v4243_v7 = vsel %vm856_vm2, %v4242_v54, %v4201_v22 }
0x1659   :  { %v4244_v61 = vsel %vm858_vm3, %v4243_v7, %v4204_v27 }
0x165a   :  { %v4245_v34 = vsel %vm860_vm4, %v4244_v61, %v4207_v51 }
0x165b   :  { %v4246_v53 = vsel %vm862_vm5, %v4245_v34, %v4210_v17 }
0x165c   :  { %v4247_v35 = vsel %vm864_vm6, %v4246_v53, %v4213_v52 }
0x165d   :  { %v4248_v50 = vsel %vm866_vm7, %v4247_v35, %v4216_v4 }
0x165e   :  { %v4249_v3 = vsel %vm868_vm8, %v4248_v50, %v4219_v19 }
0x165f   :  { %v4250_v18 = vsel %vm870_vm9, %v4249_v3, %v4222_v45 }
0x1660   :  { %v4251_v32 = vsel %vm872_vm10, %v4250_v18, %v4225_v33 }
0x1692   :  { %v4132_v40 = vpop.permute.xlu1 %4131  ;;  %v4135_v30 = vpop.permute.xlu0 %4134 }
0x1693   :  { %v4176_v1 = vsel %vm854_vm1, %v8634_v16, %v4132_v40 }
0x1694   :  { %v4177_v5 = vsel %vm856_vm2, %v4176_v1, %v4135_v30 }
0x1696   :  { %v4138_v23 = vpop.permute.xlu1 %4137  ;;  %v4228_v37 = vpop.permute.xlu0 %4227 }
0x1697   :  { %v4178_v47 = vsel %vm858_vm3, %v4177_v5, %v4138_v23  ;;  %v4252_v14 = vsel %vm874_vm11, %v4251_v32, %v4228_v37 }
0x169a   :  { %v4141_v15 = vpop.permute.xlu1 %4140  ;;  %v4231_v16 = vpop.permute.xlu0 %4230 }
0x169b   :  { %v4179_v25 = vsel %vm860_vm4, %v4178_v47, %v4141_v15  ;;  %v4253_v40 = vsel %vm876_vm12, %v4252_v14, %v4231_v16  ;;  %v8806_v14 = vld [vmem:[#allocation17] ss:$0 sm:$0xff] }
0x169e   :  { %v4144_v6 = vpop.permute.xlu1 %4143  ;;  %v4234_v22 = vpop.permute.xlu0 %4233 }
0x169f   :  { %v4180_v59 = vsel %vm862_vm5, %v4179_v25, %v4144_v6  ;;  %v4254_v4 = vsel %vm878_vm13, %v4253_v40, %v4234_v22 }
0x16a2   :  { %v4147_v20 = vpop.permute.xlu1 %4146  ;;  %v4240_v15 = vpop.permute.xlu0 %4239 }
0x16a3   :  { %v4181_v24 = vsel %vm864_vm6, %v4180_v59, %v4147_v20 }
0x16a6   :  { %v4150_v29 = vpop.permute.xlu1 %4149 }
0x16a7   :  { %v4182_v2 = vsel %vm866_vm7, %v4181_v24, %v4150_v29 }
0x16aa   :  { %v4153_v49 = vpop.permute.xlu1 %4152 }
0x16ab   :  { %v4183_v41 = vsel %vm868_vm8, %v4182_v2, %v4153_v49 }
0x16ae   :  { %v4156_v63 = vpop.permute.xlu1 %4155 }
0x16af   :  { %v4184_v10 = vsel %vm870_vm9, %v4183_v41, %v4156_v63 }
0x16b2   :  { %v4159_v55 = vpop.permute.xlu1 %4158 }
0x16b3   :  { %v4185_v26 = vsel %vm872_vm10, %v4184_v10, %v4159_v55 }
0x16b6   :  { %v4162_v9 = vpop.permute.xlu1 %4161 }
0x16b7   :  { %v4186_v31 = vsel %vm874_vm11, %v4185_v26, %v4162_v9 }
0x16ba   :  { %v4165_v8 = vpop.permute.xlu1 %4164 }
0x16bb   :  { %v4187_v12 = vsel %vm876_vm12, %v4186_v31, %v4165_v8 }
0x16be   :  { %v4168_v62 = vpop.permute.xlu1 %4167 }
0x16bf   :  { %v4188_v27 = vsel %vm878_vm13, %v4187_v12, %v4168_v62  ;;  %v5223_v12 = vmul.f32 -1.442695, %v8806_v14 }
0x16c1   :  { %6755 = vpow2.f32 %v5223_v12 }
0x16c2   :  { %v4171_v11 = vpop.permute.xlu1 %4170 }
0x16c3   :  { %v4189_v51 = vsel %vm880_vm14, %v4188_v27, %v4171_v11 }
0x16c6   :  { %v4174_v17 = vpop.permute.xlu1 %4173 }
0x16c7   :  { %v4190_v52 = vsel %vm882_vm15, %v4189_v51, %v4174_v17 }
0x16c8   :  { %v8741_v23 = vrot.slane %v4190_v52, %v7676_v39 }
0x16ca   :  { %v4237_v6 = vpop.permute.xlu1 %4236  ;;  %v4261_v29 = vmul.f32 %v8741_v23, %v8568_v38  ;;  %v4262_v45 = vmul.f32 %v8741_v23, %v8571_v43  ;;  %v4263_v63 = vmul.f32 %v8741_v23, %v8574_v44  ;;  %v4264_v34 = vmul.f32 %v8741_v23, %v8581_v56 }
0x16cb   :  { %v4255_v19 = vsel %vm880_vm14, %v4254_v4, %v4237_v6  ;;  %v4265_v44 = vmul.f32 %v8741_v23, %v8584_v57  ;;  %v4266_v56 = vmul.f32 %v8741_v23, %v8589_v58  ;;  %v4267_v57 = vmul.f32 %v8741_v23, %v8594_v60 }
0x16cc   :  { %v4256_v20 = vsel %vm882_vm15, %v4255_v19, %v4240_v15  ;;  %v4268_v58 = vmul.f32 %v8741_v23, %v8599_v21  ;;  %v4269_v60 = vmul.f32 %v8741_v23, %v8604_v46  ;;  %v4270_v21 = vmul.f32 %v8741_v23, %v8609_v48 }
0x16cd   :  { %v8747_v54 = vrot.slane %v4256_v20, %v7676_v39  ;;  %v4271_v46 = vmul.f32 %v8741_v23, %v8614_v13  ;;  %v4272_v48 = vmul.f32 %v8741_v23, %v8619_v36  ;;  %v4273_v13 = vmul.f32 %v8741_v23, %v8624_v42  ;;  %v6756_v42 = vpop.eup %6755 }
0x16ce   :  { %v4820_v22 = vadd.f32 1.0, %v6756_v42 }
0x16cf   :  { %v4278_v7 = vadd.f32 %v8747_v54, %v4261_v29  ;;  %v4279_v49 = vadd.f32 %v8747_v54, %v4262_v45  ;;  %v4280_v53 = vadd.f32 %v8747_v54, %v4263_v63  ;;  %v4281_v38 = vadd.f32 %v8747_v54, %v4264_v34 }
0x16d0   :  { %v4282_v35 = vadd.f32 %v8747_v54, %v4265_v44  ;;  %v4283_v9 = vadd.f32 %v8747_v54, %v4266_v56  ;;  %v4284_v5 = vadd.f32 %v8747_v54, %v4267_v57  ;;  %v4285_v8 = vadd.f32 %v8747_v54, %v4268_v58 }
0x16d1   :  { %v4291_v61 = vmax.f32 %v4278_v7, 0.0  ;;  %v4292_v33 = vmax.f32 %v4279_v49, 0.0  ;;  %v4293_v43 = vmax.f32 %v4280_v53, 0.0  ;;  %v4294_v55 = vmax.f32 %v4281_v38, 0.0 }
0x16d2   :  { %v4295_v1 = vmax.f32 %v4282_v35, 0.0  ;;  %v4296_v50 = vmax.f32 %v4283_v9, 0.0  ;;  %v4297_v3 = vmax.f32 %v4284_v5, 0.0  ;;  %v4298_v47 = vmax.f32 %v4285_v8, 0.0 }
0x16d3   :  { %v4304_v39 = vpack.c.bf16 %v4292_v33, %v4291_v61  ;;  %v4305_v30 = vpack.c.bf16 %v4294_v55, %v4293_v43  ;;  %v4286_v59 = vadd.f32 %v8747_v54, %v4269_v60  ;;  %v4287_v18 = vadd.f32 %v8747_v54, %v4270_v21 }
0x16d4   :  { %v4306_v37 = vpack.c.bf16 %v4296_v50, %v4295_v1  ;;  %v4307_v25 = vpack.c.bf16 %v4298_v47, %v4297_v3  ;;  %v4288_v2 = vadd.f32 %v8747_v54, %v4271_v46  ;;  %v4289_v41 = vadd.f32 %v8747_v54, %v4272_v48 }
0x16d5   :  { %4504 = vmatmul.mubr.bf16.vlgmr.msra.gmra.mrb[80].mxu0 %v4304_v39  ;;  %6187 = vmatmul.mubr.bf16.vlgmr.msra.gmra.mrb[80].mxu1 %v4304_v39  ;;  %v4299_v24 = vmax.f32 %v4286_v59, 0.0  ;;  %v4300_v62 = vmax.f32 %v4287_v18, 0.0  ;;  %v4290_v36 = vadd.f32 %v8747_v54, %v4273_v13  ;;  %6757 = vrcp.f32 %v4820_v22 }
0x16d6   :  { %4513 = vmatprep.mubr.bf16.mxu0 %v7237_v28  ;;  %6190 = vmatprep.mubr.msk.bf16.mxu1 %vm7221_vm0, %v7220_v0  ;;  %v4301_v32 = vmax.f32 %v4288_v2, 0.0  ;;  %v4302_v10 = vmax.f32 %v4289_v41, 0.0 }
0x16d7   :  { %v4308_v16 = vpack.c.bf16 %v4300_v62, %v4299_v24  ;;  %v4303_v11 = vmax.f32 %v4290_v36, 0.0 }
0x16d8   :  { %v4309_v26 = vpack.c.bf16 %v4302_v10, %v4301_v32 }
0x16d9   :  { %v4310_v31 = vpack.c.bf16 %v4303_v11, %v4303_v11 }
0x16dd   :  { %4514 = vmatmul.mubr.bf16.gmra.mrb[84].mxu0 %v4305_v30  ;;  %6191 = vmatmul.mubr.bf16.gmra.mrb[84].mxu1 %v4305_v30 }
0x16de   :  { %4523 = vmatprep.mubr.bf16.mxu0 %v7237_v28  ;;  %6194 = vmatprep.mubr.msk.bf16.mxu1 %vm7221_vm0, %v7220_v0 }
0x16df   :  { %v6758_v27 = vpop.eup %6757 }
0x16e5   :  { %4524 = vmatmul.mubr.bf16.gmra.mrb[88].mxu0 %v4306_v37  ;;  %6195 = vmatmul.mubr.bf16.gmra.mrb[88].mxu1 %v4306_v37 }
0x16e6   :  { %4533 = vmatprep.mubr.bf16.mxu0 %v7237_v28  ;;  %6198 = vmatprep.mubr.msk.bf16.mxu1 %vm7221_vm0, %v7220_v0 }
0x16ed   :  { %4534 = vmatmul.mubr.bf16.gmra.mrb[92].mxu0 %v4307_v25  ;;  %6199 = vmatmul.mubr.bf16.gmra.mrb[92].mxu1 %v4307_v25 }
0x16ee   :  { %4543 = vmatprep.mubr.bf16.mxu0 %v7237_v28  ;;  %6202 = vmatprep.mubr.msk.bf16.mxu1 %vm7221_vm0, %v7220_v0 }
0x16f5   :  { %4544 = vmatmul.mubr.bf16.gmra.mrb[96].mxu0 %v4308_v16  ;;  %6203 = vmatmul.mubr.bf16.gmra.mrb[96].mxu1 %v4308_v16 }
0x16f6   :  { %4553 = vmatprep.mubr.bf16.mxu0 %v7237_v28  ;;  %6206 = vmatprep.mubr.msk.bf16.mxu1 %vm7221_vm0, %v7220_v0 }
0x16fd   :  { %4554 = vmatmul.mubr.bf16.gmra.mrb[100].mxu0 %v4309_v26  ;;  %6207 = vmatmul.mubr.bf16.gmra.mrb[100].mxu1 %v4309_v26 }
0x16fe   :  { %4563 = vmatprep.mubr.bf16.mxu0 %v7237_v28  ;;  %6210 = vmatprep.mubr.msk.bf16.mxu1 %vm7221_vm0, %v7220_v0 }
0x1705   :  { %4564 = vmatmul.mubr.bf16.gmra.mrb[104].mxu0 %v4310_v31  ;;  %6211 = vmatmul.mubr.bf16.gmra.mrb[104].mxu1 %v4310_v31 }
0x1706   :  { %7098 = shalt.err (!%p7095_p0)
}
0x1707   :  { %s7099_s21 = scalar_lea.hbm %s7440_s25, 128 }
0x1708   :  { %p7100_p1 = scmp.ne.s32.totalorder %s7440_s25, %s7099_s21  ;;  %p7103_p2 = scmp.lt.u32.totalorder %s7099_s21, %s7440_s25 }
0x170a   :  { %p7105_p3 = pnand %p7103_p2, %p7100_p1 }
0x170c   :  { %7108 = shalt.err (!%p7105_p3)
}
0x170d   :  { %4926 = dma.vmem_to_hbm [thread:$0]  %s4924_s5, 128, %s7440_s25, [#allocation21]   ;;  %4904 = vst [vmem:[#allocation19 + $0xd8] sm:$0xff] %v6758_v27 }
0x170e   :  { %s7239_s19 = smov [#allocation22]  }
0x170f   :  { %s4933_s12 = sshll.u32 %s7239_s19, 4  ;;  %s4934_s12 = int_to_ptr.vmem [resolvable:$true] %s4933_s12 }
0x1710   :  { %s7109_s18 = scalar_lea.vmem %s4934_s12, 128  ;;  %p7114_p5 = scmp.lt.s32.totalorder %s4934_s12, %s4934_s12 }
0x1711   :  { %p7110_p4 = scmp.ne.s32.totalorder %s4934_s12, %s7109_s18  ;;  %p7115_p6 = scmp.lt.s32.totalorder %s7109_s18, %s7109_s18 }
0x1713   :  { %p7116_p7 = por %p7115_p6, %p7114_p5 }
0x1715   :  { %p7117_p8 = pnand %p7116_p7, %p7110_p4 }
0x1717   :  { %7120 = shalt.err (!%p7117_p8)
}
0x1718   :  { %s7121_s22 = scalar_lea.hbm %s7445_s14, 128 }
0x1719   :  { %p7122_p9 = scmp.ne.s32.totalorder %s7445_s14, %s7121_s22  ;;  %p7125_p10 = scmp.lt.u32.totalorder %s7121_s22, %s7445_s14 }
0x171b   :  { %p7127_p11 = pnand %p7125_p10, %p7122_p9 }
0x171d   :  { %7130 = shalt.err (!%p7127_p11)
}
0x171e   :  { %4936 = dma.vmem_to_hbm [thread:$0]  %s4934_s12, 128, %s7445_s14, [#allocation21]  }
0x171f   :  { %s7240_s25 = smov [#allocation19]  }
0x1720   :  { %s4910_s14 = sshll.u32 %s7240_s25, 4  ;;  %s4911_s14 = int_to_ptr.vmem [resolvable:$true] %s4910_s14 }
0x1721   :  { %s7131_s23 = scalar_lea.vmem %s4911_s14, 3584  ;;  %p7136_p13 = scmp.lt.s32.totalorder %s4911_s14, %s4911_s14 }
0x1722   :  { %p7132_p12 = scmp.ne.s32.totalorder %s4911_s14, %s7131_s23  ;;  %p7137_p0 = scmp.lt.s32.totalorder %s7131_s23, %s7131_s23 }
0x1724   :  { %p7138_p1 = por %p7137_p0, %p7136_p13 }
0x1726   :  { %p7139_p2 = pnand %p7138_p1, %p7132_p12 }
0x17a8   :  { %v4505_v0 = vpop.f32.mrb[80].mxu0  ;;  %v4606_v28 = vpop.f32.mrb[80].mxu1 }
0x17a9   :  { %v4681_v51 = vadd.f32 %v8806_v14, %v4505_v0  ;;  %v4507_v17 = vpop.f32.mrb[81].mxu0  ;;  %v6188_v40 = vpop.f32.mrb[81].mxu1 }
0x17aa   :  { %v4682_v52 = vadd.f32 %v8806_v14, %v4507_v17  ;;  %v4509_v23 = vpop.f32.mrb[82].mxu0  ;;  %v4609_v15 = vpop.f32.mrb[82].mxu1 }
0x17ab   :  { %v5196_v4 = vmul.f32 -1.442695, %v4681_v51  ;;  %v4661_v6 = vadd.f32 %v4606_v28, %v4509_v23  ;;  %v4511_v19 = vpop.f32.mrb[83].mxu0  ;;  %v6189_v20 = vpop.f32.mrb[83].mxu1 }
0x17ac   :  { %v5197_v54 = vmul.f32 -1.442695, %v4682_v52  ;;  %v4684_v29 = vadd.f32 %v8806_v14, %v4511_v19 }
0x17ad   :  { %6759 = vpow2.f32 %v5196_v4  ;;  %v4683_v45 = vadd.f32 %v8806_v14, %v4661_v6 }
0x17ae   :  { %6761 = vpow2.f32 %v5197_v54  ;;  %v5199_v7 = vmul.f32 -1.442695, %v4684_v29 }
0x17af   :  { %v5198_v49 = vmul.f32 -1.442695, %v4683_v45 }
0x17b0   :  { %6763 = vpow2.f32 %v5199_v7  ;;  %v4515_v61 = vpop.f32.mrb[84].mxu0  ;;  %v4614_v33 = vpop.f32.mrb[84].mxu1 }
0x17b1   :  { %6765 = vpow2.f32 %v5198_v49  ;;  %v4662_v63 = vadd.f32 %v4609_v15, %v4515_v61  ;;  %v4517_v34 = vpop.f32.mrb[85].mxu0  ;;  %v6192_v39 = vpop.f32.mrb[85].mxu1 }
0x17b2   :  { %v4686_v53 = vadd.f32 %v8806_v14, %v4517_v34  ;;  %v4519_v38 = vpop.f32.mrb[86].mxu0  ;;  %v4617_v43 = vpop.f32.mrb[86].mxu1 }
0x17b3   :  { %v4685_v55 = vadd.f32 %v8806_v14, %v4662_v63  ;;  %v4663_v44 = vadd.f32 %v4614_v33, %v4519_v38  ;;  %v4521_v56 = vpop.f32.mrb[87].mxu0  ;;  %v6193_v30 = vpop.f32.mrb[87].mxu1 }
0x17b4   :  { %v5201_v35 = vmul.f32 -1.442695, %v4686_v53  ;;  %v4688_v9 = vadd.f32 %v8806_v14, %v4521_v56 }
0x17b5   :  { %v5200_v1 = vmul.f32 -1.442695, %v4685_v55  ;;  %v4687_v50 = vadd.f32 %v8806_v14, %v4663_v44 }
0x17b6   :  { %6767 = vpow2.f32 %v5201_v35  ;;  %v5203_v57 = vmul.f32 -1.442695, %v4688_v9 }
0x17b7   :  { %v6760_v58 = vpop.eup %6759  ;;  %6769 = vpow2.f32 %v5200_v1  ;;  %v5202_v37 = vmul.f32 -1.442695, %v4687_v50 }
0x17b8   :  { %v6762_v5 = vpop.eup %6761  ;;  %v4793_v8 = vadd.f32 1.0, %v6760_v58  ;;  %6771 = vpow2.f32 %v5203_v57  ;;  %v4525_v3 = vpop.f32.mrb[88].mxu0 }
0x17b9   :  { %v4622_v47 = vpop.f32.mrb[88].mxu1  ;;  %v4794_v60 = vadd.f32 1.0, %v6762_v5  ;;  %6773 = vpow2.f32 %v5202_v37  ;;  %v4664_v21 = vadd.f32 %v4617_v43, %v4525_v3  ;;  %v4527_v25 = vpop.f32.mrb[89].mxu0 }
0x17ba   :  { %v6196_v59 = vpop.f32.mrb[89].mxu1  ;;  %v6764_v18 = vpop.eup %6763  ;;  %6775 = vrcp.f32 %v4793_v8  ;;  %v4690_v24 = vadd.f32 %v8806_v14, %v4527_v25 }
0x17bb   :  { %v4529_v62 = vpop.f32.mrb[90].mxu0  ;;  %v4625_v46 = vpop.f32.mrb[90].mxu1  ;;  %6777 = vrcp.f32 %v4794_v60  ;;  %v4796_v16 = vadd.f32 1.0, %v6764_v18  ;;  %v4689_v2 = vadd.f32 %v8806_v14, %v4664_v21 }
0x17bc   :  { %v6766_v48 = vpop.eup %6765  ;;  %v4665_v41 = vadd.f32 %v4622_v47, %v4529_v62  ;;  %v4531_v32 = vpop.f32.mrb[91].mxu0  ;;  %v5205_v26 = vmul.f32 -1.442695, %v4690_v24 }
0x17bd   :  { %v6197_v10 = vpop.f32.mrb[91].mxu1  ;;  %v4795_v13 = vadd.f32 1.0, %v6766_v48  ;;  %v4692_v36 = vadd.f32 %v8806_v14, %v4531_v32  ;;  %6779 = vrcp.f32 %v4796_v16  ;;  %v5204_v11 = vmul.f32 -1.442695, %v4689_v2 }
0x17be   :  { %v4691_v31 = vadd.f32 %v8806_v14, %v4665_v41 }
0x17bf   :  { %6781 = vrcp.f32 %v4795_v13  ;;  %v5207_v12 = vmul.f32 -1.442695, %v4692_v36 }
0x17c0   :  { %6783 = vpow2.f32 %v5204_v11  ;;  %v5206_v42 = vmul.f32 -1.442695, %v4691_v31  ;;  %v6768_v22 = vpop.eup %6767  ;;  %v4535_v27 = vpop.f32.mrb[92].mxu0 }
0x17c1   :  { %6785 = vpow2.f32 %v5205_v26  ;;  %v4630_v0 = vpop.f32.mrb[92].mxu1  ;;  %v6770_v28 = vpop.eup %6769  ;;  %v4798_v51 = vadd.f32 1.0, %v6768_v22  ;;  %v4666_v17 = vadd.f32 %v4625_v46, %v4535_v27 }
0x17c2   :  { %6787 = vpow2.f32 %v5206_v42  ;;  %v4537_v40 = vpop.f32.mrb[93].mxu0  ;;  %v6200_v52 = vpop.f32.mrb[93].mxu1  ;;  %v4797_v15 = vadd.f32 1.0, %v6770_v28 }
0x17c3   :  { %v6772_v23 = vpop.eup %6771  ;;  %6789 = vpow2.f32 %v5207_v12  ;;  %v4694_v4 = vadd.f32 %v8806_v14, %v4537_v40  ;;  %v4539_v6 = vpop.f32.mrb[94].mxu0  ;;  %v4693_v29 = vadd.f32 %v8806_v14, %v4666_v17 }
0x17c4   :  { %v4633_v19 = vpop.f32.mrb[94].mxu1  ;;  %v6774_v20 = vpop.eup %6773  ;;  %6791 = vrcp.f32 %v4798_v51  ;;  %v4800_v54 = vadd.f32 1.0, %v6772_v23  ;;  %v4667_v45 = vadd.f32 %v4630_v0, %v4539_v6 }
0x17c5   :  { %v4541_v7 = vpop.f32.mrb[95].mxu0  ;;  %v6201_v49 = vpop.f32.mrb[95].mxu1  ;;  %6793 = vrcp.f32 %v4797_v15  ;;  %v4799_v33 = vadd.f32 1.0, %v6774_v20  ;;  %v5209_v63 = vmul.f32 -1.442695, %v4694_v4 }
0x17c6   :  { %v6776_v61 = vpop.eup %6775  ;;  %v4696_v34 = vadd.f32 %v8806_v14, %v4541_v7  ;;  %6795 = vrcp.f32 %v4800_v54  ;;  %v5208_v53 = vmul.f32 -1.442695, %v4693_v29  ;;  %v4695_v38 = vadd.f32 %v8806_v14, %v4667_v45 }
0x17c7   :  { %v6778_v39 = vpop.eup %6777  ;;  %4877 = vst [vmem:[#allocation19] sm:$0xff] %v6776_v61  ;;  %6797 = vrcp.f32 %v4799_v33 }
0x17c8   :  { %4878 = vst [vmem:[#allocation19 + $0x8] sm:$0xff] %v6778_v39  ;;  %v5211_v43 = vmul.f32 -1.442695, %v4696_v34  ;;  %v6780_v55 = vpop.eup %6779  ;;  %6799 = vpow2.f32 %v5208_v53  ;;  %v5210_v44 = vmul.f32 -1.442695, %v4695_v38  ;;  %v4545_v30 = vpop.f32.mrb[96].mxu0 }
0x17c9   :  { %v6782_v56 = vpop.eup %6781  ;;  %4880 = vst [vmem:[#allocation19 + $0x18] sm:$0xff] %v6780_v55  ;;  %6801 = vpow2.f32 %v5209_v63  ;;  %v4638_v35 = vpop.f32.mrb[96].mxu1  ;;  %v4668_v1 = vadd.f32 %v4633_v19, %v4545_v30 }
0x17ca   :  { %v6784_v9 = vpop.eup %6783  ;;  %4879 = vst [vmem:[#allocation19 + $0x10] sm:$0xff] %v6782_v56  ;;  %6803 = vpow2.f32 %v5210_v44  ;;  %v4547_v50 = vpop.f32.mrb[97].mxu0 }
0x17cb   :  { %v6204_v57 = vpop.f32.mrb[97].mxu1  ;;  %v6786_v58 = vpop.eup %6785  ;;  %v4801_v37 = vadd.f32 1.0, %v6784_v9  ;;  %6805 = vpow2.f32 %v5211_v43  ;;  %v4698_v5 = vadd.f32 %v8806_v14, %v4547_v50  ;;  %v4697_v21 = vadd.f32 %v8806_v14, %v4668_v1 }
0x17cc   :  { %v4549_v8 = vpop.f32.mrb[98].mxu0  ;;  %v4641_v3 = vpop.f32.mrb[98].mxu1  ;;  %v4802_v60 = vadd.f32 1.0, %v6786_v58 }
0x17cd   :  { %v6788_v47 = vpop.eup %6787  ;;  %v4669_v25 = vadd.f32 %v4638_v35, %v4549_v8  ;;  %v4551_v59 = vpop.f32.mrb[99].mxu0  ;;  %6807 = vrcp.f32 %v4801_v37  ;;  %v5213_v46 = vmul.f32 -1.442695, %v4698_v5  ;;  %v5212_v41 = vmul.f32 -1.442695, %v4697_v21 }
0x17ce   :  { %v6205_v18 = vpop.f32.mrb[99].mxu1  ;;  %v6790_v24 = vpop.eup %6789  ;;  %v4803_v62 = vadd.f32 1.0, %v6788_v47  ;;  %v4700_v48 = vadd.f32 %v8806_v14, %v4551_v59  ;;  %6809 = vrcp.f32 %v4802_v60 }
0x17cf   :  { %v6792_v16 = vpop.eup %6791  ;;  %v4804_v2 = vadd.f32 1.0, %v6790_v24  ;;  %v4699_v32 = vadd.f32 %v8806_v14, %v4669_v25 }
0x17d0   :  { %v6794_v10 = vpop.eup %6793  ;;  %4882 = vst [vmem:[#allocation19 + $0x28] sm:$0xff] %v6792_v16  ;;  %6811 = vrcp.f32 %v4803_v62  ;;  %v5215_v36 = vmul.f32 -1.442695, %v4700_v48  ;;  %v4555_v31 = vpop.f32.mrb[100].mxu0 }
0x17d1   :  { %v6796_v13 = vpop.eup %6795  ;;  %4881 = vst [vmem:[#allocation19 + $0x20] sm:$0xff] %v6794_v10  ;;  %6813 = vrcp.f32 %v4804_v2  ;;  %v5214_v26 = vmul.f32 -1.442695, %v4699_v32  ;;  %v4646_v12 = vpop.f32.mrb[100].mxu1  ;;  %v4670_v22 = vadd.f32 %v4641_v3, %v4555_v31 }
0x17d2   :  { %v6798_v11 = vpop.eup %6797  ;;  %4884 = vst [vmem:[#allocation19 + $0x38] sm:$0xff] %v6796_v13  ;;  %6815 = vpow2.f32 %v5212_v41  ;;  %v4557_v27 = vpop.f32.mrb[101].mxu0 }
0x17d3   :  { %v6800_v42 = vpop.eup %6799  ;;  %4883 = vst [vmem:[#allocation19 + $0x30] sm:$0xff] %v6798_v11  ;;  %6817 = vpow2.f32 %v5213_v46  ;;  %v6208_v0 = vpop.f32.mrb[101].mxu1  ;;  %v4702_v17 = vadd.f32 %v8806_v14, %v4557_v27  ;;  %v4701_v4 = vadd.f32 %v8806_v14, %v4670_v22 }
0x17d4   :  { %v6802_v28 = vpop.eup %6801  ;;  %v4805_v51 = vadd.f32 1.0, %v6800_v42  ;;  %6819 = vpow2.f32 %v5214_v26  ;;  %v4559_v40 = vpop.f32.mrb[102].mxu0 }
0x17d5   :  { %v4649_v52 = vpop.f32.mrb[102].mxu1  ;;  %v6804_v23 = vpop.eup %6803  ;;  %v4806_v15 = vadd.f32 1.0, %v6802_v28  ;;  %6821 = vpow2.f32 %v5215_v36  ;;  %v4671_v6 = vadd.f32 %v4646_v12, %v4559_v40  ;;  %v5217_v45 = vmul.f32 -1.442695, %v4702_v17 }
0x17d6   :  { %v4561_v19 = vpop.f32.mrb[103].mxu0  ;;  %v6209_v20 = vpop.f32.mrb[103].mxu1  ;;  %6823 = vrcp.f32 %v4805_v51  ;;  %v4807_v29 = vadd.f32 1.0, %v6804_v23  ;;  %v5216_v61 = vmul.f32 -1.442695, %v4701_v4 }
0x17d7   :  { %v6806_v54 = vpop.eup %6805  ;;  %v4704_v7 = vadd.f32 %v8806_v14, %v4561_v19  ;;  %6825 = vrcp.f32 %v4806_v15  ;;  %v4703_v33 = vadd.f32 %v8806_v14, %v4671_v6 }
0x17d8   :  { %v4808_v49 = vadd.f32 1.0, %v6806_v54  ;;  %v6808_v63 = vpop.eup %6807  ;;  %6827 = vrcp.f32 %v4807_v29  ;;  %v4565_v43 = vpop.f32.mrb[104].mxu0 }
0x17d9   :  { %v6810_v34 = vpop.eup %6809  ;;  %4885 = vst [vmem:[#allocation19 + $0x40] sm:$0xff] %v6808_v63  ;;  %v5218_v39 = vmul.f32 -1.442695, %v4703_v33  ;;  %v5219_v53 = vmul.f32 -1.442695, %v4704_v7  ;;  %v4654_v55 = vpop.f32.mrb[104].mxu1  ;;  %v4672_v56 = vadd.f32 %v4649_v52, %v4565_v43 }
0x17da   :  { %6829 = vrcp.f32 %v4808_v49  ;;  %v6812_v38 = vpop.eup %6811  ;;  %4886 = vst [vmem:[#allocation19 + $0x48] sm:$0xff] %v6810_v34  ;;  %v4567_v30 = vpop.f32.mrb[105].mxu0  ;;  %v4707_v1 = vadd.f32 %v8806_v14, %v4654_v55 }
0x17db   :  { %6831 = vpow2.f32 %v5216_v61  ;;  %v6814_v44 = vpop.eup %6813  ;;  %4887 = vst [vmem:[#allocation19 + $0x50] sm:$0xff] %v6812_v38  ;;  %v6212_v35 = vpop.f32.mrb[105].mxu1  ;;  %v4705_v5 = vadd.f32 %v8806_v14, %v4672_v56  ;;  %v4706_v8 = vadd.f32 %v8806_v14, %v4567_v30 }
0x17dc   :  { %6833 = vpow2.f32 %v5217_v45  ;;  %v6816_v9 = vpop.eup %6815  ;;  %4888 = vst [vmem:[#allocation19 + $0x58] sm:$0xff] %v6814_v44  ;;  %v4569_v50 = vpop.f32.mrb[106].mxu0  ;;  %v5222_v46 = vmul.f32 -1.442695, %v4707_v1 }
0x17dd   :  { %6835 = vpow2.f32 %v5218_v39  ;;  %v4657_v57 = vpop.f32.mrb[106].mxu1  ;;  %v6818_v58 = vpop.eup %6817  ;;  %v4809_v37 = vadd.f32 1.0, %v6816_v9  ;;  %v5220_v18 = vmul.f32 -1.442695, %v4705_v5  ;;  %v5221_v16 = vmul.f32 -1.442695, %v4706_v8 }
0x17de   :  { %6837 = vpow2.f32 %v5219_v53  ;;  %v4570_v3 = vpop.f32.mrb[107].mxu0  ;;  %v6213_v47 = vpop.f32.mrb[107].mxu1  ;;  %v4810_v21 = vadd.f32 1.0, %v6818_v58 }
0x17df   :  { %v6820_v60 = vpop.eup %6819  ;;  %6839 = vrcp.f32 %v4809_v37 }
0x17e0   :  { %v6822_v25 = vpop.eup %6821  ;;  %v4811_v59 = vadd.f32 1.0, %v6820_v60  ;;  %6841 = vrcp.f32 %v4810_v21 }
0x17e1   :  { %v6824_v24 = vpop.eup %6823  ;;  %v4812_v62 = vadd.f32 1.0, %v6822_v25 }
0x17e2   :  { %v6826_v48 = vpop.eup %6825  ;;  %4889 = vst [vmem:[#allocation19 + $0x60] sm:$0xff] %v6824_v24  ;;  %6843 = vrcp.f32 %v4811_v59 }
0x17e3   :  { %v6828_v2 = vpop.eup %6827  ;;  %4890 = vst [vmem:[#allocation19 + $0x68] sm:$0xff] %v6826_v48  ;;  %6845 = vrcp.f32 %v4812_v62 }
0x17e4   :  { %v6830_v14 = vpop.eup %6829  ;;  %4891 = vst [vmem:[#allocation19 + $0x70] sm:$0xff] %v6828_v2  ;;  %6847 = vpow2.f32 %v5220_v18 }
0x17e5   :  { %v6832_v41 = vpop.eup %6831  ;;  %4892 = vst [vmem:[#allocation19 + $0x78] sm:$0xff] %v6830_v14  ;;  %6849 = vpow2.f32 %v5222_v46 }
0x17e6   :  { %v6834_v32 = vpop.eup %6833  ;;  %v4813_v10 = vadd.f32 1.0, %v6832_v41  ;;  %6851 = vpow2.f32 %v5221_v16 }
0x17e7   :  { %v6836_v13 = vpop.eup %6835  ;;  %v4814_v26 = vadd.f32 1.0, %v6834_v32 }
0x17e8   :  { %v6838_v36 = vpop.eup %6837  ;;  %6853 = vrcp.f32 %v4813_v10  ;;  %v4815_v11 = vadd.f32 1.0, %v6836_v13 }
0x17e9   :  { %6855 = vrcp.f32 %v4814_v26  ;;  %v4816_v31 = vadd.f32 1.0, %v6838_v36  ;;  %v6840_v12 = vpop.eup %6839 }
0x17ea   :  { %6857 = vrcp.f32 %v4815_v11  ;;  %v6842_v42 = vpop.eup %6841  ;;  %4893 = vst [vmem:[#allocation19 + $0x80] sm:$0xff] %v6840_v12 }
0x17eb   :  { %6859 = vrcp.f32 %v4816_v31  ;;  %4894 = vst [vmem:[#allocation19 + $0x88] sm:$0xff] %v6842_v42 }
0x17ec   :  { %v6844_v22 = vpop.eup %6843 }
0x17ed   :  { %v6846_v27 = vpop.eup %6845  ;;  %4895 = vst [vmem:[#allocation19 + $0x90] sm:$0xff] %v6844_v22 }
0x17ee   :  { %v6848_v0 = vpop.eup %6847  ;;  %4896 = vst [vmem:[#allocation19 + $0x98] sm:$0xff] %v6846_v27 }
0x17ef   :  { %v6850_v28 = vpop.eup %6849  ;;  %v4817_v51 = vadd.f32 1.0, %v6848_v0 }
0x17f0   :  { %v6852_v17 = vpop.eup %6851  ;;  %v4819_v40 = vadd.f32 1.0, %v6850_v28 }
0x17f1   :  { %6861 = vrcp.f32 %v4817_v51  ;;  %v4818_v52 = vadd.f32 1.0, %v6852_v17 }
0x17f2   :  { %v6854_v23 = vpop.eup %6853  ;;  %6863 = vrcp.f32 %v4819_v40 }
0x17f3   :  { %v6856_v15 = vpop.eup %6855  ;;  %4897 = vst [vmem:[#allocation19 + $0xa0] sm:$0xff] %v6854_v23  ;;  %6865 = vrcp.f32 %v4818_v52 }
0x17f4   :  { %v6858_v4 = vpop.eup %6857  ;;  %4898 = vst [vmem:[#allocation19 + $0xa8] sm:$0xff] %v6856_v15 }
0x17f5   :  { %v6860_v6 = vpop.eup %6859  ;;  %4899 = vst [vmem:[#allocation19 + $0xb0] sm:$0xff] %v6858_v4 }
0x17f6   :  { %4900 = vst [vmem:[#allocation19 + $0xb8] sm:$0xff] %v6860_v6 }
0x17fb   :  { %v6862_v19 = vpop.eup %6861 }
0x17fc   :  { %v6864_v20 = vpop.eup %6863  ;;  %4901 = vst [vmem:[#allocation19 + $0xc0] sm:$0xff] %v6862_v19 }
0x17fd   :  { %v6866_v54 = vpop.eup %6865  ;;  %4903 = vst [vmem:[#allocation19 + $0xd0] sm:$0xff] %v6864_v20 }
0x17fe   :  { %4902 = vst [vmem:[#allocation19 + $0xc8] sm:$0xff] %v6866_v54 }
0x17ff   :  { %7142 = shalt.err (!%p7139_p2)
}
0x1800   :  { %s7143_s26 = scalar_lea.hbm %s7435_s3, 3584 }
0x1801   :  { %p7144_p3 = scmp.ne.s32.totalorder %s7435_s3, %s7143_s26  ;;  %p7147_p4 = scmp.lt.u32.totalorder %s7143_s26, %s7435_s3 }
0x1803   :  { %p7149_p5 = pnand %p7147_p4, %p7144_p3 }
0x1805   :  { %7152 = shalt.err (!%p7149_p5)
}
0x1806   :  { %s7241_s9 = smov 128  }
0x1807   :  { %4916 = dma.vmem_to_hbm [thread:$0]  %s4911_s14, 3584, %s7435_s3, [#allocation4], %s7241_s9, %s7241_s9, %s7224_s13  }
0x1808   :  { %7165 = dma.done.wait [#allocation4], 3584  }
0x1809   :  { %7166 = vsyncadd [#allocation4], 4294963712 }
0x180a   :  { %7167 = dma.done.wait [#allocation21], 256  }
0x180b   :  { %7168 = vsyncadd [#allocation21], 4294967040 }
0x180c   :  { %4946 = vsyncpa [#allocation3], 1 }
0x180d   :  { %4947 = vsyncpa [#allocation6], 1 }
0x180e   :  { %4948 = vsyncpa [#allocation9], 1 }
0x180f   :  { %4949 = vsyncpa [#allocation12], 1 }
0x1810   :  { %4950 = vsyncpa [#allocation15], 1 }
0x1811   :  { %4951 = vsyncpa [#allocation18], 1 }
0x1812   :  { %4952 = vsyncpa [#allocation4], 1 }
0x1813   :  { %4953 = vsyncpa [#allocation21], 1 }

</bundles_post_ra>
